<compile_context>
chip_gen: v6e
topology: v6e:2x2x1
jax: 0.10.0
libtpu: 0.0.40
codegen_flags: <defaults>
</compile_context>

<pallas_src>
import numpy as np
import jax
import jax.numpy as jnp
from jax.experimental import pallas as pl
from jax.experimental.pallas import tpu as pltpu


# ----------------------------- Pallas kernel --------------------------------
def gene_model_kernel(x_ref, tab_ref, w_ref, b_ref, o_ref):
    # x_ref:   (TB, N) int8   genotype codes for this batch tile
    # tab_ref: (4,  N) f32    pre-folded per-SNP table: emb[k]*scale_w + scale_b
    # w_ref:   (N,  G) bf16   masked block-sparse weight (VMEM-resident, const index_map)
    # b_ref:   (1,  G) f32    output bias
    # o_ref:   (TB, G) f32    output tile
    x = x_ref[...].astype(jnp.int32)       # one up-front convert; masks match f32 packing
    rows = tab_ref[...]                    # (4, N) f32

    # variant embedding + diagonal scale layer, folded into a select chain:
    #   h[b, n] = emb[x[b, n]] * scale_w[n] + scale_b[n]  (codes > 3 -> row 0)
    h = jnp.where(x == 1, rows[1:2, :], rows[0:1, :])
    h = jnp.where(x == 2, rows[2:3, :], h)
    h = jnp.where(x == 3, rows[3:4, :], h)                 # (TB, N) f32

    # block_layers (depth 1): bf16 MXU matmul, f32 accumulation, bias + ReLU epilogue
    acc = jnp.dot(h.astype(w_ref.dtype), w_ref[...], preferred_element_type=jnp.float32)
    o_ref[...] = jnp.maximum(acc + b_ref[...], 0.0)


def gene_model_forward(x, table_f32, w_masked_bf16, bias, *, tb=128):
    B, N = x.shape
    G = w_masked_bf16.shape[1]
    assert B % tb == 0, (B, tb)

    return pl.pallas_call(
        gene_model_kernel,
        out_shape=jax.ShapeDtypeStruct((B, G), jnp.float32),
        grid_spec=pltpu.PrefetchScalarGridSpec(
            num_scalar_prefetch=0,
            grid=(B // tb,),                                  # batch-only grid
            in_specs=[
                pl.BlockSpec((tb, N), lambda b: (b, 0)),      # genotype tile (int8)
                pl.BlockSpec((4, N), lambda b: (0, 0)),       # folded emb*scale table (f32)
                pl.BlockSpec((N, G), lambda b: (0, 0)),       # full bf16 weight, resident
                pl.BlockSpec((1, G), lambda b: (0, 0)),       # bias
            ],
            out_specs=pl.BlockSpec((tb, G), lambda b: (b, 0)),
        ),
        compiler_params=pltpu.CompilerParams(
            dimension_semantics=("parallel",),                # 2 batch tiles -> 2 TCs on v7x
            vmem_limit_bytes=32 << 20,
        ),
    )(x, table_f32, w_masked_bf16, bias)


# ----------------------------- glue / params --------------------------------
def build_geneobj(n_genes, snps_per_gene, layersize):
    geneobj = {}
    for g in range(n_genes):
        geneobj[f"ENSG{g:011d}"] = {
            "layersize": layersize,
            "inputs": [{"index": g * snps_per_gene + s} for s in range(snps_per_gene)],
        }
    return geneobj


def build_block_mask(geneobj, n_snps):
    out_blocks = [geneobj[k]["layersize"] for k in geneobj]
    offsets = np.concatenate([[0], np.cumsum(out_blocks)])
    G = int(offsets[-1])
    mask = np.zeros((n_snps, G), np.float32)
    for gi, k in enumerate(geneobj):
        lo, hi = offsets[gi], offsets[gi + 1]
        for inp in geneobj[k]["inputs"]:
            mask[inp["index"], lo:hi] = 1.0
    return jnp.asarray(mask), G


if __name__ == "__main__":
    # TPU-tile-friendly shapes
    n_genes, snps_per_gene, layersize = 32, 32, 16
    N = n_genes * snps_per_gene          # 1024 SNPs
    B = 256                              # batch (2 batch tiles of 128)

    geneobj = build_geneobj(n_genes, snps_per_gene, layersize)
    mask, G = build_block_mask(geneobj, N)       # G = 512

    key = jax.random.PRNGKey(0)
    k_emb, k_sw, k_sb, k_w, k_b, k_x = jax.random.split(key, 6)

    emb = jax.random.normal(k_emb, (4,), jnp.float32)              # nn.Embedding(4, 1)
    scale_w = jax.random.normal(k_sw, (1, N), jnp.float32)         # diagonal scale layer
    scale_b = 0.1 * jax.random.normal(k_sb, (1, N), jnp.float32)
    W = jax.random.normal(k_w, (N, G), jnp.float32) / jnp.sqrt(N)  # block-sparse weight
    bias = 0.1 * jax.random.normal(k_b, (1, G), jnp.float32)

    # fold embedding + diagonal scale: row k = emb[k]*scale_w + scale_b  -> (4, N) f32
    table_f32 = emb[:, None] * scale_w + scale_b
    W_masked_bf16 = (W * mask).astype(jnp.bfloat16)                # apply block structure

    x = jax.random.randint(k_x, (B, N), 0, 4, dtype=jnp.int32).astype(jnp.int8)

    out = gene_model_forward(x, table_f32, W_masked_bf16, bias, tb=128)
    out = jax.block_until_ready(out)

    # pure-JAX reference (same cast points: f32 embedding/scale, bf16 matmul inputs,
    # f32 accumulation). Per-element gather: h[b, n] = table[x[b, n], n].
    x_i32 = x.astype(jnp.int32)
    h_ref = table_f32[x_i32, jnp.arange(N)[None, :]]               # (B, N) f32
    ref = jnp.maximum(
        jnp.dot(h_ref.astype(jnp.bfloat16), W_masked_bf16,
                preferred_element_type=jnp.float32) + bias,
        0.0,
    )
    assert out.shape == (B, G)
    np.testing.assert_allclose(np.asarray(out), np.asarray(ref), rtol=1e-2, atol=1e-2)

    print("KERNEL_OK")
</pallas_src>

<mosaic_0001>
module attributes {stable_mosaic.version = 11 : i64} {
  func.func @gene_model_kernel(%arg0: i32, %arg1: memref<128x1024xi8, #tpu.memory_space<vmem>>, %arg2: memref<4x1024xf32, #tpu.memory_space<vmem>>, %arg3: memref<1024x512xbf16, #tpu.memory_space<vmem>>, %arg4: memref<1x512xf32, #tpu.memory_space<vmem>>, %arg5: memref<128x512xf32, #tpu.memory_space<vmem>>) attributes {dimension_semantics = [#tpu.dimension_semantics<parallel>], iteration_bounds = array<i64: 2>, scalar_prefetch = 0 : i64, scratch_operands = 0 : i64, tpu.core_type = #tpu.core_type<tc>, window_params = [{transform_indices = @transform_0, window_bounds = array<i64: 128, 1024>}, {pipeline_mode = #tpu.pipeline_mode<synchronous>, transform_indices = @transform_1, window_bounds = array<i64: 4, 1024>}, {pipeline_mode = #tpu.pipeline_mode<synchronous>, transform_indices = @transform_2, window_bounds = array<i64: 1024, 512>}, {pipeline_mode = #tpu.pipeline_mode<synchronous>, transform_indices = @transform_3, window_bounds = array<i64: 1, 512>}, {transform_indices = @transform_4, window_bounds = array<i64: 128, 512>}]} {
    %c0 = arith.constant 0 : index
    %c0_0 = arith.constant 0 : index
    %0 = vector.load %arg1[%c0, %c0_0] : memref<128x1024xi8, #tpu.memory_space<vmem>>, vector<128x1024xi8>
    %1 = arith.extsi %0 : vector<128x1024xi8> to vector<128x1024xi32>
    %c0_1 = arith.constant 0 : index
    %c0_2 = arith.constant 0 : index
    %2 = vector.load %arg2[%c0_1, %c0_2] : memref<4x1024xf32, #tpu.memory_space<vmem>>, vector<4x1024xf32>
    %c1_i32 = arith.constant 1 : i32
    %3 = vector.broadcast %c1_i32 : i32 to vector<128x1024xi32>
    %4 = arith.cmpi eq, %1, %3 : vector<128x1024xi32>
    %5 = vector.extract_strided_slice %2 {offsets = [1, 0], sizes = [1, 1024], strides = [1, 1]} : vector<4x1024xf32> to vector<1x1024xf32>
    %6 = vector.extract_strided_slice %2 {offsets = [0, 0], sizes = [1, 1024], strides = [1, 1]} : vector<4x1024xf32> to vector<1x1024xf32>
    %7 = vector.shape_cast %5 : vector<1x1024xf32> to vector<1x1024xf32>
    %8 = vector.broadcast %7 : vector<1x1024xf32> to vector<128x1024xf32>
    %9 = vector.shape_cast %6 : vector<1x1024xf32> to vector<1x1024xf32>
    %10 = vector.broadcast %9 : vector<1x1024xf32> to vector<128x1024xf32>
    %11 = arith.select %4, %8, %10 : vector<128x1024xi1>, vector<128x1024xf32>
    %c2_i32 = arith.constant 2 : i32
    %12 = vector.broadcast %c2_i32 : i32 to vector<128x1024xi32>
    %13 = arith.cmpi eq, %1, %12 : vector<128x1024xi32>
    %14 = vector.extract_strided_slice %2 {offsets = [2, 0], sizes = [1, 1024], strides = [1, 1]} : vector<4x1024xf32> to vector<1x1024xf32>
    %15 = vector.shape_cast %14 : vector<1x1024xf32> to vector<1x1024xf32>
    %16 = vector.broadcast %15 : vector<1x1024xf32> to vector<128x1024xf32>
    %17 = arith.select %13, %16, %11 : vector<128x1024xi1>, vector<128x1024xf32>
    %c3_i32 = arith.constant 3 : i32
    %18 = vector.broadcast %c3_i32 : i32 to vector<128x1024xi32>
    %19 = arith.cmpi eq, %1, %18 : vector<128x1024xi32>
    %20 = vector.extract_strided_slice %2 {offsets = [3, 0], sizes = [1, 1024], strides = [1, 1]} : vector<4x1024xf32> to vector<1x1024xf32>
    %21 = vector.shape_cast %20 : vector<1x1024xf32> to vector<1x1024xf32>
    %22 = vector.broadcast %21 : vector<1x1024xf32> to vector<128x1024xf32>
    %23 = arith.select %19, %22, %17 : vector<128x1024xi1>, vector<128x1024xf32>
    %24 = arith.truncf %23 : vector<128x1024xf32> to vector<128x1024xbf16>
    %c0_3 = arith.constant 0 : index
    %c0_4 = arith.constant 0 : index
    %25 = vector.load %arg3[%c0_3, %c0_4] : memref<1024x512xbf16, #tpu.memory_space<vmem>>, vector<1024x512xbf16>
    %cst = arith.constant dense<0.000000e+00> : vector<128x512xf32>
    %26 = tpu.matmul %24, %25, %cst {dimension_numbers = #tpu.dot_dimension_numbers<[1], [0], [0], [1], [0, 0, 1, 1], [], []>} : vector<128x1024xbf16>, vector<1024x512xbf16>, vector<128x512xf32> -> vector<128x512xf32>
    %c0_5 = arith.constant 0 : index
    %c0_6 = arith.constant 0 : index
    %27 = vector.load %arg4[%c0_5, %c0_6] : memref<1x512xf32, #tpu.memory_space<vmem>>, vector<1x512xf32>
    %28 = vector.broadcast %27 : vector<1x512xf32> to vector<128x512xf32>
    %29 = arith.addf %26, %28 : vector<128x512xf32>
    %cst_7 = arith.constant 0.000000e+00 : f32
    %30 = vector.broadcast %cst_7 : f32 to vector<128x512xf32>
    %31 = arith.maximumf %29, %30 : vector<128x512xf32>
    %c0_8 = arith.constant 0 : index
    %c0_9 = arith.constant 0 : index
    %32 = vector.load %arg5[%c0_8, %c0_9] : memref<128x512xf32, #tpu.memory_space<vmem>>, vector<128x512xf32>
    tpu.vector_store %arg5[%c0_8, %c0_9], %31 {strides = array<i32>} : memref<128x512xf32, #tpu.memory_space<vmem>>, vector<128x512xf32>,
    return
  }
  func.func @transform_0(%arg0: i32) -> (i32, i32) {
    %c0_i32 = arith.constant 0 : i32
    %c0_i32_0 = arith.constant 0 : i32
    return %arg0, %c0_i32 : i32, i32
  }
  func.func @transform_1(%arg0: i32) -> (i32, i32) {
    %c0_i32 = arith.constant 0 : i32
    %c0_i32_0 = arith.constant 0 : i32
    %c0_i32_1 = arith.constant 0 : i32
    return %c0_i32, %c0_i32_0 : i32, i32
  }
  func.func @transform_2(%arg0: i32) -> (i32, i32) {
    %c0_i32 = arith.constant 0 : i32
    %c0_i32_0 = arith.constant 0 : i32
    %c0_i32_1 = arith.constant 0 : i32
    return %c0_i32, %c0_i32_0 : i32, i32
  }
  func.func @transform_3(%arg0: i32) -> (i32, i32) {
    %c0_i32 = arith.constant 0 : i32
    %c0_i32_0 = arith.constant 0 : i32
    %c0_i32_1 = arith.constant 0 : i32
    return %c0_i32, %c0_i32_0 : i32, i32
  }
  func.func @transform_4(%arg0: i32) -> (i32, i32) {
    %c0_i32 = arith.constant 0 : i32
    %c0_i32_0 = arith.constant 0 : i32
    return %arg0, %c0_i32 : i32, i32
  }
}

</mosaic_0001>

<bundles_post_ra>
// kernel: tpu_custom_call.1
= control target key start
LH: loop header
LB: loop body
LE: loop exit
PB: predicated region body
PF: predicated region fallthrough
CT: control target
= control target key end

     0   :  { %s7097_s0 = inlined_call_operand.hbm [shape: s8[256,1024], index: 0, kind: input, shape index: {}]   ;;  %s7098_s1 = inlined_call_operand.hbm [shape: f32[4,1024], index: 1, kind: input, shape index: {}]   ;;  %s7099_s2 = inlined_call_operand.hbm [shape: bf16[1024,512], index: 2, kind: input, shape index: {}]   ;;  %s7100_s3 = inlined_call_operand.vmem [shape: f32[1,512], index: 3, kind: input, shape index: {}]   ;;  %s7101_s4 = inlined_call_operand.hbm [shape: f32[256,512], index: 4, kind: output, shape index: {}]  }
   0x1   :  { %7143 = sst [smem:[#allocation57_spill]] %s7098_s1 }
   0x2   :  { %9 = vsyncpa [#allocation3], 0 }
   0x3   :  { %11 = vsyncpa [#allocation3 + $0x1], 0 }
   0x4   :  { %12 = vsyncpa [#allocation6], 0 }
   0x5   :  { %13 = vsyncpa [#allocation4], 0 }
   0x6   :  { %15 = vsyncpa [#allocation4 + $0x1], 0  ;;  %s5154_s15 = smov 0   ;;  %s5156_s16 = smov 0  }
   0x7   :  { %s5158_s17 = smov 0   ;;  %s5160_s18 = smov 0  }
   0x8 LB: > { %s5175_s19 = sadd.s32 4294967295, %s5117_s18   ;;  %s4231_s20 = sadd.s32 4294967294, %s5117_s18   ;;  %s5117_s18 = sphi %s5160_s18, %s7281_s18   ;;  %s5113_s17 = sphi %s5158_s17, %s7280_s17   ;;  %s5109_s16 = sphi %s5156_s16, %s7279_s16   ;;  %s5105_s15 = sphi %s5154_s15, %s7278_s15  }
   0x9   : > { %s5179_s21 = sadd.s32 1, %s5117_s18   ;;  %s28_s22 = sadd.s32 1, %s5113_s17 }
   0xa   : > { %s25_s23 = ssub.s32 %s5117_s18, %s5179_s21  ;;  %p35_p0 = scmp.ne.s32.totalorder %s5113_s17, %s5109_s16 }
   0xb   : > { %p26_p1 = scmp.eq.s32.totalorder %s25_s23, 0  ;;  %p36_p2 = scmp.eq.s32.totalorder %s5117_s18, 0 }
   0xc   : > { %p41_p3 = scmp.ne.s32.totalorder %s5109_s16, %s5105_s15  ;;  %p7102_p4 = scmp.eq.s32.totalorder %s5175_s19, 0 }
   0xd   : > { %s5191_s24 = scalar_select %p26_p1, %s5113_s17, %s28_s22  }
   0xe   : > { %p5193_p5 = por %p36_p2, %p35_p0  ;;  %p5199_p6 = por %p7102_p4, %p41_p3 }
   0xf   : > { %p128_p7 = scmp.eq.s32.totalorder %s5175_s19, 1  ;;  %p134_p8 = scmp.eq.s32.totalorder %s4231_s20, 1 }
  0x10   : > { %s7145_s26 = scalar_select %p5199_p6, 1, 0 }
  0x11   : > { %p4232_p9 = scmp.ge.s32.totalorder %s5117_s18, 1  ;;  %p141_p10 = scmp.lt.s32.totalorder %s5117_s18, 3 }
  0x12   : > { %p5206_p11 = por %p128_p7, %p35_p0  ;;  %p5210_p12 = por %p134_p8, %p41_p3 }
  0x13   : > { %p5214_p13 = pnand %p4232_p9, %p141_p10  ;;  %s5119_s30 = smov [#allocation5]  }
  0x14   : > { %s7146_s27 = scalar_select %p5206_p11, 1, 0 }
  0x15   : > { %s7147_s28 = scalar_select %p5210_p12, 1, 0 }
  0x16   : > { %s7148_s29 = scalar_select %p5214_p13, 1, 0 }
  0x17   : > { %p4523_p2 = pneg %p5214_p13  ;;  %s154_s5 = sshll.u32 %s5119_s30, 4  ;;  %s155_s5 = int_to_ptr.vmem [resolvable:$true] %s154_s5 }
  0x18   : > { %p4540_p4 = scmp.lt.s32.totalorder %s5117_s18, 2  ;;  %p7149_p0 = scmp.eq.s32.totalorder %s5175_s19, 0 }
  0x19   : > { %s5120_s8 = smov [#allocation7]   ;;  %s4980_s10 = scalar_lea.vmem %s155_s5, 512 }
  0x1a   : > { %p5224_p7 = pnand %p4523_p2, %p7149_p0  ;;  %p5230_p3 = pnand %p4540_p4, %p5193_p5 }
  0x1b   : > { %s164_s9 = sshll.u32 %s5120_s8, 4  ;;  %p4981_p9 = scmp.ne.s32.totalorder %s155_s5, %s4980_s10  ;;  %s165_s9 = int_to_ptr.vmem [resolvable:$true] %s164_s9 }
  0x1c   : > { %p4971_p8 = pneg %p5224_p7  ;;  %p4988_p0 = scmp.lt.s32.totalorder %s155_s5, %s155_s5 }
  0x1d   : > { %p4989_p1 = scmp.lt.s32.totalorder %s4980_s10, %s4980_s10 }
  0x1e   : > { %p4983_p10 = pnand %p4981_p9, %p4971_p8 }
  0x1f   : > { %p4990_p12 = por %p4989_p1, %p4988_p0 }
  0x20   : > { %p4984_p2 = pneg %p4983_p10 }
  0x22   : > { %p4991_p11 = pnand %p4990_p12, %p4984_p2 }
  0x24   : > { %4994 = shalt.err (!%p4991_p11)
}
  0x25   : > { %s7152_s1 = sld [smem:[#allocation57_spill]]  ;;  %s181_s13 = sand.u32 1, %s5113_s17  }
  0x26   : > { %s5006_s14 = scalar_lea.vmem %s165_s9, 32768  ;;  %p5014_p10 = scmp.lt.s32.totalorder %s165_s9, %s165_s9 }
  0x27   : > { %p5007_p4 = scmp.ne.s32.totalorder %s165_s9, %s5006_s14  ;;  %p5015_p6 = scmp.lt.s32.totalorder %s5006_s14, %s5006_s14 }
  0x29   : > { %p5009_p5 = pnand %p5007_p4, %p4971_p8  ;;  %p5016_p1 = por %p5015_p6, %p5014_p10 }
  0x2b   : > { %4526 = dma.hbm_to_vmem [thread:$0]  (!%p5224_p7), %s7152_s1, 512, %s155_s5, [#allocation6]  }
  0x2c   : > { %p5010_p9 = pneg %p5009_p5 }
  0x2e   : > { %p5017_p12 = pnand %p5016_p1, %p5010_p9 }
  0x30   : > { %5020 = shalt.err (!%p5017_p12)
}
  0x31   : > { %s5121_s20 = smov 256   ;;  %s5122_s22 = smov 16  }
  0x32   : > { %4529 = dma.hbm_to_vmem [thread:$0]  (!%p5224_p7), %s7099_s2, 32768, %s165_s9, [#allocation6], %s5121_s20, %s5121_s20, %s5122_s22  }
  0x33   : > { %s4236_s30 = sshll.u32 %s181_s13, 8  ;;  %s4508_s5 = sshll.u32 %s5117_s18, 12 }
  0x34   : > { %s5257_s11 = scalar_lea.hbm %s7097_s0, %s4508_s5  ;;  %s185_s12 = scalar_lea.vmem [#allocation2], %s4236_s30 }
  0x35   : > { %s193_s14 = sshll.u32 %s185_s12, 4  ;;  %s5261_s1 = scalar_lea.sflag [#allocation3], %s181_s13  ;;  %s5259_s14 = int_to_ptr.vmem [resolvable:$true] %s193_s14 }
  0x36   : > { %s5021_s6 = scalar_lea.hbm %s5257_s11, 4096  ;;  %p5023_p11 = pneg %p5230_p3 }
  0x37   : > { %p5022_p6 = scmp.ne.s32.totalorder %s5257_s11, %s5021_s6  ;;  %s5026_s22 = scalar_lea.hbm %s7097_s0, 8192 }
  0x38   : > { %p5027_p2 = scmp.lt.s32.totalorder %s5257_s11, %s7097_s0  ;;  %p5028_p0 = scmp.lt.s32.totalorder %s5026_s22, %s5021_s6 }
  0x39   : > { %p5024_p7 = pnand %p5023_p11, %p5022_p6 }
  0x3a   : > { %p5029_p4 = por %p5028_p0, %p5027_p2 }
  0x3b   : > { %p5025_p8 = pneg %p5024_p7 }
  0x3d   : > { %p5030_p5 = pnand %p5029_p4, %p5025_p8 }
  0x3f   : > { %5033 = shalt.err (!%p5030_p5)
}
  0x40   : > { %s5034_s13 = scalar_lea.vmem %s5259_s14, 4096  ;;  %s5123_s30 = smov [#allocation2]  }
  0x41   : > { %p5035_p9 = scmp.ne.s32.totalorder %s5259_s14, %s5034_s13  ;;  %s5039_s5 = sshll.u32 %s5123_s30, 4  ;;  %s5040_s5 = int_to_ptr.vmem [resolvable:$false] %s5039_s5 }
  0x42   : > { %s5041_s8 = scalar_lea.vmem %s5040_s5, 8192  ;;  %p5042_p12 = scmp.lt.s32.totalorder %s5259_s14, %s5040_s5 }
  0x43   : > { %p5037_p10 = pnand %p5035_p9, %p5023_p11  ;;  %p5043_p6 = scmp.lt.s32.totalorder %s5041_s8, %s5034_s13 }
  0x45   : > { %p5038_p1 = pneg %p5037_p10  ;;  %p5044_p7 = por %p5043_p6, %p5042_p12 }
  0x47   : > { %p5045_p13 = pnand %p5044_p7, %p5038_p1 }
  0x49   : > { %5048 = shalt.err (!%p5045_p13)
}
  0x4a   : > { %s5124_s10 = smov 1024   ;;  %s5125_s12 = smov 64  }
  0x4b   : > { %4533 = dma.hbm_to_vmem [thread:$0]  (!%p5230_p3), %s5257_s11, 4096, %s5259_s14, %s5261_s1, %s5124_s10, %s5124_s10, %s5125_s12  }
  0x4c   : > { %p7153_p11 = scmp.ne.s32.totalorder %s7148_s29, 0 }
  0x4e   : > { %205 = sbr.rel (%p7153_p11) target bundleno = 728 (0x2d8), region = 36 }
  0x53   : > { %s5285_s6 = sand.u32 1, %s5109_s16   ;;  %p7154_p13 = scmp.ne.s32.totalorder %s7145_s26, 0 }
  0x54   : > { %s4241_s9 = sshll.u32 %s5285_s6, 8  ;;  %s208_s20 = scalar_lea.sflag [#allocation3], %s5285_s6 }
  0x55   : > { %s5289_s22 = scalar_lea.vmem [#allocation2], %s4241_s9 }
  0x56   : > { %5092 = dma.done.wait (%p7154_p13), %s208_s20, 4096  }
  0x57   : > { %5094 = vsyncadd (%p7154_p13), %s208_s20, 4294963200  ;;  %p7155_p3 = scmp.eq.s32.totalorder %s5175_s19, 0 }
  0x59   : > { %5096 = dma.done.wait (%p7155_p3), [#allocation6], 33280   ;;  %p7156_p8 = pmov %p7155_p3 }
  0x5a   : > { %v4584_v0 = vld [vmem:[#allocation7 + $0xe4] ss:$16 sps:$4 sm:$0xff]   ;;  %v4588_v2 = vld [vmem:[#allocation7 + $0xe0] ss:$16 sps:$4 sm:$0xff]   ;;  %v542_v34 = vlaneseq  ;;  %v247_v57 = vld [vmem:[%s5289_s22 + $0x8] sm:$0xff]  ;;  %s4244_s29 = sshll.u32 %s5285_s6, 9 }
  0x5b   : > { %5098 = vsyncadd (%p7156_p8), [#allocation6], 4294934016  ;;  %v4586_v1 = vld [vmem:[#allocation7 + $0x2e4] ss:$16 sps:$4 sm:$0xff]   ;;  %3092 = vmatprep.subr.bf16.mxu0 %v4584_v0  ;;  %v4589_v3 = vld [vmem:[#allocation7 + $0x2e0] ss:$16 sps:$4 sm:$0xff]   ;;  %v279_v60 = vunpack.c.0.s8 %v247_v57  ;;  %v287_v61 = vunpack.c.1.s8 %v247_v57  ;;  %v5321_v0 = vunpack.c.2.s8 %v247_v57 }
  0x5c   : > { %3205 = vmatprep.subr.bf16.mxu1 %v4586_v1  ;;  %v4590_v4 = vld [vmem:[#allocation7 + $0xc4] ss:$16 sps:$4 sm:$0xff]   ;;  %3093 = vmatpush1.bf16.msra.mxu0 %v4588_v2  ;;  %v4594_v6 = vld [vmem:[#allocation7 + $0xc0] ss:$16 sps:$4 sm:$0xff]   ;;  %v543_v39 = vshrl.u32 %v542_v34, 7  ;;  %v5319_v63 = vld [vmem:[%s5289_s22 + $0x18] sm:$0xff]  ;;  %v5323_v1 = vunpack.c.3.s8 %v247_v57 }
  0x5d   : > { %3206 = vmatpush1.bf16.msra.mxu1 %v4589_v3  ;;  %v4592_v5 = vld [vmem:[#allocation7 + $0x2c4] ss:$16 sps:$4 sm:$0xff]   ;;  %3094 = vmatprep.subr.bf16.mxu0 %v4590_v4  ;;  %v4595_v7 = vld [vmem:[#allocation7 + $0x2c0] ss:$16 sps:$4 sm:$0xff]   ;;  %vm411_vm0 = vcmp.eq.s32.totalorder %v279_v60, 1  ;;  %vm419_vm1 = vcmp.eq.s32.totalorder %v287_v61, 1 }
  0x5e   : > { %3207 = vmatprep.subr.bf16.mxu1 %v4592_v5  ;;  %v4596_v8 = vld [vmem:[#allocation7 + $0xa4] ss:$16 sps:$4 sm:$0xff]   ;;  %v4600_v10 = vld [vmem:[#allocation7 + $0xa0] ss:$16 sps:$4 sm:$0xff]   ;;  %v5299_v44 = vsub.s32 1, %v543_v39  ;;  %v5301_v47 = vsub.s32 5, %v543_v39 }
  0x5f   : > { %v4598_v9 = vld [vmem:[#allocation7 + $0x2a4] ss:$16 sps:$4 sm:$0xff]   ;;  %v4601_v11 = vld [vmem:[#allocation7 + $0x2a0] ss:$16 sps:$4 sm:$0xff]   ;;  %v5303_v48 = vsub.s32 0, %v543_v39  ;;  %v5305_v50 = vsub.s32 4, %v543_v39 }
  0x60   : > { %3095 = vmatpush1.bf16.msra.mxu0 %v4594_v6  ;;  %v4602_v12 = vld [vmem:[#allocation7 + $0x84] ss:$16 sps:$4 sm:$0xff]   ;;  %v4606_v14 = vld [vmem:[#allocation7 + $0x80] ss:$16 sps:$4 sm:$0xff]   ;;  %v5307_v51 = vsub.s32 6, %v543_v39  ;;  %v5309_v53 = vsub.s32 2, %v543_v39  ;;  %v5332_v6 = vunpack.c.0.s8 %v5319_v63 }
  0x61   : > { %3208 = vmatpush1.bf16.msra.mxu1 %v4595_v7  ;;  %3096 = vmatprep.subr.bf16.mxu0 %v4596_v8  ;;  %v4604_v13 = vld [vmem:[#allocation7 + $0x284] ss:$16 sps:$4 sm:$0xff]   ;;  %v4607_v15 = vld [vmem:[#allocation7 + $0x280] ss:$16 sps:$4 sm:$0xff]   ;;  %v5311_v54 = vsub.s32 3, %v543_v39  ;;  %v5314_v58 = vsub.s32 7, %v543_v39 }
  0x62   : > { %3209 = vmatprep.subr.bf16.mxu1 %v4598_v9  ;;  %v4608_v16 = vld [vmem:[#allocation7 + $0x64] ss:$16 sps:$4 sm:$0xff]   ;;  %v4612_v18 = vld [vmem:[#allocation7 + $0x60] ss:$16 sps:$4 sm:$0xff]   ;;  %7157 = vst [vmem:[#allocation12_spill] sm:$0xff] %v5309_v53  ;;  %v5334_v7 = vld [vmem:[#allocation5 + $0x8] sm:$0xff] }
  0x63   : > { %v4610_v17 = vld [vmem:[#allocation7 + $0x264] ss:$16 sps:$4 sm:$0xff]   ;;  %v4613_v19 = vld [vmem:[#allocation7 + $0x260] ss:$16 sps:$4 sm:$0xff]   ;;  %7158 = vst [vmem:[#allocation13_spill] sm:$0xff] %v5311_v54  ;;  %vm815_vm2 = vcmp.eq.s32.totalorder %v279_v60, 2 }
  0x64   : > { %3097 = vmatpush1.bf16.msra.mxu0 %v4600_v10  ;;  %v4614_v20 = vld [vmem:[#allocation7 + $0x44] ss:$16 sps:$4 sm:$0xff]   ;;  %v4618_v22 = vld [vmem:[#allocation7 + $0x40] ss:$16 sps:$4 sm:$0xff]   ;;  %vm823_vm3 = vcmp.eq.s32.totalorder %v287_v61, 2  ;;  %vm1143_vm4 = vcmp.eq.s32.totalorder %v279_v60, 3 }
  0x65   : > { %3210 = vmatpush1.bf16.msra.mxu1 %v4601_v11  ;;  %3098 = vmatprep.subr.bf16.mxu0 %v4602_v12  ;;  %v4616_v21 = vld [vmem:[#allocation7 + $0x244] ss:$16 sps:$4 sm:$0xff]   ;;  %v4619_v23 = vld [vmem:[#allocation7 + $0x240] ss:$16 sps:$4 sm:$0xff]   ;;  %vm1151_vm5 = vcmp.eq.s32.totalorder %v287_v61, 3  ;;  %vm413_vm6 = vcmp.eq.s32.totalorder %v5332_v6, 1 }
  0x66   : > { %3211 = vmatprep.subr.bf16.mxu1 %v4604_v13  ;;  %v4620_v24 = vld [vmem:[#allocation7 + $0x24] ss:$16 sps:$4 sm:$0xff]   ;;  %v4624_v26 = vld [vmem:[#allocation7 + $0x20] ss:$16 sps:$4 sm:$0xff]   ;;  %vm817_vm7 = vcmp.eq.s32.totalorder %v5332_v6, 2  ;;  %vm1145_vm10 = vcmp.eq.s32.totalorder %v5332_v6, 3 }
  0x67   : > { %v4622_v25 = vld [vmem:[#allocation7 + $0x224] ss:$16 sps:$4 sm:$0xff]   ;;  %v4625_v27 = vld [vmem:[#allocation7 + $0x220] ss:$16 sps:$4 sm:$0xff]   ;;  %s6697_s7 = scalar_lea.vmem [#allocation8], %s4244_s29  ;;  %s4510_s23 = sshll.u32 %s5175_s19, 13 }
  0x68   : > { %3099 = vmatpush1.bf16.msra.mxu0 %v4606_v14  ;;  %v4626_v28 = vld [vmem:[#allocation7 + $0x4] ss:$16 sps:$4 sm:$0xff]   ;;  %v4630_v30 = vld [vmem:[#allocation7] ss:$16 sps:$4 sm:$0xff]   ;;  %s4139_s25 = sshll.u32 %s6697_s7, 4  ;;  %s7050_s5 = scalar_lea.hbm %s7101_s4, %s4510_s23  ;;  %s7052_s25 = int_to_ptr.vmem [resolvable:$true] %s4139_s25 }
  0x69   : > { %3212 = vmatpush1.bf16.msra.mxu1 %v4607_v15  ;;  %3100 = vmatprep.subr.bf16.mxu0 %v4608_v16  ;;  %v4628_v29 = vld [vmem:[#allocation7 + $0x204] ss:$16 sps:$4 sm:$0xff]   ;;  %v4631_v31 = vld [vmem:[#allocation7 + $0x200] ss:$16 sps:$4 sm:$0xff]   ;;  %v5348_v15 = vunpack.c.1.s8 %v5319_v63  ;;  %s4125_s8 = scalar_lea.sflag [#allocation4], %s5285_s6  ;;  %s5049_s19 = scalar_lea.vmem %s7052_s25, 8192 }
  0x6a   : > { %3213 = vmatprep.subr.bf16.mxu1 %v4610_v17  ;;  %v4632_v32 = vld [vmem:[#allocation7 + $0x1e4] ss:$16 sps:$4 sm:$0xff]   ;;  %v4636_v35 = vld [vmem:[#allocation7 + $0x1e0] ss:$16 sps:$4 sm:$0xff]   ;;  %p5050_p2 = scmp.ne.s32.totalorder %s7052_s25, %s5049_s19  ;;  %p7275_p0 = scmp.ne.s32.totalorder %s7146_s27, 0 }
  0x6b   : > { %v4634_v33 = vld [vmem:[#allocation7 + $0x3e4] ss:$16 sps:$4 sm:$0xff]   ;;  %v4637_v36 = vld [vmem:[#allocation7 + $0x3e0] ss:$16 sps:$4 sm:$0xff]   ;;  %vm421_vm8 = vcmp.eq.s32.totalorder %v5348_v15, 1  ;;  %vm825_vm9 = vcmp.eq.s32.totalorder %v5348_v15, 2 }
  0x6c   : > { %3101 = vmatpush1.bf16.msra.mxu0 %v4612_v18  ;;  %v4638_v37 = vld [vmem:[#allocation7 + $0x1c4] ss:$16 sps:$4 sm:$0xff]   ;;  %v4642_v40 = vld [vmem:[#allocation7 + $0x1c0] ss:$16 sps:$4 sm:$0xff]   ;;  %vm1153_vm11 = vcmp.eq.s32.totalorder %v5348_v15, 3  ;;  %p5051_p4 = pnand %p5050_p2, %p7275_p0  ;;  %s5126_s10 = smov [#allocation8]  }
  0x6d   : > { %3214 = vmatpush1.bf16.msra.mxu1 %v4613_v19  ;;  %3102 = vmatprep.subr.bf16.mxu0 %v4614_v20  ;;  %v4640_v38 = vld [vmem:[#allocation7 + $0x3c4] ss:$16 sps:$4 sm:$0xff]   ;;  %v4643_v41 = vld [vmem:[#allocation7 + $0x3c0] ss:$16 sps:$4 sm:$0xff]   ;;  %v557_v19 = vrot.slane %v5334_v7, %v5301_v47  ;;  %s5053_s12 = sshll.u32 %s5126_s10, 4  ;;  %s5054_s12 = int_to_ptr.vmem [resolvable:$false] %s5053_s12 }
  0x6e   : > { %3215 = vmatprep.subr.bf16.mxu1 %v4616_v21  ;;  %v4644_v42 = vld [vmem:[#allocation7 + $0x1a4] ss:$16 sps:$4 sm:$0xff]   ;;  %v4648_v45 = vld [vmem:[#allocation7 + $0x1a0] ss:$16 sps:$4 sm:$0xff]   ;;  %p5052_p5 = pneg %p5051_p4  ;;  %s5055_s9 = scalar_lea.vmem %s5054_s12, 16384 }
  0x6f   : > { %v4646_v43 = vld [vmem:[#allocation7 + $0x3a4] ss:$16 sps:$4 sm:$0xff]   ;;  %v4649_v46 = vld [vmem:[#allocation7 + $0x3a0] ss:$16 sps:$4 sm:$0xff]   ;;  %p5056_p9 = scmp.lt.s32.totalorder %s7052_s25, %s5054_s12  ;;  %p5057_p10 = scmp.lt.s32.totalorder %s5055_s9, %s5049_s19 }
  0x70   : > { %3103 = vmatpush1.bf16.msra.mxu0 %v4618_v22  ;;  %v4650_v49 = vld [vmem:[#allocation7 + $0x184] ss:$16 sps:$4 sm:$0xff]   ;;  %v4654_v55 = vld [vmem:[#allocation7 + $0x180] ss:$16 sps:$4 sm:$0xff]  }
  0x71   : > { %3216 = vmatpush1.bf16.msra.mxu1 %v4619_v23  ;;  %3104 = vmatprep.subr.bf16.mxu0 %v4620_v24  ;;  %v4652_v52 = vld [vmem:[#allocation7 + $0x384] ss:$16 sps:$4 sm:$0xff]   ;;  %v4655_v56 = vld [vmem:[#allocation7 + $0x380] ss:$16 sps:$4 sm:$0xff]   ;;  %v5372_v24 = vrot.slane %v557_v19, %v5299_v44  ;;  %p5058_p1 = por %p5057_p10, %p5056_p9 }
  0x72   : > { %3217 = vmatprep.subr.bf16.mxu1 %v4622_v25  ;;  %v4656_v59 = vld [vmem:[#allocation7 + $0x164] ss:$16 sps:$4 sm:$0xff]   ;;  %v4660_v8 = vld [vmem:[#allocation7 + $0x160] ss:$16 sps:$4 sm:$0xff]   ;;  %v629_v25 = vrot.slane %v5334_v7, %v5305_v50 }
  0x73   : > { %v5316_v62 = vld [vmem:[#allocation5] sm:$0xff]  ;;  %v5432_v60 = vld [vmem:[%s5289_s22 + $0x10] sm:$0xff]  ;;  %p5059_p12 = pnand %p5058_p1, %p5052_p5 }
  0x74   : > { %3105 = vmatpush1.bf16.msra.mxu0 %v4624_v26  ;;  %v4658_v2 = vld [vmem:[#allocation7 + $0x364] ss:$16 sps:$4 sm:$0xff]   ;;  %v549_v3 = vrot.slane %v5316_v62, %v5301_v47  ;;  %v621_v4 = vrot.slane %v5316_v62, %v5305_v50  ;;  %v949_v5 = vrot.slane %v5316_v62, %v5307_v51  ;;  %v4661_v12 = vld [vmem:[#allocation7 + $0x360] ss:$16 sps:$4 sm:$0xff]   ;;  %v1277_v14 = vrot.slane %v5316_v62, %v5314_v58 }
  0x75   : > { %3218 = vmatpush1.bf16.msra.mxu1 %v4625_v27  ;;  %3106 = vmatprep.subr.bf16.mxu0 %v4626_v28  ;;  %v4662_v13 = vld [vmem:[#allocation7 + $0x144] ss:$16 sps:$4 sm:$0xff]   ;;  %v957_v26 = vrot.slane %v5334_v7, %v5307_v51  ;;  %v4666_v27 = vld [vmem:[#allocation7 + $0x140] ss:$16 sps:$4 sm:$0xff]   ;;  %v545_v39 = vrot.slane %v5316_v62, %v5299_v44  ;;  %v288_v15 = vunpack.c.1.s8 %v5432_v60 }
  0x76   : > { %3219 = vmatprep.subr.bf16.mxu1 %v4628_v29  ;;  %v5337_v9 = vrot.slane %v549_v3, %v5299_v44  ;;  %v5340_v10 = vrot.slane %v621_v4, %v5303_v48  ;;  %v5343_v11 = vrot.slane %v949_v5, %v5309_v53  ;;  %v4664_v16 = vld [vmem:[#allocation7 + $0x344] ss:$16 sps:$4 sm:$0xff]   ;;  %v5365_v22 = vrot.slane %v1277_v14, %v5311_v54 }
  0x77   : > { %v5369_v23 = vld [vmem:[%s5289_s22] sm:$0xff]  ;;  %v5391_v34 = vrot.slane %v957_v26, %v5309_v53  ;;  %v280_v14 = vunpack.c.0.s8 %v5432_v60 }
  0x78   : > { %3107 = vmatpush1.bf16.msra.mxu0 %v4630_v30  ;;  %v687_v17 = vsel %vm411_vm0, %v5337_v9, %v5340_v10  ;;  %v695_v18 = vsel %vm419_vm1, %v5337_v9, %v5340_v10  ;;  %v4667_v30 = vld [vmem:[#allocation7 + $0x340] ss:$16 sps:$4 sm:$0xff]   ;;  %v4676_v61 = vld [vmem:[#allocation7 + $0x304] ss:$16 sps:$4 sm:$0xff]  }
  0x79   : > { %3220 = vmatpush1.bf16.msra.mxu1 %v4631_v31  ;;  %3108 = vmatprep.subr.bf16.mxu0 %v4632_v32  ;;  %v1015_v20 = vsel %vm815_vm2, %v5343_v11, %v687_v17  ;;  %v1023_v21 = vsel %vm823_vm3, %v5343_v11, %v695_v18  ;;  %v4668_v31 = vld [vmem:[#allocation7 + $0x124] ss:$16 sps:$4 sm:$0xff]   ;;  %v4679_v17 = vld [vmem:[#allocation7 + $0x300] ss:$16 sps:$4 sm:$0xff]   ;;  %vm427_vm2 = vcmp.eq.s32.totalorder %v5321_v0, 1  ;;  %vm412_vm3 = vcmp.eq.s32.totalorder %v280_v14, 1 }
  0x7a   : > { %3221 = vmatprep.subr.bf16.mxu1 %v4634_v33  ;;  %v1343_v28 = vsel %vm1143_vm4, %v5365_v22, %v1015_v20  ;;  %v1351_v29 = vsel %vm1151_vm5, %v5365_v22, %v1023_v21  ;;  %v5388_v33 = vrot.slane %v629_v25, %v5303_v48  ;;  %vm420_vm4 = vcmp.eq.s32.totalorder %v288_v15, 1  ;;  %v4682_v25 = vld [vmem:[#allocation7 + $0x4e4] ss:$16 sps:$4 sm:$0xff]  }
  0x7b   : > { %v5385_v32 = vpack.c.bf16 %v1351_v29, %v1343_v28  ;;  %v4685_v26 = vld [vmem:[#allocation7 + $0x6e4] ss:$16 sps:$4 sm:$0xff]   ;;  %vm816_vm5 = vcmp.eq.s32.totalorder %v280_v14, 2  ;;  %v953_v28 = vrot.slane %v5334_v7, %v5309_v53 }
  0x7c   : > { %3109 = vmatpush2.bf16.msra.mxu0 %v4636_v35  ;;  %v5394_v35 = vunpack.c.0.s8 %v5369_v23 }
  0x7d   : > { %3222 = vmatpush2.bf16.msra.mxu1 %v4637_v36  ;;  %3110 = vmatprep.subr.bf16.mxu0 %v4638_v37  ;;  %v4670_v36 = vld [vmem:[#allocation7 + $0x324] ss:$16 sps:$4 sm:$0xff]   ;;  %v1285_v37 = vrot.slane %v5334_v7, %v5314_v58 }
  0x7e   : > { %3223 = vmatprep.subr.bf16.mxu1 %v4640_v38  ;;  %v286_v38 = vunpack.c.1.s8 %v5369_v23  ;;  %3124 = vmatprep.mubr.bf16.mxu0 %v5385_v32  ;;  %vm410_vm12 = vcmp.eq.s32.totalorder %v5394_v35, 1  ;;  %vm814_vm13 = vcmp.eq.s32.totalorder %v5394_v35, 2  ;;  %vm1142_vm0 = vcmp.eq.s32.totalorder %v5394_v35, 3 }
  0x7f   : > { %v5494_v35 = vrot.slane %v953_v28, %v5309_v53 }
  0x80   : > { %3111 = vmatpush2.bf16.msra.mxu0 %v4642_v40  ;;  %v617_v40 = vrot.slane %v5316_v62, %v5303_v48  ;;  %vm418_vm14 = vcmp.eq.s32.totalorder %v286_v38, 1  ;;  %vm822_vm15 = vcmp.eq.s32.totalorder %v286_v38, 2  ;;  %vm1150_vm1 = vcmp.eq.s32.totalorder %v286_v38, 3 }
  0x81   : > { %3224 = vmatpush2.bf16.msra.mxu1 %v4643_v41  ;;  %3112 = vmatprep.subr.bf16.mxu0 %v4644_v42  ;;  %v689_v41 = vsel %vm413_vm6, %v5372_v24, %v5388_v33  ;;  %v697_v42 = vsel %vm421_vm8, %v5372_v24, %v5388_v33  ;;  %vm824_vm6 = vcmp.eq.s32.totalorder %v288_v15, 2  ;;  %vm1152_vm8 = vcmp.eq.s32.totalorder %v288_v15, 3 }
  0x82   : > { %3225 = vmatprep.subr.bf16.mxu1 %v4646_v43  ;;  %v4672_v43 = vld [vmem:[#allocation7 + $0x120] ss:$16 sps:$4 sm:$0xff]   ;;  %v5427_v57 = vrot.slane %v617_v40, %v5303_v48  ;;  %v1281_v38 = vrot.slane %v5334_v7, %v5311_v54  ;;  %v4688_v40 = vld [vmem:[#allocation7 + $0x4c4] ss:$16 sps:$4 sm:$0xff]  }
  0x84   : > { %3113 = vmatpush2.bf16.msra.mxu0 %v4648_v45  ;;  %v1017_v45 = vsel %vm817_vm7, %v5391_v34, %v689_v41  ;;  %vm1144_vm7 = vcmp.eq.s32.totalorder %v280_v14, 3  ;;  %v703_v41 = vsel %vm427_vm2, %v5337_v9, %v5340_v10 }
  0x85   : > { %3226 = vmatpush2.bf16.msra.mxu1 %v4649_v46  ;;  %3114 = vmatprep.subr.bf16.mxu0 %v4650_v49  ;;  %v1025_v46 = vsel %vm825_vm9, %v5391_v34, %v697_v42  ;;  %v5421_v49 = vrot.slane %v1285_v37, %v5311_v54  ;;  %vm435_vm9 = vcmp.eq.s32.totalorder %v5323_v1, 1 }
  0x86   : > { %3227 = vmatprep.subr.bf16.mxu1 %v4652_v52  ;;  %v4673_v52 = vld [vmem:[#allocation7 + $0x320] ss:$16 sps:$4 sm:$0xff]   ;;  %v711_v42 = vsel %vm435_vm9, %v5337_v9, %v5340_v10 }
  0x87   : > { %v1353_v3 = vsel %vm1153_vm11, %v5421_v49, %v1025_v46  ;;  %vm839_vm11 = vcmp.eq.s32.totalorder %v5323_v1, 2  ;;  %v5514_v46 = vrot.slane %v1281_v38, %v5311_v54  ;;  %v5550_v38 = vld [vmem:[%s5289_s22 + $0x58] sm:$0xff] }
  0x88   : > { %3115 = vmatpush2.bf16.msra.mxu0 %v4654_v55  ;;  %v4674_v55 = vld [vmem:[#allocation7 + $0x104] ss:$16 sps:$4 sm:$0xff]  }
  0x89   : > { %3228 = vmatpush2.bf16.msra.mxu1 %v4655_v56  ;;  %3116 = vmatprep.subr.bf16.mxu0 %v4656_v59  ;;  %v5424_v56 = vrot.slane %v545_v39, %v5299_v44  ;;  %v945_v59 = vrot.slane %v5316_v62, %v5309_v53  ;;  %v4680_v39 = vld [vmem:[#allocation7 + $0x4e0] ss:$16 sps:$4 sm:$0xff]  }
  0x8a   : > { %3229 = vmatprep.subr.bf16.mxu1 %v4658_v2  ;;  %v1345_v2 = vsel %vm1145_vm10, %v5421_v49, %v1017_v45  ;;  %vm831_vm10 = vcmp.eq.s32.totalorder %v5321_v0, 2 }
  0x8b   : > { %v5441_v4 = vpack.c.bf16 %v1353_v3, %v1345_v2  ;;  %v686_v5 = vsel %vm410_vm12, %v5424_v56, %v5427_v57  ;;  %v5451_v6 = vrot.slane %v945_v59, %v5309_v53  ;;  %vm1159_vm12 = vcmp.eq.s32.totalorder %v5321_v0, 3 }
  0x8c   : > { %3117 = vmatpush2.bf16.msra.mxu0 %v4660_v8  ;;  %v694_v8 = vsel %vm418_vm14, %v5424_v56, %v5427_v57  ;;  %v297_v0 = vunpack.c.2.s8 %v5319_v63 }
  0x8d   : > { %3230 = vmatpush2.bf16.msra.mxu1 %v4661_v12  ;;  %3118 = vmatprep.subr.bf16.mxu0 %v4662_v13  ;;  %v4678_v12 = vld [vmem:[#allocation7 + $0x100] ss:$16 sps:$4 sm:$0xff]   ;;  %v1273_v13 = vrot.slane %v5316_v62, %v5311_v54  ;;  %v1014_v18 = vsel %vm814_vm13, %v5451_v6, %v686_v5  ;;  %v1022_v19 = vsel %vm822_vm15, %v5451_v6, %v694_v8  ;;  %vm1167_vm13 = vcmp.eq.s32.totalorder %v5323_v1, 3  ;;  %v4691_v8 = vld [vmem:[#allocation7 + $0x6c4] ss:$16 sps:$4 sm:$0xff]  }
  0x8e   : > { %3231 = vmatprep.subr.bf16.mxu1 %v4664_v16  ;;  %v553_v16 = vrot.slane %v5334_v7, %v5299_v44  ;;  %v625_v62 = vrot.slane %v5334_v7, %v5303_v48  ;;  %3237 = vmatprep.mubr.bf16.mxu1 %v5441_v4  ;;  %v4683_v5 = vld [vmem:[#allocation7 + $0x6e0] ss:$16 sps:$4 sm:$0xff]   ;;  %vm429_vm14 = vcmp.eq.s32.totalorder %v297_v0, 1  ;;  %vm1161_vm2 = vcmp.eq.s32.totalorder %v297_v0, 3 }
  0x8f   : > { %v5468_v20 = vrot.slane %v1273_v13, %v5311_v54  ;;  %v294_v13 = vunpack.c.2.s8 %v5369_v23  ;;  %v705_v14 = vsel %vm429_vm14, %v5372_v24, %v5388_v33 }
  0x90   : > { %3119 = vmatpush2.bf16.msra.mxu0 %v4666_v27  ;;  %v5471_v21 = vrot.slane %v553_v16, %v5299_v44  ;;  %v5475_v27 = vrot.slane %v625_v62, %v5303_v48 }
  0x91   : > { %3232 = vmatpush2.bf16.msra.mxu1 %v4667_v30  ;;  %3120 = vmatprep.subr.bf16.mxu0 %v4668_v31  ;;  %v1342_v29 = vsel %vm1142_vm0, %v5468_v20, %v1014_v18  ;;  %v1350_v30 = vsel %vm1150_vm1, %v5468_v20, %v1022_v19  ;;  %vm833_vm0 = vcmp.eq.s32.totalorder %v297_v0, 2  ;;  %v4692_v18 = vld [vmem:[#allocation7 + $0x4a0] ss:$16 sps:$4 sm:$0xff]  }
  0x92   : > { %3233 = vmatprep.subr.bf16.mxu1 %v4670_v36  ;;  %v5484_v31 = vpack.c.bf16 %v1350_v30, %v1342_v29  ;;  %v688_v36 = vsel %vm412_vm3, %v5471_v21, %v5475_v27  ;;  %v696_v37 = vsel %vm420_vm4, %v5471_v21, %v5475_v27  ;;  %v1033_v19 = vsel %vm833_vm0, %v5391_v34, %v705_v14 }
  0x93   : > { %v1016_v7 = vsel %vm816_vm5, %v5494_v35, %v688_v36  ;;  %v1024_v45 = vsel %vm824_vm6, %v5494_v35, %v696_v37  ;;  %v1361_v28 = vsel %vm1161_vm2, %v5421_v49, %v1033_v19  ;;  %v302_v30 = vunpack.c.3.s8 %v5369_v23  ;;  %v5543_v36 = vld [vmem:[%s5289_s22 + $0x48] sm:$0xff] }
  0x94   : > { %3121 = vmatpush2.bf16.msra.mxu0 %v4672_v43  ;;  %v1031_v43 = vsel %vm831_vm10, %v5343_v11, %v703_v41  ;;  %v1344_v2 = vsel %vm1144_vm7, %v5514_v46, %v1016_v7  ;;  %v1352_v3 = vsel %vm1152_vm8, %v5514_v46, %v1024_v45  ;;  %vm426_vm4 = vcmp.eq.s32.totalorder %v294_v13, 1  ;;  %v4695_v7 = vld [vmem:[#allocation7 + $0x6a0] ss:$16 sps:$4 sm:$0xff]  }
  0x95   : > { %3234 = vmatpush2.bf16.msra.mxu1 %v4673_v52  ;;  %3122 = vmatprep.subr.bf16.mxu0 %v4674_v55  ;;  %v1039_v52 = vsel %vm839_vm11, %v5343_v11, %v711_v42  ;;  %v4686_v55 = vld [vmem:[#allocation7 + $0x4c0] ss:$16 sps:$4 sm:$0xff]   ;;  %v1359_v59 = vsel %vm1159_vm12, %v5365_v22, %v1031_v43  ;;  %v5527_v1 = vpack.c.bf16 %v1352_v3, %v1344_v2  ;;  %vm830_vm5 = vcmp.eq.s32.totalorder %v294_v13, 2 }
  0x96   : > { %3235 = vmatprep.subr.bf16.mxu1 %v4676_v61  ;;  %v305_v61 = vunpack.c.3.s8 %v5319_v63  ;;  %v4694_v63 = vld [vmem:[#allocation7 + $0x4a4] ss:$16 sps:$4 sm:$0xff]   ;;  %vm1158_vm6 = vcmp.eq.s32.totalorder %v294_v13, 3  ;;  %vm434_vm7 = vcmp.eq.s32.totalorder %v302_v30, 1  ;;  %vm838_vm8 = vcmp.eq.s32.totalorder %v302_v30, 2 }
  0x97   : > { %vm1166_vm9 = vcmp.eq.s32.totalorder %v302_v30, 3  ;;  %v710_v23 = vsel %vm434_vm7, %v5424_v56, %v5427_v57  ;;  %v296_v42 = vunpack.c.2.s8 %v5432_v60  ;;  %v304_v43 = vunpack.c.3.s8 %v5432_v60  ;;  %v4698_v45 = vld [vmem:[#allocation7 + $0x480] ss:$16 sps:$4 sm:$0xff]   ;;  %v4706_v60 = vld [vmem:[#allocation7 + $0x464] ss:$16 sps:$4 sm:$0xff]  }
  0x98   : > { %3123 = vmatpush2.bf16.msra.mxu0 %v4678_v12  ;;  %v1367_v12 = vsel %vm1167_vm13, %v5365_v22, %v1039_v52  ;;  %vm437_vm15 = vcmp.eq.s32.totalorder %v305_v61, 1  ;;  %vm841_vm1 = vcmp.eq.s32.totalorder %v305_v61, 2  ;;  %vm1169_vm3 = vcmp.eq.s32.totalorder %v305_v61, 3  ;;  %v5589_v30 = vld [vmem:[%s5289_s22 + $0x50] sm:$0xff] }
  0x99   : > { %3236 = vmatpush2.bf16.msra.mxu1 %v4679_v17  ;;  %3318 = vmatprep.subr.bf16.mxu0 %v4682_v25  ;;  %v5529_v16 = vpack.c.bf16 %v1367_v12, %v1359_v59  ;;  %v4689_v17 = vld [vmem:[#allocation7 + $0x6c0] ss:$16 sps:$4 sm:$0xff]   ;;  %v713_v15 = vsel %vm437_vm15, %v5372_v24, %v5388_v33  ;;  %v4697_v25 = vld [vmem:[#allocation7 + $0x6a4] ss:$16 sps:$4 sm:$0xff]   ;;  %v1038_v52 = vsel %vm838_vm8, %v5451_v6, %v710_v23  ;;  %v311_v59 = vunpack.c.0.s8 %v5543_v36 }
  0x9a   : > { %3431 = vmatprep.subr.bf16.mxu1 %v4685_v26  ;;  %v1041_v62 = vsel %vm841_vm1, %v5391_v34, %v713_v15  ;;  %v4700_v26 = vld [vmem:[#allocation7 + $0x484] ss:$16 sps:$4 sm:$0xff]   ;;  %v319_v0 = vunpack.c.1.s8 %v5543_v36  ;;  %v5563_v61 = vunpack.c.0.s8 %v5550_v38  ;;  %v1366_v2 = vsel %vm1166_vm9, %v5468_v20, %v1038_v52  ;;  %v4701_v15 = vld [vmem:[#allocation7 + $0x680] ss:$16 sps:$4 sm:$0xff]  }
  0x9b   : > { %3125 = vmatmul.mubr.bf16.vlgmr.msra.gmra.mxu0 %v5484_v31  ;;  %v1369_v29 = vsel %vm1169_vm3, %v5421_v49, %v1041_v62  ;;  %vm428_vm10 = vcmp.eq.s32.totalorder %v296_v42, 1  ;;  %vm436_vm11 = vcmp.eq.s32.totalorder %v304_v43, 1  ;;  %vm832_vm12 = vcmp.eq.s32.totalorder %v296_v42, 2 }
  0x9c   : > { %3319 = vmatpush1.bf16.msra.mxu0 %v4680_v39  ;;  %3238 = vmatmul.mubr.bf16.vlgmr.msra.gmra.mxu1 %v5527_v1  ;;  %v5545_v37 = vpack.c.bf16 %v1369_v29, %v1361_v28  ;;  %v702_v39 = vsel %vm426_vm4, %v5424_v56, %v5427_v57  ;;  %vm840_vm13 = vcmp.eq.s32.totalorder %v304_v43, 2  ;;  %vm1160_vm14 = vcmp.eq.s32.totalorder %v296_v42, 3  ;;  %v4709_v28 = vld [vmem:[#allocation7 + $0x664] ss:$16 sps:$4 sm:$0xff]   ;;  %v4710_v42 = vld [vmem:[#allocation7 + $0x440] ss:$16 sps:$4 sm:$0xff]  }
  0x9d   : > { %3320 = vmatprep.subr.bf16.mxu0 %v4688_v40  ;;  %3432 = vmatpush1.bf16.msra.mxu1 %v4683_v5  ;;  %v1030_v40 = vsel %vm830_vm5, %v5451_v6, %v702_v39  ;;  %v704_v5 = vsel %vm428_vm10, %v5471_v21, %v5475_v27  ;;  %vm1168_vm15 = vcmp.eq.s32.totalorder %v304_v43, 3  ;;  %vm443_vm0 = vcmp.eq.s32.totalorder %v311_v59, 1 }
  0x9e   : > { %3134 = vmatprep.mubr.bf16.mxu0 %v5529_v16  ;;  %3433 = vmatprep.subr.bf16.mxu1 %v4691_v8  ;;  %v1358_v41 = vsel %vm1158_vm6, %v5468_v20, %v1030_v40  ;;  %v712_v8 = vsel %vm436_vm11, %v5471_v21, %v5475_v27  ;;  %v1032_v12 = vsel %vm832_vm12, %v5494_v35, %v704_v5  ;;  %vm451_vm1 = vcmp.eq.s32.totalorder %v319_v0, 1 }
  0x9f   : > { %3247 = vmatprep.mubr.bf16.mxu1 %v5545_v37  ;;  %v5567_v3 = vpack.c.bf16 %v1366_v2, %v1358_v41  ;;  %v1040_v13 = vsel %vm840_vm13, %v5494_v35, %v712_v8  ;;  %v719_v62 = vsel %vm443_vm0, %v5337_v9, %v5340_v10  ;;  %vm847_vm2 = vcmp.eq.s32.totalorder %v311_v59, 2  ;;  %v4707_v41 = vld [vmem:[#allocation7 + $0x660] ss:$16 sps:$4 sm:$0xff]  }
  0xa0   : > { %3321 = vmatpush1.bf16.msra.mxu0 %v4686_v55  ;;  %v4703_v55 = vld [vmem:[#allocation7 + $0x684] ss:$16 sps:$4 sm:$0xff]   ;;  %v1368_v14 = vsel %vm1168_vm15, %v5514_v46, %v1040_v13  ;;  %vm855_vm3 = vcmp.eq.s32.totalorder %v319_v0, 2  ;;  %v1047_v29 = vsel %vm847_vm2, %v5343_v11, %v719_v62  ;;  %vm1175_vm4 = vcmp.eq.s32.totalorder %v311_v59, 3  ;;  %v4713_v13 = vld [vmem:[#allocation7 + $0x640] ss:$16 sps:$4 sm:$0xff]  }
  0xa1   : > { %3322 = vmatprep.subr.bf16.mxu0 %v4694_v63  ;;  %3434 = vmatpush1.bf16.msra.mxu1 %v4689_v17  ;;  %v4704_v63 = vld [vmem:[#allocation7 + $0x460] ss:$16 sps:$4 sm:$0xff]   ;;  %v1360_v17 = vsel %vm1160_vm14, %v5514_v46, %v1032_v12  ;;  %vm1183_vm5 = vcmp.eq.s32.totalorder %v319_v0, 3  ;;  %v1375_v40 = vsel %vm1175_vm4, %v5365_v22, %v1047_v29  ;;  %v321_v23 = vunpack.c.1.s8 %v5550_v38  ;;  %v4715_v59 = vld [vmem:[#allocation7 + $0x644] ss:$16 sps:$4 sm:$0xff]  }
  0xa2   : > { %3435 = vmatprep.subr.bf16.mxu1 %v4697_v25  ;;  %v5578_v19 = vpack.c.bf16 %v1368_v14, %v1360_v17  ;;  %v727_v25 = vsel %vm451_vm1, %v5337_v9, %v5340_v10  ;;  %vm445_vm6 = vcmp.eq.s32.totalorder %v5563_v61, 1  ;;  %vm849_vm7 = vcmp.eq.s32.totalorder %v5563_v61, 2  ;;  %v4724_v14 = vld [vmem:[#allocation7 + $0x404] ss:$16 sps:$4 sm:$0xff]  }
  0xa3   : > { %3135 = vmatmul.mubr.bf16.gmra.mxu0 %v5567_v3  ;;  %v1055_v39 = vsel %vm855_vm3, %v5343_v11, %v727_v25  ;;  %vm1177_vm8 = vcmp.eq.s32.totalorder %v5563_v61, 3  ;;  %vm453_vm9 = vcmp.eq.s32.totalorder %v321_v23, 1  ;;  %vm857_vm10 = vcmp.eq.s32.totalorder %v321_v23, 2  ;;  %v4721_v62 = vld [vmem:[#allocation7 + $0x624] ss:$16 sps:$4 sm:$0xff]  }
  0xa4   : > { %3323 = vmatpush1.bf16.msra.mxu0 %v4692_v18  ;;  %v4712_v18 = vld [vmem:[#allocation7 + $0x444] ss:$16 sps:$4 sm:$0xff]   ;;  %3248 = vmatmul.mubr.bf16.gmra.mxu1 %v5578_v19  ;;  %v1383_v43 = vsel %vm1183_vm5, %v5365_v22, %v1055_v39  ;;  %v729_v0 = vsel %vm453_vm9, %v5372_v24, %v5388_v33  ;;  %vm1185_vm11 = vcmp.eq.s32.totalorder %v321_v23, 3  ;;  %v312_v8 = vunpack.c.0.s8 %v5589_v30  ;;  %v4719_v23 = vld [vmem:[#allocation7 + $0x620] ss:$16 sps:$4 sm:$0xff]  }
  0xa5   : > { %3324 = vmatprep.subr.bf16.mxu0 %v4700_v26  ;;  %3436 = vmatpush1.bf16.msra.mxu1 %v4695_v7  ;;  %v5585_v26 = vld [vmem:[%s5289_s22 + $0x40] sm:$0xff]  ;;  %v721_v7 = vsel %vm445_vm6, %v5372_v24, %v5388_v33  ;;  %v5601_v52 = vpack.c.bf16 %v1383_v43, %v1375_v40  ;;  %v1057_v61 = vsel %vm857_vm10, %v5391_v34, %v729_v0  ;;  %v320_v12 = vunpack.c.1.s8 %v5589_v30 }
  0xa6   : > { %3437 = vmatprep.subr.bf16.mxu1 %v4703_v55  ;;  %v1049_v55 = vsel %vm849_vm7, %v5391_v34, %v721_v7  ;;  %v318_v5 = vunpack.c.1.s8 %v5585_v26  ;;  %v1385_v17 = vsel %vm1185_vm11, %v5421_v49, %v1057_v61  ;;  %vm444_vm2 = vcmp.eq.s32.totalorder %v312_v8, 1  ;;  %v4722_v43 = vld [vmem:[#allocation7 + $0x400] ss:$16 sps:$4 sm:$0xff]   ;;  %v4730_v0 = vld [vmem:[#allocation7 + $0x5e4] ss:$16 sps:$4 sm:$0xff]  }
  0xa7   : > { %v1377_v2 = vsel %vm1177_vm8, %v5421_v49, %v1049_v55  ;;  %3144 = vmatprep.mubr.bf16.mxu0 %v5601_v52  ;;  %vm452_vm3 = vcmp.eq.s32.totalorder %v320_v12, 1  ;;  %v720_v40 = vsel %vm444_vm2, %v5471_v21, %v5475_v27  ;;  %vm848_vm4 = vcmp.eq.s32.totalorder %v312_v8, 2 }
  0xa8   : > { %3325 = vmatpush1.bf16.msra.mxu0 %v4698_v45  ;;  %v4718_v45 = vld [vmem:[#allocation7 + $0x424] ss:$16 sps:$4 sm:$0xff]   ;;  %vm450_vm15 = vcmp.eq.s32.totalorder %v318_v5, 1  ;;  %vm854_vm0 = vcmp.eq.s32.totalorder %v318_v5, 2  ;;  %vm1182_vm1 = vcmp.eq.s32.totalorder %v318_v5, 3  ;;  %vm856_vm5 = vcmp.eq.s32.totalorder %v320_v12, 2 }
  0xa9   : > { %3326 = vmatprep.subr.bf16.mxu0 %v4706_v60  ;;  %3438 = vmatpush1.bf16.msra.mxu1 %v4701_v15  ;;  %v310_v60 = vunpack.c.0.s8 %v5585_v26  ;;  %v5614_v15 = vpack.c.bf16 %v1385_v17, %v1377_v2  ;;  %v726_v25 = vsel %vm450_vm15, %v5424_v56, %v5427_v57  ;;  %vm1176_vm6 = vcmp.eq.s32.totalorder %v312_v8, 3  ;;  %v4725_v17 = vld [vmem:[#allocation7 + $0x600] ss:$16 sps:$4 sm:$0xff]  }
  0xaa   : > { %3439 = vmatprep.subr.bf16.mxu1 %v4709_v28  ;;  %v1054_v29 = vsel %vm854_vm0, %v5451_v6, %v726_v25  ;;  %vm1184_vm7 = vcmp.eq.s32.totalorder %v320_v12, 3  ;;  %v335_v61 = vunpack.c.3.s8 %v5543_v36  ;;  %v5642_v8 = vunpack.c.2.s8 %v5585_v26 }
  0xab   : > { %vm442_vm12 = vcmp.eq.s32.totalorder %v310_v60, 1  ;;  %vm846_vm13 = vcmp.eq.s32.totalorder %v310_v60, 2  ;;  %vm1174_vm14 = vcmp.eq.s32.totalorder %v310_v60, 3  ;;  %3257 = vmatprep.mubr.bf16.mxu1 %v5614_v15  ;;  %v327_v60 = vunpack.c.2.s8 %v5543_v36  ;;  %v4733_v36 = vld [vmem:[#allocation7 + $0x7e4] ss:$16 sps:$4 sm:$0xff]  }
  0xac   : > { %3327 = vmatpush1.bf16.msra.mxu0 %v4704_v63  ;;  %v4716_v63 = vld [vmem:[#allocation7 + $0x420] ss:$16 sps:$4 sm:$0xff]   ;;  %vm467_vm9 = vcmp.eq.s32.totalorder %v335_v61, 1  ;;  %vm871_vm11 = vcmp.eq.s32.totalorder %v335_v61, 2 }
  0xad   : > { %3328 = vmatprep.subr.bf16.mxu0 %v4712_v18  ;;  %3440 = vmatpush1.bf16.msra.mxu1 %v4707_v41  ;;  %v718_v18 = vsel %vm442_vm12, %v5424_v56, %v5427_v57  ;;  %v1382_v41 = vsel %vm1182_vm1, %v5468_v20, %v1054_v29  ;;  %vm459_vm8 = vcmp.eq.s32.totalorder %v327_v60, 1  ;;  %vm863_vm10 = vcmp.eq.s32.totalorder %v327_v60, 2 }
  0xae   : > { %3441 = vmatprep.subr.bf16.mxu1 %v4715_v59  ;;  %v1046_v28 = vsel %vm846_vm13, %v5451_v6, %v718_v18  ;;  %v4727_v59 = vld [vmem:[#allocation7 + $0x604] ss:$16 sps:$4 sm:$0xff]   ;;  %v735_v18 = vsel %vm459_vm8, %v5337_v9, %v5340_v10  ;;  %vm1191_vm12 = vcmp.eq.s32.totalorder %v327_v60, 3  ;;  %vm1199_vm13 = vcmp.eq.s32.totalorder %v335_v61, 3 }
  0xaf   : > { %v1374_v39 = vsel %vm1174_vm14, %v5468_v20, %v1046_v28  ;;  %v1063_v25 = vsel %vm863_vm10, %v5343_v11, %v735_v18 }
  0xb0   : > { %3329 = vmatpush1.bf16.msra.mxu0 %v4710_v42  ;;  %v728_v42 = vsel %vm452_vm3, %v5471_v21, %v5475_v27  ;;  %v5630_v7 = vpack.c.bf16 %v1382_v41, %v1374_v39  ;;  %v1391_v29 = vsel %vm1191_vm12, %v5365_v22, %v1063_v25  ;;  %v4745_v25 = vld [vmem:[#allocation7 + $0x7a4] ss:$16 sps:$4 sm:$0xff]  }
  0xb1   : > { %3330 = vmatprep.subr.bf16.mxu0 %v4718_v45  ;;  %3442 = vmatpush1.bf16.msra.mxu1 %v4713_v13  ;;  %v1048_v45 = vsel %vm848_vm4, %v5494_v35, %v720_v40  ;;  %v1056_v55 = vsel %vm856_vm5, %v5494_v35, %v728_v42  ;;  %v329_v13 = vunpack.c.2.s8 %v5550_v38  ;;  %vm458_vm4 = vcmp.eq.s32.totalorder %v5642_v8, 1 }
  0xb2   : > { %3443 = vmatprep.subr.bf16.mxu1 %v4721_v62  ;;  %v1376_v2 = vsel %vm1176_vm6, %v5514_v46, %v1048_v45  ;;  %3145 = vmatmul.mubr.bf16.gmra.mxu0 %v5630_v7  ;;  %v1384_v5 = vsel %vm1184_vm7, %v5514_v46, %v1056_v55  ;;  %v743_v62 = vsel %vm467_vm9, %v5337_v9, %v5340_v10  ;;  %vm862_vm5 = vcmp.eq.s32.totalorder %v5642_v8, 2 }
  0xb3   : > { %v5644_v12 = vpack.c.bf16 %v1384_v5, %v1376_v2  ;;  %v1071_v28 = vsel %vm871_vm11, %v5343_v11, %v743_v62  ;;  %vm461_vm14 = vcmp.eq.s32.totalorder %v329_v13, 1  ;;  %vm865_vm0 = vcmp.eq.s32.totalorder %v329_v13, 2  ;;  %v4739_v2 = vld [vmem:[#allocation7 + $0x7c4] ss:$16 sps:$4 sm:$0xff]  }
  0xb4   : > { %3331 = vmatpush1.bf16.msra.mxu0 %v4716_v63  ;;  %v337_v63 = vunpack.c.3.s8 %v5550_v38  ;;  %v4736_v38 = vld [vmem:[#allocation7 + $0x5c4] ss:$16 sps:$4 sm:$0xff]   ;;  %v1399_v39 = vsel %vm1199_vm13, %v5365_v22, %v1071_v28  ;;  %v737_v40 = vsel %vm461_vm14, %v5372_v24, %v5388_v33  ;;  %vm1193_vm2 = vcmp.eq.s32.totalorder %v329_v13, 3 }
  0xb5   : > { %3332 = vmatprep.subr.bf16.mxu0 %v4724_v14  ;;  %v4728_v14 = vld [vmem:[#allocation7 + $0x5e0] ss:$16 sps:$4 sm:$0xff]   ;;  %3444 = vmatpush1.bf16.msra.mxu1 %v4719_v23  ;;  %v5657_v41 = vpack.c.bf16 %v1399_v39, %v1391_v29  ;;  %v1065_v45 = vsel %vm865_vm0, %v5391_v34, %v737_v40  ;;  %v334_v5 = vunpack.c.3.s8 %v5585_v26  ;;  %vm1190_vm6 = vcmp.eq.s32.totalorder %v5642_v8, 3  ;;  %v4748_v28 = vld [vmem:[#allocation7 + $0x584] ss:$16 sps:$4 sm:$0xff]  }
  0xb6   : > { %3445 = vmatprep.subr.bf16.mxu1 %v4727_v59  ;;  %3258 = vmatmul.mubr.bf16.gmra.mxu1 %v5644_v12  ;;  %vm469_vm15 = vcmp.eq.s32.totalorder %v337_v63, 1  ;;  %v4731_v23 = vld [vmem:[#allocation7 + $0x7e0] ss:$16 sps:$4 sm:$0xff]   ;;  %vm873_vm1 = vcmp.eq.s32.totalorder %v337_v63, 2  ;;  %vm1201_vm3 = vcmp.eq.s32.totalorder %v337_v63, 3  ;;  %v5664_v59 = vld [vmem:[%s5289_s22 + $0x88] sm:$0xff]  ;;  %v1393_v60 = vsel %vm1193_vm2, %v5421_v49, %v1065_v45 }
  0xb7   : > { %v745_v42 = vsel %vm469_vm15, %v5372_v24, %v5388_v33  ;;  %3154 = vmatprep.mubr.bf16.mxu0 %v5657_v41  ;;  %v734_v63 = vsel %vm458_vm4, %v5424_v56, %v5427_v57  ;;  %vm466_vm7 = vcmp.eq.s32.totalorder %v334_v5, 1  ;;  %vm870_vm8 = vcmp.eq.s32.totalorder %v334_v5, 2  ;;  %v4740_v26 = vld [vmem:[#allocation7 + $0x5a0] ss:$16 sps:$4 sm:$0xff]  }
  0xb8   : > { %3333 = vmatpush1.bf16.msra.mxu0 %v4722_v43  ;;  %v4734_v43 = vld [vmem:[#allocation7 + $0x5c0] ss:$16 sps:$4 sm:$0xff]   ;;  %v1073_v55 = vsel %vm873_vm1, %v5391_v34, %v745_v42  ;;  %vm1198_vm9 = vcmp.eq.s32.totalorder %v334_v5, 3  ;;  %v742_v18 = vsel %vm466_vm7, %v5424_v56, %v5427_v57  ;;  %v336_v8 = vunpack.c.3.s8 %v5589_v30  ;;  %v4751_v5 = vld [vmem:[#allocation7 + $0x784] ss:$16 sps:$4 sm:$0xff]  }
  0xb9   : > { %3334 = vmatprep.subr.bf16.mxu0 %v4730_v0  ;;  %3446 = vmatpush1.bf16.msra.mxu1 %v4725_v17  ;;  %v5667_v0 = vld [vmem:[%s5289_s22 + $0x98] sm:$0xff]  ;;  %v1401_v61 = vsel %vm1201_vm3, %v5421_v49, %v1073_v55  ;;  %v4742_v17 = vld [vmem:[#allocation7 + $0x5a4] ss:$16 sps:$4 sm:$0xff]   ;;  %v1070_v29 = vsel %vm870_vm8, %v5451_v6, %v742_v18  ;;  %v343_v39 = vunpack.c.0.s8 %v5664_v59  ;;  %v351_v40 = vunpack.c.1.s8 %v5664_v59  ;;  %v4743_v55 = vld [vmem:[#allocation7 + $0x7a0] ss:$16 sps:$4 sm:$0xff]  }
  0xba   : > { %3447 = vmatprep.subr.bf16.mxu1 %v4733_v36  ;;  %v5674_v13 = vpack.c.bf16 %v1401_v61, %v1393_v60  ;;  %v1062_v36 = vsel %vm862_vm5, %v5451_v6, %v734_v63  ;;  %v1398_v42 = vsel %vm1198_vm9, %v5468_v20, %v1070_v29  ;;  %vm468_vm11 = vcmp.eq.s32.totalorder %v336_v8, 1 }
  0xbb   : > { %v1390_v62 = vsel %vm1190_vm6, %v5468_v20, %v1062_v36  ;;  %v744_v45 = vsel %vm468_vm11, %v5471_v21, %v5475_v27  ;;  %vm872_vm13 = vcmp.eq.s32.totalorder %v336_v8, 2  ;;  %vm1200_vm15 = vcmp.eq.s32.totalorder %v336_v8, 3 }
  0xbc   : > { %3335 = vmatpush2.bf16.msra.mxu0 %v4728_v14  ;;  %v4737_v14 = vld [vmem:[#allocation7 + $0x7c0] ss:$16 sps:$4 sm:$0xff]   ;;  %3267 = vmatprep.mubr.bf16.mxu1 %v5674_v13  ;;  %v1072_v61 = vsel %vm872_vm13, %v5494_v35, %v744_v45  ;;  %vm475_vm0 = vcmp.eq.s32.totalorder %v343_v39, 1  ;;  %vm483_vm1 = vcmp.eq.s32.totalorder %v351_v40, 1  ;;  %vm879_vm2 = vcmp.eq.s32.totalorder %v343_v39, 2 }
  0xbd   : > { %3336 = vmatprep.subr.bf16.mxu0 %v4736_v38  ;;  %3448 = vmatpush2.bf16.msra.mxu1 %v4731_v23  ;;  %v328_v38 = vunpack.c.2.s8 %v5589_v30  ;;  %v345_v23 = vunpack.c.0.s8 %v5667_v0  ;;  %v1400_v63 = vsel %vm1200_vm15, %v5514_v46, %v1072_v61  ;;  %v759_v18 = vsel %vm483_vm1, %v5337_v9, %v5340_v10  ;;  %v4757_v45 = vld [vmem:[#allocation7 + $0x764] ss:$16 sps:$4 sm:$0xff]  }
  0xbe   : > { %3449 = vmatprep.subr.bf16.mxu1 %v4739_v2  ;;  %v4746_v2 = vld [vmem:[#allocation7 + $0x580] ss:$16 sps:$4 sm:$0xff]   ;;  %vm887_vm3 = vcmp.eq.s32.totalorder %v351_v40, 2  ;;  %vm1207_vm4 = vcmp.eq.s32.totalorder %v343_v39, 3  ;;  %vm1215_vm5 = vcmp.eq.s32.totalorder %v351_v40, 3 }
  0xbf   : > { %vm460_vm10 = vcmp.eq.s32.totalorder %v328_v38, 1  ;;  %vm864_vm12 = vcmp.eq.s32.totalorder %v328_v38, 2  ;;  %vm1192_vm14 = vcmp.eq.s32.totalorder %v328_v38, 3  ;;  %v4749_v38 = vld [vmem:[#allocation7 + $0x780] ss:$16 sps:$4 sm:$0xff]   ;;  %vm477_vm6 = vcmp.eq.s32.totalorder %v345_v23, 1 }
  0xc0   : > { %3337 = vmatpush2.bf16.msra.mxu0 %v4734_v43  ;;  %v5693_v43 = vpack.c.bf16 %v1398_v42, %v1390_v62  ;;  %v736_v30 = vsel %vm460_vm10, %v5471_v21, %v5475_v27  ;;  %v5711_v62 = vld [vmem:[%s5289_s22 + $0x80] sm:$0xff]  ;;  %v353_v42 = vunpack.c.1.s8 %v5667_v0  ;;  %v753_v39 = vsel %vm477_vm6, %v5372_v24, %v5388_v33 }
  0xc1   : > { %3338 = vmatprep.subr.bf16.mxu0 %v4742_v17  ;;  %3450 = vmatpush2.bf16.msra.mxu1 %v4737_v14  ;;  %v1064_v60 = vsel %vm864_vm12, %v5494_v35, %v736_v30  ;;  %v4754_v14 = vld [vmem:[#allocation7 + $0x564] ss:$16 sps:$4 sm:$0xff]   ;;  %vm881_vm7 = vcmp.eq.s32.totalorder %v345_v23, 2  ;;  %vm1209_vm8 = vcmp.eq.s32.totalorder %v345_v23, 3  ;;  %v4758_v23 = vld [vmem:[#allocation7 + $0x540] ss:$16 sps:$4 sm:$0xff]  }
  0xc2   : > { %3451 = vmatprep.subr.bf16.mxu1 %v4745_v25  ;;  %3155 = vmatmul.mubr.bf16.gmra.mxu0 %v5693_v43  ;;  %v1392_v17 = vsel %vm1192_vm14, %v5514_v46, %v1064_v60  ;;  %v4752_v25 = vld [vmem:[#allocation7 + $0x560] ss:$16 sps:$4 sm:$0xff]   ;;  %v4760_v40 = vld [vmem:[#allocation7 + $0x544] ss:$16 sps:$4 sm:$0xff]   ;;  %vm485_vm9 = vcmp.eq.s32.totalorder %v353_v42, 1  ;;  %vm889_vm10 = vcmp.eq.s32.totalorder %v353_v42, 2 }
  0xc3   : > { %v5704_v36 = vpack.c.bf16 %v1400_v63, %v1392_v17  ;;  %v5719_v30 = vld [vmem:[%s5289_s22 + $0x90] sm:$0xff]  ;;  %v761_v61 = vsel %vm485_vm9, %v5372_v24, %v5388_v33  ;;  %vm1217_vm11 = vcmp.eq.s32.totalorder %v353_v42, 3  ;;  %v342_v17 = vunpack.c.0.s8 %v5711_v62 }
  0xc4   : > { %3339 = vmatpush2.bf16.msra.mxu0 %v4740_v26  ;;  %v751_v26 = vsel %vm475_vm0, %v5337_v9, %v5340_v10  ;;  %v4755_v63 = vld [vmem:[#allocation7 + $0x760] ss:$16 sps:$4 sm:$0xff]  }
  0xc5   : > { %3340 = vmatprep.subr.bf16.mxu0 %v4748_v28  ;;  %7159 = vst [vmem:[#allocation14_spill] sm:$0xff] %v5704_v36  ;;  %v1079_v8 = vsel %vm879_vm2, %v5343_v11, %v751_v26  ;;  %3452 = vmatpush2.bf16.msra.mxu1 %v4743_v55  ;;  %v1087_v28 = vsel %vm887_vm3, %v5343_v11, %v759_v18  ;;  %v350_v26 = vunpack.c.1.s8 %v5711_v62  ;;  %v344_v18 = vunpack.c.0.s8 %v5719_v30 }
  0xc6   : > { %3268 = vmatmul.mubr.bf16.gmra.mxu1 %v5704_v36  ;;  %v1407_v29 = vsel %vm1207_vm4, %v5365_v22, %v1079_v8  ;;  %3453 = vmatprep.subr.bf16.mxu1 %v4751_v5  ;;  %v1415_v60 = vsel %vm1215_vm5, %v5365_v22, %v1087_v28  ;;  %v352_v8 = vunpack.c.1.s8 %v5719_v30  ;;  %v4763_v28 = vld [vmem:[#allocation7 + $0x744] ss:$16 sps:$4 sm:$0xff]   ;;  %vm474_vm12 = vcmp.eq.s32.totalorder %v342_v17, 1 }
  0xc7   : > { %v5724_v55 = vpack.c.bf16 %v1415_v60, %v1407_v29  ;;  %v4766_v29 = vld [vmem:[#allocation7 + $0x524] ss:$16 sps:$4 sm:$0xff]   ;;  %vm878_vm13 = vcmp.eq.s32.totalorder %v342_v17, 2  ;;  %vm1206_vm14 = vcmp.eq.s32.totalorder %v342_v17, 3  ;;  %vm482_vm15 = vcmp.eq.s32.totalorder %v350_v26, 1 }
  0xc8   : > { %3341 = vmatpush2.bf16.msra.mxu0 %v4746_v2  ;;  %v1081_v2 = vsel %vm881_vm7, %v5391_v34, %v753_v39  ;;  %vm886_vm0 = vcmp.eq.s32.totalorder %v350_v26, 2  ;;  %v4761_v60 = vld [vmem:[#allocation7 + $0x740] ss:$16 sps:$4 sm:$0xff]   ;;  %v758_v39 = vsel %vm482_vm15, %v5424_v56, %v5427_v57  ;;  %vm1214_vm1 = vcmp.eq.s32.totalorder %v350_v26, 3  ;;  %v4772_v26 = vld [vmem:[#allocation7 + $0x504] ss:$16 sps:$4 sm:$0xff]  }
  0xc9   : > { %3342 = vmatprep.subr.bf16.mxu0 %v4754_v14  ;;  %v1409_v5 = vsel %vm1209_vm8, %v5421_v49, %v1081_v2  ;;  %3454 = vmatpush2.bf16.msra.mxu1 %v4749_v38  ;;  %v1089_v14 = vsel %vm889_vm10, %v5391_v34, %v761_v61  ;;  %vm476_vm2 = vcmp.eq.s32.totalorder %v344_v18, 1  ;;  %v4764_v2 = vld [vmem:[#allocation7 + $0x520] ss:$16 sps:$4 sm:$0xff]   ;;  %vm484_vm3 = vcmp.eq.s32.totalorder %v352_v8, 1 }
  0xca   : > { %3164 = vmatprep.mubr.bf16.mxu0 %v5724_v55  ;;  %3455 = vmatprep.subr.bf16.mxu1 %v4757_v45  ;;  %v1417_v42 = vsel %vm1217_vm11, %v5421_v49, %v1089_v14  ;;  %v4769_v14 = vld [vmem:[#allocation7 + $0x724] ss:$16 sps:$4 sm:$0xff]   ;;  %vm880_vm4 = vcmp.eq.s32.totalorder %v344_v18, 2  ;;  %vm888_vm5 = vcmp.eq.s32.totalorder %v352_v8, 2  ;;  %vm1208_vm6 = vcmp.eq.s32.totalorder %v344_v18, 3 }
  0xcb   : > { %v5737_v38 = vpack.c.bf16 %v1417_v42, %v1409_v5  ;;  %v752_v5 = vsel %vm476_vm2, %v5471_v21, %v5475_v27  ;;  %vm1216_vm7 = vcmp.eq.s32.totalorder %v352_v8, 3  ;;  %v367_v36 = vunpack.c.3.s8 %v5664_v59 }
  0xcc   : > { %3343 = vmatpush2.bf16.msra.mxu0 %v4752_v25  ;;  %v750_v25 = vsel %vm474_vm12, %v5424_v56, %v5427_v57  ;;  %v1080_v17 = vsel %vm880_vm4, %v5494_v35, %v752_v5  ;;  %v369_v5 = vunpack.c.3.s8 %v5667_v0  ;;  %v358_v18 = vunpack.c.2.s8 %v5711_v62 }
  0xcd   : > { %3344 = vmatprep.subr.bf16.mxu0 %v4760_v40  ;;  %7160 = vst [vmem:[#allocation15_spill] sm:$0xff] %v5737_v38  ;;  %v1078_v45 = vsel %vm878_vm13, %v5451_v6, %v750_v25  ;;  %3456 = vmatpush2.bf16.msra.mxu1 %v4755_v63  ;;  %v1086_v40 = vsel %vm886_vm0, %v5451_v6, %v758_v39  ;;  %vm499_vm9 = vcmp.eq.s32.totalorder %v367_v36, 1  ;;  %vm903_vm11 = vcmp.eq.s32.totalorder %v367_v36, 2 }
  0xce   : > { %3277 = vmatprep.mubr.bf16.mxu1 %v5737_v38  ;;  %v1406_v61 = vsel %vm1206_vm14, %v5468_v20, %v1078_v45  ;;  %3457 = vmatprep.subr.bf16.mxu1 %v4763_v28  ;;  %v1414_v42 = vsel %vm1214_vm1, %v5468_v20, %v1086_v40  ;;  %v760_v63 = vsel %vm484_vm3, %v5471_v21, %v5475_v27  ;;  %v4767_v45 = vld [vmem:[#allocation7 + $0x720] ss:$16 sps:$4 sm:$0xff]   ;;  %v4778_v28 = vld [vmem:[#allocation7 + $0xec] ss:$16 sps:$4 sm:$0xff]   ;;  %v359_v38 = vunpack.c.2.s8 %v5664_v59  ;;  %v4775_v59 = vld [vmem:[#allocation7 + $0x704] ss:$16 sps:$4 sm:$0xff]  }
  0xcf   : > { %v5753_v25 = vpack.c.bf16 %v1414_v42, %v1406_v61  ;;  %v1088_v39 = vsel %vm888_vm5, %v5494_v35, %v760_v63  ;;  %v1408_v40 = vsel %vm1208_vm6, %v5514_v46, %v1080_v17  ;;  %v361_v61 = vunpack.c.2.s8 %v5667_v0 }
  0xd0   : > { %3345 = vmatpush2.bf16.msra.mxu0 %v4758_v23  ;;  %v4770_v23 = vld [vmem:[#allocation7 + $0x500] ss:$16 sps:$4 sm:$0xff]   ;;  %vm491_vm8 = vcmp.eq.s32.totalorder %v359_v38, 1  ;;  %vm895_vm10 = vcmp.eq.s32.totalorder %v359_v38, 2  ;;  %vm1223_vm12 = vcmp.eq.s32.totalorder %v359_v38, 3  ;;  %vm1231_vm13 = vcmp.eq.s32.totalorder %v367_v36, 3 }
  0xd1   : > { %3346 = vmatprep.subr.bf16.mxu0 %v4766_v29  ;;  %3458 = vmatpush2.bf16.msra.mxu1 %v4761_v60  ;;  %v1416_v29 = vsel %vm1216_vm7, %v5514_v46, %v1088_v39  ;;  %v767_v60 = vsel %vm491_vm8, %v5337_v9, %v5340_v10  ;;  %vm493_vm14 = vcmp.eq.s32.totalorder %v361_v61, 1  ;;  %vm501_vm15 = vcmp.eq.s32.totalorder %v369_v5, 1  ;;  %v4773_v38 = vld [vmem:[#allocation7 + $0x700] ss:$16 sps:$4 sm:$0xff]  }
  0xd2   : > { %3165 = vmatmul.mubr.bf16.gmra.mxu0 %v5753_v25  ;;  %3459 = vmatprep.subr.bf16.mxu1 %v4769_v14  ;;  %v5765_v8 = vpack.c.bf16 %v1416_v29, %v1408_v40  ;;  %v1095_v0 = vsel %vm895_vm10, %v5343_v11, %v767_v60  ;;  %v777_v36 = vsel %vm501_vm15, %v5372_v24, %v5388_v33  ;;  %vm897_vm0 = vcmp.eq.s32.totalorder %v361_v61, 2  ;;  %v5785_v29 = vld [vmem:[%s5289_s22 + $0xc8] sm:$0xff] }
  0xd3   : > { %v1423_v42 = vsel %vm1223_vm12, %v5365_v22, %v1095_v0  ;;  %vm905_vm1 = vcmp.eq.s32.totalorder %v369_v5, 2  ;;  %vm1225_vm2 = vcmp.eq.s32.totalorder %v361_v61, 3  ;;  %vm1233_vm3 = vcmp.eq.s32.totalorder %v369_v5, 3 }
  0xd4   : > { %3347 = vmatpush2.bf16.msra.mxu0 %v4764_v2  ;;  %v775_v2 = vsel %vm499_vm9, %v5337_v9, %v5340_v10  ;;  %3278 = vmatmul.mubr.bf16.gmra.mxu1 %v5765_v8  ;;  %v1105_v40 = vsel %vm905_vm1, %v5391_v34, %v777_v36  ;;  %vm490_vm4 = vcmp.eq.s32.totalorder %v358_v18, 1  ;;  %vm894_vm5 = vcmp.eq.s32.totalorder %v358_v18, 2 }
  0xd5   : > { %3348 = vmatprep.subr.bf16.mxu0 %v4772_v26  ;;  %v1103_v14 = vsel %vm903_vm11, %v5343_v11, %v775_v2  ;;  %v769_v26 = vsel %vm493_vm14, %v5372_v24, %v5388_v33  ;;  %3460 = vmatpush2.bf16.msra.mxu1 %v4767_v45  ;;  %v5788_v45 = vld [vmem:[%s5289_s22 + $0xd8] sm:$0xff]  ;;  %v1433_v60 = vsel %vm1233_vm3, %v5421_v49, %v1105_v40  ;;  %v366_v2 = vunpack.c.3.s8 %v5711_v62 }
  0xd6   : > { %v1431_v63 = vsel %vm1231_vm13, %v5365_v22, %v1103_v14  ;;  %3461 = vmatprep.subr.bf16.mxu1 %v4775_v59  ;;  %v1097_v39 = vsel %vm897_vm0, %v5391_v34, %v769_v26  ;;  %v766_v0 = vsel %vm490_vm4, %v5424_v56, %v5427_v57  ;;  %vm1222_vm6 = vcmp.eq.s32.totalorder %v358_v18, 3 }
  0xd7   : > { %v5778_v17 = vpack.c.bf16 %v1431_v63, %v1423_v42  ;;  %vm498_vm7 = vcmp.eq.s32.totalorder %v366_v2, 1  ;;  %vm902_vm8 = vcmp.eq.s32.totalorder %v366_v2, 2  ;;  %v1094_v61 = vsel %vm894_vm5, %v5451_v6, %v766_v0 }
  0xd8   : > { %3349 = vmatpush2.bf16.msra.mxu0 %v4770_v23  ;;  %v4781_v23 = vld [vmem:[#allocation7 + $0x2ec] ss:$16 sps:$4 sm:$0xff]   ;;  %vm1230_vm9 = vcmp.eq.s32.totalorder %v366_v2, 3  ;;  %v774_v62 = vsel %vm498_vm7, %v5424_v56, %v5427_v57  ;;  %v1422_v5 = vsel %vm1222_vm6, %v5468_v20, %v1094_v61  ;;  %v360_v14 = vunpack.c.2.s8 %v5719_v30 }
  0xd9   : > { %3544 = vmatprep.subr.bf16.mxu0 %v4778_v28  ;;  %3174 = vmatprep.mubr.bf16.mxu0 %v5778_v17  ;;  %v1425_v28 = vsel %vm1225_vm2, %v5421_v49, %v1097_v39  ;;  %v368_v42 = vunpack.c.3.s8 %v5719_v30  ;;  %v1102_v18 = vsel %vm902_vm8, %v5451_v6, %v774_v62  ;;  %v375_v63 = vunpack.c.0.s8 %v5785_v29 }
  0xda   : > { %v5794_v59 = vpack.c.bf16 %v1433_v60, %v1425_v28  ;;  %3462 = vmatpush2.bf16.msra.mxu1 %v4773_v38  ;;  %v383_v26 = vunpack.c.1.s8 %v5785_v29  ;;  %v377_v38 = vunpack.c.0.s8 %v5788_v45  ;;  %v1430_v36 = vsel %vm1230_vm9, %v5468_v20, %v1102_v18 }
  0xdb   : > { %3657 = vmatprep.subr.bf16.mxu1 %v4781_v23  ;;  %vm492_vm10 = vcmp.eq.s32.totalorder %v360_v14, 1  ;;  %vm500_vm11 = vcmp.eq.s32.totalorder %v368_v42, 1  ;;  %vm896_vm12 = vcmp.eq.s32.totalorder %v360_v14, 2  ;;  %v5810_v23 = vpack.c.bf16 %v1430_v36, %v1422_v5  ;;  %v5833_v36 = vld [vmem:[%s5289_s22 + $0xc0] sm:$0xff] }
  0xdc   : > { %3287 = vmatprep.mubr.bf16.mxu1 %v5794_v59  ;;  %v768_v39 = vsel %vm492_vm10, %v5471_v21, %v5475_v27  ;;  %v776_v30 = vsel %vm500_vm11, %v5471_v21, %v5475_v27  ;;  %vm904_vm13 = vcmp.eq.s32.totalorder %v368_v42, 2  ;;  %vm1224_vm14 = vcmp.eq.s32.totalorder %v360_v14, 3 }
  0xdd   : > { %v1096_v40 = vsel %vm896_vm12, %v5494_v35, %v768_v39  ;;  %v1104_v28 = vsel %vm904_vm13, %v5494_v35, %v776_v30  ;;  %vm1232_vm15 = vcmp.eq.s32.totalorder %v368_v42, 3  ;;  %3175 = vmatmul.mubr.bf16.gmra.mxu0 %v5810_v23  ;;  %vm507_vm0 = vcmp.eq.s32.totalorder %v375_v63, 1 }
  0xde   : > { %v1424_v60 = vsel %vm1224_vm14, %v5514_v46, %v1096_v40  ;;  %v1432_v2 = vsel %vm1232_vm15, %v5514_v46, %v1104_v28  ;;  %vm515_vm1 = vcmp.eq.s32.totalorder %v383_v26, 1  ;;  %v783_v61 = vsel %vm507_vm0, %v5337_v9, %v5340_v10 }
  0xdf   : > { %v5821_v0 = vpack.c.bf16 %v1432_v2, %v1424_v60  ;;  %v791_v62 = vsel %vm515_vm1, %v5337_v9, %v5340_v10  ;;  %vm911_vm2 = vcmp.eq.s32.totalorder %v375_v63, 2  ;;  %vm919_vm3 = vcmp.eq.s32.totalorder %v383_v26, 2 }
  0xe0   : > { %v1111_v5 = vsel %vm911_vm2, %v5343_v11, %v783_v61  ;;  %vm1239_vm4 = vcmp.eq.s32.totalorder %v375_v63, 3  ;;  %vm1247_vm5 = vcmp.eq.s32.totalorder %v383_v26, 3  ;;  %v1119_v14 = vsel %vm919_vm3, %v5343_v11, %v791_v62  ;;  %v5839_v63 = vld [vmem:[%s5289_s22 + $0xd0] sm:$0xff] }
  0xe1   : > { %7161 = vst [vmem:[#allocation16_spill] sm:$0xff] %v5821_v0  ;;  %3288 = vmatmul.mubr.bf16.gmra.mxu1 %v5821_v0  ;;  %v1439_v42 = vsel %vm1239_vm4, %v5365_v22, %v1111_v5  ;;  %v385_v18 = vunpack.c.1.s8 %v5788_v45  ;;  %vm509_vm6 = vcmp.eq.s32.totalorder %v377_v38, 1  ;;  %v1447_v39 = vsel %vm1247_vm5, %v5365_v22, %v1119_v14 }
  0xe2   : > { %v785_v30 = vsel %vm509_vm6, %v5372_v24, %v5388_v33  ;;  %vm913_vm7 = vcmp.eq.s32.totalorder %v377_v38, 2  ;;  %vm1241_vm8 = vcmp.eq.s32.totalorder %v377_v38, 3  ;;  %v5841_v26 = vpack.c.bf16 %v1447_v39, %v1439_v42 }
  0xe3   : > { %vm517_vm9 = vcmp.eq.s32.totalorder %v385_v18, 1  ;;  %vm921_vm10 = vcmp.eq.s32.totalorder %v385_v18, 2  ;;  %v1113_v40 = vsel %vm913_vm7, %v5391_v34, %v785_v30  ;;  %vm1249_vm11 = vcmp.eq.s32.totalorder %v385_v18, 3 }
  0xe4   : > { %v793_v28 = vsel %vm517_vm9, %v5372_v24, %v5388_v33  ;;  %v1441_v60 = vsel %vm1241_vm8, %v5421_v49, %v1113_v40  ;;  %v374_v2 = vunpack.c.0.s8 %v5833_v36  ;;  %3184 = vmatprep.mubr.bf16.mxu0 %v5841_v26  ;;  %v382_v61 = vunpack.c.1.s8 %v5833_v36 }
  0xe5   : > { %v1121_v38 = vsel %vm921_vm10, %v5391_v34, %v793_v28  ;;  %v376_v62 = vunpack.c.0.s8 %v5839_v63  ;;  %v384_v5 = vunpack.c.1.s8 %v5839_v63  ;;  %v393_v0 = vunpack.c.2.s8 %v5788_v45 }
  0xe6   : > { %v1449_v14 = vsel %vm1249_vm11, %v5421_v49, %v1121_v38  ;;  %vm506_vm12 = vcmp.eq.s32.totalorder %v374_v2, 1  ;;  %vm910_vm13 = vcmp.eq.s32.totalorder %v374_v2, 2  ;;  %vm1238_vm14 = vcmp.eq.s32.totalorder %v374_v2, 3 }
  0xe7   : > { %v5854_v42 = vpack.c.bf16 %v1449_v14, %v1441_v60  ;;  %vm514_vm15 = vcmp.eq.s32.totalorder %v382_v61, 1  ;;  %v782_v18 = vsel %vm506_vm12, %v5424_v56, %v5427_v57  ;;  %vm918_vm0 = vcmp.eq.s32.totalorder %v382_v61, 2 }
  0xe8   : > { %v790_v39 = vsel %vm514_vm15, %v5424_v56, %v5427_v57  ;;  %v1110_v30 = vsel %vm910_vm13, %v5451_v6, %v782_v18  ;;  %vm1246_vm1 = vcmp.eq.s32.totalorder %v382_v61, 3  ;;  %vm508_vm2 = vcmp.eq.s32.totalorder %v376_v62, 1 }
  0xe9   : > { %7162 = vst [vmem:[#allocation17_spill] sm:$0xff] %v5854_v42  ;;  %3297 = vmatprep.mubr.bf16.mxu1 %v5854_v42  ;;  %v1118_v40 = vsel %vm918_vm0, %v5451_v6, %v790_v39  ;;  %v1438_v28 = vsel %vm1238_vm14, %v5468_v20, %v1110_v30  ;;  %vm516_vm3 = vcmp.eq.s32.totalorder %v384_v5, 1  ;;  %v784_v60 = vsel %vm508_vm2, %v5471_v21, %v5475_v27 }
  0xea   : > { %v1446_v2 = vsel %vm1246_vm1, %v5468_v20, %v1118_v40  ;;  %v792_v38 = vsel %vm516_vm3, %v5471_v21, %v5475_v27  ;;  %vm912_vm4 = vcmp.eq.s32.totalorder %v376_v62, 2  ;;  %vm920_vm5 = vcmp.eq.s32.totalorder %v384_v5, 2 }
  0xeb   : > { %v5869_v14 = vpack.c.bf16 %v1446_v2, %v1438_v28  ;;  %v1112_v61 = vsel %vm912_vm4, %v5494_v35, %v784_v60  ;;  %v1120_v18 = vsel %vm920_vm5, %v5494_v35, %v792_v38  ;;  %vm1240_vm6 = vcmp.eq.s32.totalorder %v376_v62, 3 }
  0xec   : > { %vm1248_vm7 = vcmp.eq.s32.totalorder %v384_v5, 3  ;;  %v1440_v39 = vsel %vm1240_vm6, %v5514_v46, %v1112_v61  ;;  %v391_v30 = vunpack.c.2.s8 %v5785_v29  ;;  %v399_v42 = vunpack.c.3.s8 %v5785_v29 }
  0xed   : > { %3185 = vmatmul.mubr.bf16.gmra.mxu0 %v5869_v14  ;;  %v1448_v40 = vsel %vm1248_vm7, %v5514_v46, %v1120_v18  ;;  %v401_v28 = vunpack.c.3.s8 %v5788_v45  ;;  %v390_v60 = vunpack.c.2.s8 %v5833_v36  ;;  %vm525_vm14 = vcmp.eq.s32.totalorder %v393_v0, 1 }
  0xee   : > { %v5881_v2 = vpack.c.bf16 %v1448_v40, %v1440_v39  ;;  %vm523_vm8 = vcmp.eq.s32.totalorder %v391_v30, 1  ;;  %vm531_vm9 = vcmp.eq.s32.totalorder %v399_v42, 1  ;;  %vm927_vm10 = vcmp.eq.s32.totalorder %v391_v30, 2 }
  0xef   : > { %v799_v62 = vsel %vm523_vm8, %v5337_v9, %v5340_v10  ;;  %v807_v29 = vsel %vm531_vm9, %v5337_v9, %v5340_v10  ;;  %vm935_vm11 = vcmp.eq.s32.totalorder %v399_v42, 2  ;;  %vm1255_vm12 = vcmp.eq.s32.totalorder %v391_v30, 3 }
  0xf0   : > { %7163 = vst [vmem:[#allocation18_spill] sm:$0xff] %v5881_v2  ;;  %3298 = vmatmul.mubr.bf16.gmra.mxu1 %v5881_v2  ;;  %v1127_v5 = vsel %vm927_vm10, %v5343_v11, %v799_v62  ;;  %v1135_v45 = vsel %vm935_vm11, %v5343_v11, %v807_v29  ;;  %vm1263_vm13 = vcmp.eq.s32.totalorder %v399_v42, 3  ;;  %vm533_vm15 = vcmp.eq.s32.totalorder %v401_v28, 1  ;;  %v5901_v42 = vld [vmem:[%s5289_s22 + $0x28] sm:$0xff] }
  0xf1   : > { %v1455_v38 = vsel %vm1255_vm12, %v5365_v22, %v1127_v5  ;;  %v1463_v61 = vsel %vm1263_vm13, %v5365_v22, %v1135_v45  ;;  %v801_v18 = vsel %vm525_vm14, %v5372_v24, %v5388_v33  ;;  %v809_v10 = vsel %vm533_vm15, %v5372_v24, %v5388_v33  ;;  %v5903_v22 = vld [vmem:[#allocation5 + $0x10] sm:$0xff]  ;;  %v4805_v2 = vld [vmem:[#allocation7 + $0x26c] ss:$16 sps:$4 sm:$0xff]  }
  0xf2   : > { %v5894_v9 = vpack.c.bf16 %v1463_v61, %v1455_v38  ;;  %vm929_vm0 = vcmp.eq.s32.totalorder %v393_v0, 2  ;;  %vm937_vm1 = vcmp.eq.s32.totalorder %v401_v28, 2  ;;  %vm1257_vm2 = vcmp.eq.s32.totalorder %v393_v0, 3 }
  0xf3   : > { %v1129_v39 = vsel %vm929_vm0, %v5391_v34, %v801_v18  ;;  %v1137_v11 = vsel %vm937_vm1, %v5391_v34, %v809_v10  ;;  %vm1265_vm3 = vcmp.eq.s32.totalorder %v401_v28, 3  ;;  %v398_v24 = vunpack.c.3.s8 %v5833_v36  ;;  %v5938_v10 = vld [vmem:[%s5289_s22 + $0x38] sm:$0xff] }
  0xf4   : > { %7164 = vst [vmem:[#allocation19_spill] sm:$0xff] %v5894_v9  ;;  %3194 = vmatprep.mubr.bf16.mxu0 %v5894_v9  ;;  %v1457_v30 = vsel %vm1257_vm2, %v5421_v49, %v1129_v39  ;;  %v1465_v40 = vsel %vm1265_vm3, %v5421_v49, %v1137_v11  ;;  %vm522_vm4 = vcmp.eq.s32.totalorder %v390_v60, 1  ;;  %vm926_vm5 = vcmp.eq.s32.totalorder %v390_v60, 2 }
  0xf5   : > { %v5909_v33 = vpack.c.bf16 %v1465_v40, %v1457_v30  ;;  %v798_v34 = vsel %vm522_vm4, %v5424_v56, %v5427_v57  ;;  %vm1254_vm6 = vcmp.eq.s32.totalorder %v390_v60, 3  ;;  %vm530_vm7 = vcmp.eq.s32.totalorder %v398_v24, 1 }
  0xf6   : > { %vm934_vm8 = vcmp.eq.s32.totalorder %v398_v24, 2  ;;  %v1126_v0 = vsel %vm926_vm5, %v5451_v6, %v798_v34  ;;  %vm1262_vm9 = vcmp.eq.s32.totalorder %v398_v24, 3  ;;  %v806_v49 = vsel %vm530_vm7, %v5424_v56, %v5427_v57 }
  0xf7   : > { %7165 = vst [vmem:[#allocation20_spill] sm:$0xff] %v5909_v33  ;;  %3307 = vmatprep.mubr.bf16.mxu1 %v5909_v33  ;;  %v1454_v36 = vsel %vm1254_vm6, %v5468_v20, %v1126_v0  ;;  %v392_v28 = vunpack.c.2.s8 %v5839_v63  ;;  %v400_v62 = vunpack.c.3.s8 %v5839_v63  ;;  %v1134_v29 = vsel %vm934_vm8, %v5451_v6, %v806_v49 }
  0xf8   : > { %v283_v60 = vunpack.c.0.s8 %v5901_v42  ;;  %v291_v5 = vunpack.c.1.s8 %v5901_v42  ;;  %v565_v45 = vrot.slane %v5903_v22, %v5301_v47  ;;  %v1462_v38 = vsel %vm1262_vm9, %v5468_v20, %v1134_v29 }
  0xf9   : > { %vm524_vm10 = vcmp.eq.s32.totalorder %v392_v28, 1  ;;  %vm532_vm11 = vcmp.eq.s32.totalorder %v400_v62, 1  ;;  %vm928_vm12 = vcmp.eq.s32.totalorder %v392_v28, 2  ;;  %v5926_v56 = vpack.c.bf16 %v1462_v38, %v1454_v36 }
  0xfa   : > { %v800_v57 = vsel %vm524_vm10, %v5471_v21, %v5475_v27  ;;  %v808_v6 = vsel %vm532_vm11, %v5471_v21, %v5475_v27  ;;  %vm936_vm13 = vcmp.eq.s32.totalorder %v400_v62, 2  ;;  %vm1256_vm14 = vcmp.eq.s32.totalorder %v392_v28, 3 }
  0xfb   : > { %7166 = vst [vmem:[#allocation21_spill] sm:$0xff] %v5926_v56  ;;  %v1128_v63 = vsel %vm928_vm12, %v5494_v35, %v800_v57  ;;  %v1136_v61 = vsel %vm936_vm13, %v5494_v35, %v808_v6  ;;  %vm1264_vm15 = vcmp.eq.s32.totalorder %v400_v62, 3  ;;  %3195 = vmatmul.mubr.bf16.gmra.mxu0 %v5926_v56  ;;  %vm415_vm0 = vcmp.eq.s32.totalorder %v283_v60, 1  ;;  %v5947_v35 = vld [vmem:[#allocation5 + $0x18] sm:$0xff]  ;;  %v5992_v6 = vld [vmem:[%s5289_s22 + $0x20] sm:$0xff] }
  0xfc   : > { %v1456_v20 = vsel %vm1256_vm14, %v5514_v46, %v1128_v63  ;;  %v1464_v18 = vsel %vm1264_vm15, %v5514_v46, %v1136_v61  ;;  %vm423_vm1 = vcmp.eq.s32.totalorder %v291_v5, 1  ;;  %v5943_v21 = vrot.slane %v565_v45, %v5299_v44  ;;  %v4784_v56 = vld [vmem:[#allocation7 + $0xcc] ss:$16 sps:$4 sm:$0xff]  }
  0xfd   : > { %v5940_v39 = vpack.c.bf16 %v1464_v18, %v1456_v20  ;;  %v637_v27 = vrot.slane %v5903_v22, %v5305_v50  ;;  %vm819_vm2 = vcmp.eq.s32.totalorder %v283_v60, 2  ;;  %vm827_vm3 = vcmp.eq.s32.totalorder %v291_v5, 2 }
  0xfe   : > { %v965_v11 = vrot.slane %v5903_v22, %v5307_v51  ;;  %vm1147_vm4 = vcmp.eq.s32.totalorder %v283_v60, 3  ;;  %vm1155_vm5 = vcmp.eq.s32.totalorder %v291_v5, 3  ;;  %v1293_v30 = vrot.slane %v5903_v22, %v5314_v58 }
  0xff   : > { %7167 = vst [vmem:[#allocation22_spill] sm:$0xff] %v5940_v39  ;;  %3308 = vmatmul.mubr.bf16.gmra.mxu1 %v5940_v39  ;;  %v5953_v46 = vrot.slane %v637_v27, %v5303_v48  ;;  %v285_v40 = vunpack.c.0.s8 %v5938_v10  ;;  %v293_v24 = vunpack.c.1.s8 %v5938_v10  ;;  %v573_v0 = vrot.slane %v5947_v35, %v5301_v47 }
 0x100   : > { %v5960_v34 = vrot.slane %v965_v11, %v5309_v53  ;;  %v645_v49 = vrot.slane %v5947_v35, %v5305_v50  ;;  %v973_v36 = vrot.slane %v5947_v35, %v5307_v51  ;;  %v5975_v29 = vrot.slane %v1293_v30, %v5311_v54 }
 0x101   : > { %v691_v28 = vsel %vm415_vm0, %v5943_v21, %v5953_v46  ;;  %v699_v62 = vsel %vm423_vm1, %v5943_v21, %v5953_v46  ;;  %vm417_vm6 = vcmp.eq.s32.totalorder %v285_v40, 1  ;;  %vm425_vm7 = vcmp.eq.s32.totalorder %v293_v24, 1 }
 0x102   : > { %v1019_v47 = vsel %vm819_vm2, %v5960_v34, %v691_v28  ;;  %v1027_v50 = vsel %vm827_vm3, %v5960_v34, %v699_v62  ;;  %v5982_v51 = vrot.slane %v573_v0, %v5299_v44  ;;  %v5989_v57 = vrot.slane %v645_v49, %v5303_v48  ;;  %v6020_v28 = vld [vmem:[%s5289_s22 + $0x30] sm:$0xff] }
 0x103   : > { %v1347_v45 = vsel %vm1147_vm4, %v5975_v29, %v1019_v47  ;;  %v1355_v38 = vsel %vm1155_vm5, %v5975_v29, %v1027_v50  ;;  %vm821_vm8 = vcmp.eq.s32.totalorder %v285_v40, 2  ;;  %vm829_vm9 = vcmp.eq.s32.totalorder %v293_v24, 2 }
 0x104   : > { %v5994_v63 = vpack.c.bf16 %v1355_v38, %v1347_v45  ;;  %v5997_v61 = vrot.slane %v973_v36, %v5309_v53  ;;  %vm1149_vm10 = vcmp.eq.s32.totalorder %v285_v40, 3  ;;  %v693_v60 = vsel %vm417_vm6, %v5982_v51, %v5989_v57 }
 0x105   : > { %v701_v5 = vsel %vm425_vm7, %v5982_v51, %v5989_v57  ;;  %vm1157_vm11 = vcmp.eq.s32.totalorder %v293_v24, 3  ;;  %v1301_v20 = vrot.slane %v5947_v35, %v5314_v58  ;;  %v282_v11 = vunpack.c.0.s8 %v5992_v6 }
 0x106   : > { %7168 = vst [vmem:[#allocation23_spill] sm:$0xff] %v5994_v63  ;;  %3350 = vmatprep.mubr.bf16.mxu0 %v5994_v63  ;;  %v1021_v18 = vsel %vm821_vm8, %v5997_v61, %v693_v60  ;;  %v1029_v27 = vsel %vm829_vm9, %v5997_v61, %v701_v5  ;;  %v290_v30 = vunpack.c.1.s8 %v5992_v6  ;;  %v561_v49 = vrot.slane %v5903_v22, %v5299_v44 }
 0x107   : > { %v6011_v0 = vrot.slane %v1301_v20, %v5311_v54  ;;  %v633_v36 = vrot.slane %v5903_v22, %v5303_v48  ;;  %v961_v58 = vrot.slane %v5903_v22, %v5309_v53  ;;  %vm414_vm12 = vcmp.eq.s32.totalorder %v282_v11, 1 }
 0x108   : > { %vm422_vm13 = vcmp.eq.s32.totalorder %v290_v30, 1  ;;  %vm818_vm14 = vcmp.eq.s32.totalorder %v282_v11, 2  ;;  %vm826_vm15 = vcmp.eq.s32.totalorder %v290_v30, 2  ;;  %v6027_v50 = vrot.slane %v561_v49, %v5299_v44 }
 0x109   : > { %v1349_v62 = vsel %vm1149_vm10, %v6011_v0, %v1021_v18  ;;  %v1357_v47 = vsel %vm1157_vm11, %v6011_v0, %v1029_v27  ;;  %v6030_v45 = vrot.slane %v633_v36, %v5303_v48  ;;  %v6035_v60 = vrot.slane %v961_v58, %v5309_v53 }
 0x10a   : > { %v6032_v38 = vpack.c.bf16 %v1357_v47, %v1349_v62  ;;  %vm1146_vm0 = vcmp.eq.s32.totalorder %v282_v11, 3  ;;  %vm1154_vm1 = vcmp.eq.s32.totalorder %v290_v30, 3  ;;  %v1289_v5 = vrot.slane %v5903_v22, %v5311_v54 }
 0x10b   : > { %v690_v40 = vsel %vm414_vm12, %v6027_v50, %v6030_v45  ;;  %v698_v24 = vsel %vm422_vm13, %v6027_v50, %v6030_v45  ;;  %v284_v20 = vunpack.c.0.s8 %v6020_v28  ;;  %v292_v49 = vunpack.c.1.s8 %v6020_v28 }
 0x10c   : > { %7169 = vst [vmem:[#allocation24_spill] sm:$0xff] %v6032_v38  ;;  %3463 = vmatprep.mubr.bf16.mxu1 %v6032_v38  ;;  %v1018_v18 = vsel %vm818_vm14, %v6035_v60, %v690_v40  ;;  %v1026_v27 = vsel %vm826_vm15, %v6035_v60, %v698_v24  ;;  %v569_v36 = vrot.slane %v5947_v35, %v5299_v44  ;;  %v4776_v38 = vld [vmem:[#allocation7 + $0xe8] ss:$16 sps:$4 sm:$0xff]  }
 0x10d   : > { %v6053_v58 = vrot.slane %v1289_v5, %v5311_v54  ;;  %vm416_vm2 = vcmp.eq.s32.totalorder %v284_v20, 1  ;;  %v641_v22 = vrot.slane %v5947_v35, %v5303_v48  ;;  %vm820_vm3 = vcmp.eq.s32.totalorder %v284_v20, 2 }
 0x10e   : > { %vm424_vm4 = vcmp.eq.s32.totalorder %v292_v49, 1  ;;  %v6058_v62 = vrot.slane %v569_v36, %v5299_v44  ;;  %vm828_vm5 = vcmp.eq.s32.totalorder %v292_v49, 2  ;;  %v969_v47 = vrot.slane %v5947_v35, %v5309_v53 }
 0x10f   : > { %v1346_v40 = vsel %vm1146_vm0, %v6053_v58, %v1018_v18  ;;  %v1354_v24 = vsel %vm1154_vm1, %v6053_v58, %v1026_v27  ;;  %v6067_v5 = vrot.slane %v641_v22, %v5303_v48  ;;  %vm1148_vm6 = vcmp.eq.s32.totalorder %v284_v20, 3 }
 0x110   : > { %v6069_v39 = vpack.c.bf16 %v1354_v24, %v1346_v40  ;;  %v6072_v36 = vrot.slane %v969_v47, %v5309_v53  ;;  %vm1156_vm7 = vcmp.eq.s32.totalorder %v292_v49, 3  ;;  %v1297_v63 = vrot.slane %v5947_v35, %v5311_v54  ;;  %v4782_v24 = vld [vmem:[#allocation7 + $0xc8] ss:$16 sps:$4 sm:$0xff]  }
 0x111   : > { %v692_v11 = vsel %vm416_vm2, %v6058_v62, %v6067_v5  ;;  %v700_v30 = vsel %vm424_vm4, %v6058_v62, %v6067_v5  ;;  %v299_v18 = vunpack.c.2.s8 %v5901_v42  ;;  %v307_v27 = vunpack.c.3.s8 %v5901_v42  ;;  %v4779_v53 = vld [vmem:[#allocation7 + $0x2e8] ss:$16 sps:$4 sm:$0xff]  }
 0x112   : > { %7170 = vst [vmem:[#allocation25_spill] sm:$0xff] %v6069_v39  ;;  %3351 = vmatmul.mubr.bf16.vlgmr.msra.gmra.mxu0 %v6069_v39  ;;  %v1020_v22 = vsel %vm820_vm3, %v6072_v36, %v692_v11  ;;  %v1028_v35 = vsel %vm828_vm5, %v6072_v36, %v700_v30  ;;  %v6089_v47 = vrot.slane %v1297_v63, %v5311_v54  ;;  %v301_v40 = vunpack.c.2.s8 %v5938_v10  ;;  %v4787_v39 = vld [vmem:[#allocation7 + $0x2cc] ss:$16 sps:$4 sm:$0xff]  }
 0x113   : > { %3545 = vmatpush1.bf16.msra.mxu0 %v4776_v38  ;;  %vm431_vm8 = vcmp.eq.s32.totalorder %v299_v18, 1  ;;  %vm439_vm9 = vcmp.eq.s32.totalorder %v307_v27, 1  ;;  %vm835_vm10 = vcmp.eq.s32.totalorder %v299_v18, 2  ;;  %vm843_vm11 = vcmp.eq.s32.totalorder %v307_v27, 2  ;;  %v4790_v38 = vld [vmem:[#allocation7 + $0xac] ss:$16 sps:$4 sm:$0xff]  }
 0x114   : > { %v1348_v42 = vsel %vm1148_vm6, %v6089_v47, %v1020_v22  ;;  %v1356_v11 = vsel %vm1156_vm7, %v6089_v47, %v1028_v35  ;;  %3546 = vmatprep.subr.bf16.mxu0 %v4784_v56  ;;  %v707_v63 = vsel %vm431_vm8, %v5943_v21, %v5953_v46  ;;  %v715_v30 = vsel %vm439_vm9, %v5943_v21, %v5953_v46 }
 0x115   : > { %v6100_v54 = vpack.c.bf16 %v1356_v11, %v1348_v42  ;;  %v1035_v33 = vsel %vm835_vm10, %v5960_v34, %v707_v63  ;;  %v1043_v20 = vsel %vm843_vm11, %v5960_v34, %v715_v30  ;;  %vm1163_vm12 = vcmp.eq.s32.totalorder %v299_v18, 3  ;;  %v4788_v42 = vld [vmem:[#allocation7 + $0xa8] ss:$16 sps:$4 sm:$0xff]   ;;  %v4793_v63 = vld [vmem:[#allocation7 + $0x2ac] ss:$16 sps:$4 sm:$0xff]  }
 0x116   : > { %vm1171_vm13 = vcmp.eq.s32.totalorder %v307_v27, 3  ;;  %v1363_v49 = vsel %vm1163_vm12, %v5975_v29, %v1035_v33  ;;  %v309_v56 = vunpack.c.3.s8 %v5938_v10  ;;  %vm433_vm14 = vcmp.eq.s32.totalorder %v301_v40, 1  ;;  %v4785_v11 = vld [vmem:[#allocation7 + $0x2c8] ss:$16 sps:$4 sm:$0xff]   ;;  %v4796_v10 = vld [vmem:[#allocation7 + $0x8c] ss:$16 sps:$4 sm:$0xff]  }
 0x117   : > { %7171 = vst [vmem:[#allocation26_spill] sm:$0xff] %v6100_v54  ;;  %3464 = vmatmul.mubr.bf16.vlgmr.msra.gmra.mxu1 %v6100_v54  ;;  %3547 = vmatpush1.bf16.msra.mxu0 %v4782_v24  ;;  %v1371_v22 = vsel %vm1171_vm13, %v5975_v29, %v1043_v20  ;;  %v709_v35 = vsel %vm433_vm14, %v5982_v51, %v5989_v57  ;;  %vm837_vm15 = vcmp.eq.s32.totalorder %v301_v40, 2  ;;  %vm1165_vm0 = vcmp.eq.s32.totalorder %v301_v40, 3 }
 0x118   : > { %3658 = vmatpush1.bf16.msra.mxu1 %v4779_v53  ;;  %v6110_v18 = vpack.c.bf16 %v1371_v22, %v1363_v49  ;;  %vm441_vm1 = vcmp.eq.s32.totalorder %v309_v56, 1  ;;  %vm845_vm2 = vcmp.eq.s32.totalorder %v309_v56, 2  ;;  %v1037_v33 = vsel %vm837_vm15, %v5997_v61, %v709_v35  ;;  %3548 = vmatprep.subr.bf16.mxu0 %v4790_v38  ;;  %v4794_v49 = vld [vmem:[#allocation7 + $0x88] ss:$16 sps:$4 sm:$0xff]   ;;  %v4802_v35 = vld [vmem:[#allocation7 + $0x6c] ss:$16 sps:$4 sm:$0xff]  }
 0x119   : > { %3659 = vmatprep.subr.bf16.mxu1 %v4787_v39  ;;  %v717_v27 = vsel %vm441_vm1, %v5982_v51, %v5989_v57  ;;  %vm1173_vm3 = vcmp.eq.s32.totalorder %v309_v56, 3  ;;  %v1365_v24 = vsel %vm1165_vm0, %v6011_v0, %v1037_v33  ;;  %v298_v40 = vunpack.c.2.s8 %v5992_v6 }
 0x11a   : > { %7172 = vst [vmem:[#allocation27_spill] sm:$0xff] %v6110_v18  ;;  %3360 = vmatprep.mubr.bf16.mxu0 %v6110_v18  ;;  %v1045_v53 = vsel %vm845_vm2, %v5997_v61, %v717_v27  ;;  %v306_v30 = vunpack.c.3.s8 %v5992_v6  ;;  %v300_v20 = vunpack.c.2.s8 %v6020_v28  ;;  %v308_v38 = vunpack.c.3.s8 %v6020_v28  ;;  %v4791_v6 = vld [vmem:[#allocation7 + $0x2a8] ss:$16 sps:$4 sm:$0xff]  }
 0x11b   : > { %v1373_v39 = vsel %vm1173_vm3, %v6011_v0, %v1045_v53  ;;  %vm430_vm4 = vcmp.eq.s32.totalorder %v298_v40, 1  ;;  %vm834_vm5 = vcmp.eq.s32.totalorder %v298_v40, 2  ;;  %vm1162_vm6 = vcmp.eq.s32.totalorder %v298_v40, 3  ;;  %3549 = vmatpush1.bf16.msra.mxu0 %v4788_v42  ;;  %v4799_v42 = vld [vmem:[#allocation7 + $0x28c] ss:$16 sps:$4 sm:$0xff]  }
 0x11c   : > { %3660 = vmatpush1.bf16.msra.mxu1 %v4785_v11  ;;  %v6123_v56 = vpack.c.bf16 %v1373_v39, %v1365_v24  ;;  %vm438_vm7 = vcmp.eq.s32.totalorder %v306_v30, 1  ;;  %v706_v22 = vsel %vm430_vm4, %v6027_v50, %v6030_v45  ;;  %vm842_vm8 = vcmp.eq.s32.totalorder %v306_v30, 2  ;;  %3550 = vmatprep.subr.bf16.mxu0 %v4796_v10  ;;  %v6137_v24 = vld [vmem:[%s5289_s22 + $0x68] sm:$0xff]  ;;  %v6146_v39 = vld [vmem:[%s5289_s22 + $0x60] sm:$0xff] }
 0x11d   : > { %v714_v28 = vsel %vm438_vm7, %v6027_v50, %v6030_v45  ;;  %v1034_v33 = vsel %vm834_vm5, %v6035_v60, %v706_v22  ;;  %vm1170_vm9 = vcmp.eq.s32.totalorder %v306_v30, 3  ;;  %vm432_vm10 = vcmp.eq.s32.totalorder %v300_v20, 1  ;;  %3661 = vmatprep.subr.bf16.mxu1 %v4793_v63  ;;  %v6143_v63 = vld [vmem:[%s5289_s22 + $0x78] sm:$0xff] }
 0x11e   : > { %7173 = vst [vmem:[#allocation28_spill] sm:$0xff] %v6123_v56  ;;  %3473 = vmatprep.mubr.bf16.mxu1 %v6123_v56  ;;  %v1042_v11 = vsel %vm842_vm8, %v6035_v60, %v714_v28  ;;  %v1362_v27 = vsel %vm1162_vm6, %v6053_v58, %v1034_v33  ;;  %vm440_vm11 = vcmp.eq.s32.totalorder %v308_v38, 1  ;;  %v708_v10 = vsel %vm432_vm10, %v6058_v62, %v6067_v5  ;;  %v4800_v40 = vld [vmem:[#allocation7 + $0x68] ss:$16 sps:$4 sm:$0xff]   ;;  %v4808_v56 = vld [vmem:[#allocation7 + $0x4c] ss:$16 sps:$4 sm:$0xff]  }
 0x11f   : > { %v1370_v53 = vsel %vm1170_vm9, %v6053_v58, %v1042_v11  ;;  %v716_v30 = vsel %vm440_vm11, %v6058_v62, %v6067_v5  ;;  %vm836_vm12 = vcmp.eq.s32.totalorder %v300_v20, 2  ;;  %vm844_vm13 = vcmp.eq.s32.totalorder %v308_v38, 2  ;;  %3551 = vmatpush1.bf16.msra.mxu0 %v4794_v49  ;;  %v4797_v11 = vld [vmem:[#allocation7 + $0x288] ss:$16 sps:$4 sm:$0xff]  }
 0x120   : > { %v6148_v22 = vpack.c.bf16 %v1370_v53, %v1362_v27  ;;  %v1036_v28 = vsel %vm836_vm12, %v6072_v36, %v708_v10  ;;  %v1044_v33 = vsel %vm844_vm13, %v6072_v36, %v716_v30  ;;  %vm1164_vm14 = vcmp.eq.s32.totalorder %v300_v20, 3  ;;  %3662 = vmatpush1.bf16.msra.mxu1 %v4791_v6  ;;  %3552 = vmatprep.subr.bf16.mxu0 %v4802_v35  ;;  %v4803_v30 = vld [vmem:[#allocation7 + $0x268] ss:$16 sps:$4 sm:$0xff]  }
 0x121   : > { %vm1172_vm15 = vcmp.eq.s32.totalorder %v308_v38, 3  ;;  %v1364_v54 = vsel %vm1164_vm14, %v6089_v47, %v1036_v28  ;;  %3663 = vmatprep.subr.bf16.mxu1 %v4799_v42  ;;  %v315_v49 = vunpack.c.0.s8 %v6137_v24  ;;  %v323_v18 = vunpack.c.1.s8 %v6137_v24  ;;  %v4806_v38 = vld [vmem:[#allocation7 + $0x48] ss:$16 sps:$4 sm:$0xff]   ;;  %v4814_v28 = vld [vmem:[#allocation7 + $0x2c] ss:$16 sps:$4 sm:$0xff]  }
 0x122   : > { %7174 = vst [vmem:[#allocation29_spill] sm:$0xff] %v6148_v22  ;;  %3361 = vmatmul.mubr.bf16.gmra.mxu0 %v6148_v22  ;;  %v1372_v27 = vsel %vm1172_vm15, %v6089_v47, %v1044_v33  ;;  %v317_v10 = vunpack.c.0.s8 %v6143_v63  ;;  %v325_v20 = vunpack.c.1.s8 %v6143_v63  ;;  %v314_v6 = vunpack.c.0.s8 %v6146_v39 }
 0x123   : > { %v6160_v35 = vpack.c.bf16 %v1372_v27, %v1364_v54  ;;  %vm447_vm0 = vcmp.eq.s32.totalorder %v315_v49, 1  ;;  %vm455_vm1 = vcmp.eq.s32.totalorder %v323_v18, 1  ;;  %vm851_vm2 = vcmp.eq.s32.totalorder %v315_v49, 2  ;;  %3553 = vmatpush1.bf16.msra.mxu0 %v4800_v40  ;;  %v4811_v40 = vld [vmem:[#allocation7 + $0x24c] ss:$16 sps:$4 sm:$0xff]  }
 0x124   : > { %3664 = vmatpush1.bf16.msra.mxu1 %v4797_v11  ;;  %v723_v42 = vsel %vm447_vm0, %v5943_v21, %v5953_v46  ;;  %v731_v53 = vsel %vm455_vm1, %v5943_v21, %v5953_v46  ;;  %vm859_vm3 = vcmp.eq.s32.totalorder %v323_v18, 2  ;;  %vm1179_vm4 = vcmp.eq.s32.totalorder %v315_v49, 3  ;;  %3554 = vmatprep.subr.bf16.mxu0 %v4808_v56 }
 0x125   : > { %7175 = vst [vmem:[#allocation30_spill] sm:$0xff] %v6160_v35  ;;  %3474 = vmatmul.mubr.bf16.gmra.mxu1 %v6160_v35  ;;  %v1051_v54 = vsel %vm851_vm2, %v5960_v34, %v723_v42  ;;  %v1059_v33 = vsel %vm859_vm3, %v5960_v34, %v731_v53  ;;  %vm1187_vm5 = vcmp.eq.s32.totalorder %v323_v18, 3  ;;  %vm449_vm6 = vcmp.eq.s32.totalorder %v317_v10, 1  ;;  %3665 = vmatprep.subr.bf16.mxu1 %v4805_v2  ;;  %v4812_v18 = vld [vmem:[#allocation7 + $0x28] ss:$16 sps:$4 sm:$0xff]  }
 0x126   : > { %v1379_v11 = vsel %vm1179_vm4, %v5975_v29, %v1051_v54  ;;  %v1387_v27 = vsel %vm1187_vm5, %v5975_v29, %v1059_v33  ;;  %vm457_vm7 = vcmp.eq.s32.totalorder %v325_v20, 1  ;;  %v725_v49 = vsel %vm449_vm6, %v5982_v51, %v5989_v57  ;;  %v4809_v53 = vld [vmem:[#allocation7 + $0x248] ss:$16 sps:$4 sm:$0xff]  }
 0x127   : > { %v6173_v56 = vpack.c.bf16 %v1387_v27, %v1379_v11  ;;  %v733_v35 = vsel %vm457_vm7, %v5982_v51, %v5989_v57  ;;  %vm853_vm8 = vcmp.eq.s32.totalorder %v317_v10, 2  ;;  %vm861_vm9 = vcmp.eq.s32.totalorder %v325_v20, 2  ;;  %3555 = vmatpush1.bf16.msra.mxu0 %v4806_v38  ;;  %v6184_v38 = vld [vmem:[%s5289_s22 + $0x70] sm:$0xff]  ;;  %v4817_v27 = vld [vmem:[#allocation7 + $0x22c] ss:$16 sps:$4 sm:$0xff]  }
 0x128   : > { %v1053_v2 = vsel %vm853_vm8, %v5997_v61, %v725_v49  ;;  %v1061_v42 = vsel %vm861_vm9, %v5997_v61, %v733_v35  ;;  %vm1181_vm10 = vcmp.eq.s32.totalorder %v317_v10, 3  ;;  %vm1189_vm11 = vcmp.eq.s32.totalorder %v325_v20, 3  ;;  %3666 = vmatpush1.bf16.msra.mxu1 %v4803_v30  ;;  %3556 = vmatprep.subr.bf16.mxu0 %v4814_v28  ;;  %v4820_v49 = vld [vmem:[#allocation7 + $0xc] ss:$16 sps:$4 sm:$0xff]   ;;  %v4818_v30 = vld [vmem:[#allocation7 + $0x8] ss:$16 sps:$4 sm:$0xff]  }
 0x129   : > { %7176 = vst [vmem:[#allocation31_spill] sm:$0xff] %v6173_v56  ;;  %3370 = vmatprep.mubr.bf16.mxu0 %v6173_v56  ;;  %v1381_v54 = vsel %vm1181_vm10, %v6011_v0, %v1053_v2  ;;  %v1389_v33 = vsel %vm1189_vm11, %v6011_v0, %v1061_v42  ;;  %v322_v11 = vunpack.c.1.s8 %v6146_v39  ;;  %vm446_vm12 = vcmp.eq.s32.totalorder %v314_v6, 1  ;;  %3667 = vmatprep.subr.bf16.mxu1 %v4811_v40  ;;  %v4823_v56 = vld [vmem:[#allocation7 + $0x20c] ss:$16 sps:$4 sm:$0xff]  }
 0x12a   : > { %v6186_v35 = vpack.c.bf16 %v1389_v33, %v1381_v54  ;;  %v722_v10 = vsel %vm446_vm12, %v6027_v50, %v6030_v45  ;;  %vm850_vm13 = vcmp.eq.s32.totalorder %v314_v6, 2  ;;  %vm1178_vm14 = vcmp.eq.s32.totalorder %v314_v6, 3  ;;  %v4815_v6 = vld [vmem:[#allocation7 + $0x228] ss:$16 sps:$4 sm:$0xff]   ;;  %v4826_v54 = vld [vmem:[#allocation7 + $0x1ec] ss:$16 sps:$4 sm:$0xff]  }
 0x12b   : > { %vm454_vm15 = vcmp.eq.s32.totalorder %v322_v11, 1  ;;  %vm858_vm0 = vcmp.eq.s32.totalorder %v322_v11, 2  ;;  %v1050_v20 = vsel %vm850_vm13, %v6035_v60, %v722_v10  ;;  %vm1186_vm1 = vcmp.eq.s32.totalorder %v322_v11, 3  ;;  %3557 = vmatpush1.bf16.msra.mxu0 %v4812_v18  ;;  %v4832_v11 = vld [vmem:[#allocation7 + $0x1cc] ss:$16 sps:$4 sm:$0xff]  }
 0x12c   : > { %7177 = vst [vmem:[#allocation32_spill] sm:$0xff] %v6186_v35  ;;  %3483 = vmatprep.mubr.bf16.mxu1 %v6186_v35  ;;  %v730_v28 = vsel %vm454_vm15, %v6027_v50, %v6030_v45  ;;  %v1378_v40 = vsel %vm1178_vm14, %v6053_v58, %v1050_v20  ;;  %v316_v2 = vunpack.c.0.s8 %v6184_v38  ;;  %v324_v42 = vunpack.c.1.s8 %v6184_v38  ;;  %3668 = vmatpush1.bf16.msra.mxu1 %v4809_v53 }
 0x12d   : > { %v1058_v33 = vsel %vm858_vm0, %v6035_v60, %v730_v28  ;;  %v331_v10 = vunpack.c.2.s8 %v6137_v24  ;;  %v339_v18 = vunpack.c.3.s8 %v6137_v24  ;;  %v333_v35 = vunpack.c.2.s8 %v6143_v63  ;;  %3669 = vmatprep.subr.bf16.mxu1 %v4817_v27  ;;  %3558 = vmatprep.subr.bf16.mxu0 %v4820_v49  ;;  %v4824_v24 = vld [vmem:[#allocation7 + $0x1e8] ss:$16 sps:$4 sm:$0xff]  }
 0x12e   : > { %v1386_v20 = vsel %vm1186_vm1, %v6053_v58, %v1058_v33  ;;  %vm448_vm2 = vcmp.eq.s32.totalorder %v316_v2, 1  ;;  %vm456_vm3 = vcmp.eq.s32.totalorder %v324_v42, 1  ;;  %vm852_vm4 = vcmp.eq.s32.totalorder %v316_v2, 2 }
 0x12f   : > { %v6203_v53 = vpack.c.bf16 %v1386_v20, %v1378_v40  ;;  %v724_v28 = vsel %vm448_vm2, %v6058_v62, %v6067_v5  ;;  %v732_v22 = vsel %vm456_vm3, %v6058_v62, %v6067_v5  ;;  %vm860_vm5 = vcmp.eq.s32.totalorder %v324_v42, 2  ;;  %3559 = vmatpush1.bf16.msra.mxu0 %v4818_v30  ;;  %v4821_v20 = vld [vmem:[#allocation7 + $0x208] ss:$16 sps:$4 sm:$0xff]  }
 0x130   : > { %v1052_v27 = vsel %vm852_vm4, %v6072_v36, %v724_v28  ;;  %v1060_v49 = vsel %vm860_vm5, %v6072_v36, %v732_v22  ;;  %vm1180_vm6 = vcmp.eq.s32.totalorder %v316_v2, 3  ;;  %vm1188_vm7 = vcmp.eq.s32.totalorder %v324_v42, 3  ;;  %3670 = vmatpush1.bf16.msra.mxu1 %v4815_v6  ;;  %3560 = vmatprep.subr.bf16.mxu0 %v4826_v54  ;;  %v4829_v42 = vld [vmem:[#allocation7 + $0x3ec] ss:$16 sps:$4 sm:$0xff]   ;;  %v4830_v54 = vld [vmem:[#allocation7 + $0x1c8] ss:$16 sps:$4 sm:$0xff]  }
 0x131   : > { %7178 = vst [vmem:[#allocation33_spill] sm:$0xff] %v6203_v53  ;;  %3371 = vmatmul.mubr.bf16.gmra.mxu0 %v6203_v53  ;;  %v1380_v40 = vsel %vm1180_vm6, %v6089_v47, %v1052_v27  ;;  %v1388_v33 = vsel %vm1188_vm7, %v6089_v47, %v1060_v49  ;;  %vm463_vm8 = vcmp.eq.s32.totalorder %v331_v10, 1  ;;  %vm471_vm9 = vcmp.eq.s32.totalorder %v339_v18, 1  ;;  %3671 = vmatprep.subr.bf16.mxu1 %v4823_v56  ;;  %v4838_v49 = vld [vmem:[#allocation7 + $0x1ac] ss:$16 sps:$4 sm:$0xff]  }
 0x132   : > { %v6214_v30 = vpack.c.bf16 %v1388_v33, %v1380_v40  ;;  %v739_v22 = vsel %vm463_vm8, %v5943_v21, %v5953_v46  ;;  %v747_v2 = vsel %vm471_vm9, %v5943_v21, %v5953_v46  ;;  %vm867_vm10 = vcmp.eq.s32.totalorder %v331_v10, 2  ;;  %v4848_v53 = vld [vmem:[#allocation7 + $0x168] ss:$16 sps:$4 sm:$0xff]  }
 0x133   : > { %vm875_vm11 = vcmp.eq.s32.totalorder %v339_v18, 2  ;;  %v1067_v6 = vsel %vm867_vm10, %v5960_v34, %v739_v22  ;;  %vm1195_vm12 = vcmp.eq.s32.totalorder %v331_v10, 3  ;;  %vm1203_vm13 = vcmp.eq.s32.totalorder %v339_v18, 3  ;;  %3561 = vmatpush2.bf16.msra.mxu0 %v4824_v24  ;;  %v4827_v10 = vld [vmem:[#allocation7 + $0x3e8] ss:$16 sps:$4 sm:$0xff]  }
 0x134   : > { %7179 = vst [vmem:[#allocation34_spill] sm:$0xff] %v6214_v30  ;;  %3484 = vmatmul.mubr.bf16.gmra.mxu1 %v6214_v30  ;;  %v1075_v56 = vsel %vm875_vm11, %v5960_v34, %v747_v2  ;;  %v1395_v28 = vsel %vm1195_vm12, %v5975_v29, %v1067_v6  ;;  %v341_v27 = vunpack.c.3.s8 %v6143_v63  ;;  %vm465_vm14 = vcmp.eq.s32.totalorder %v333_v35, 1  ;;  %3562 = vmatprep.subr.bf16.mxu0 %v4832_v11  ;;  %v4835_v63 = vld [vmem:[#allocation7 + $0x3cc] ss:$16 sps:$4 sm:$0xff]  }
 0x135   : > { %v1403_v40 = vsel %vm1203_vm13, %v5975_v29, %v1075_v56  ;;  %v741_v33 = vsel %vm465_vm14, %v5982_v51, %v5989_v57  ;;  %vm869_vm15 = vcmp.eq.s32.totalorder %v333_v35, 2  ;;  %vm1197_vm0 = vcmp.eq.s32.totalorder %v333_v35, 3  ;;  %3672 = vmatpush1.bf16.msra.mxu1 %v4821_v20  ;;  %v4836_v35 = vld [vmem:[#allocation7 + $0x1a8] ss:$16 sps:$4 sm:$0xff]  }
 0x136   : > { %v6228_v18 = vpack.c.bf16 %v1403_v40, %v1395_v28  ;;  %vm473_vm1 = vcmp.eq.s32.totalorder %v341_v27, 1  ;;  %vm877_vm2 = vcmp.eq.s32.totalorder %v341_v27, 2  ;;  %v1069_v24 = vsel %vm869_vm15, %v5997_v61, %v741_v33  ;;  %3673 = vmatprep.subr.bf16.mxu1 %v4829_v42  ;;  %v4844_v28 = vld [vmem:[#allocation7 + $0x18c] ss:$16 sps:$4 sm:$0xff]  }
 0x137   : > { %v749_v11 = vsel %vm473_vm1, %v5982_v51, %v5989_v57  ;;  %vm1205_vm3 = vcmp.eq.s32.totalorder %v341_v27, 3  ;;  %v1397_v22 = vsel %vm1197_vm0, %v6011_v0, %v1069_v24  ;;  %v330_v2 = vunpack.c.2.s8 %v6146_v39  ;;  %3563 = vmatpush2.bf16.msra.mxu0 %v4830_v54  ;;  %v4833_v54 = vld [vmem:[#allocation7 + $0x3c8] ss:$16 sps:$4 sm:$0xff]   ;;  %v4841_v33 = vld [vmem:[#allocation7 + $0x3ac] ss:$16 sps:$4 sm:$0xff]  }
 0x138   : > { %7180 = vst [vmem:[#allocation35_spill] sm:$0xff] %v6228_v18  ;;  %3380 = vmatprep.mubr.bf16.mxu0 %v6228_v18  ;;  %v1077_v20 = vsel %vm877_vm2, %v5997_v61, %v749_v11  ;;  %v338_v6 = vunpack.c.3.s8 %v6146_v39  ;;  %v332_v56 = vunpack.c.2.s8 %v6184_v38  ;;  %v340_v42 = vunpack.c.3.s8 %v6184_v38  ;;  %3564 = vmatprep.subr.bf16.mxu0 %v4838_v49 }
 0x139   : > { %v1405_v27 = vsel %vm1205_vm3, %v6011_v0, %v1077_v20  ;;  %vm462_vm4 = vcmp.eq.s32.totalorder %v330_v2, 1  ;;  %vm866_vm5 = vcmp.eq.s32.totalorder %v330_v2, 2  ;;  %vm1194_vm6 = vcmp.eq.s32.totalorder %v330_v2, 3  ;;  %3674 = vmatpush2.bf16.msra.mxu1 %v4827_v10  ;;  %v4842_v10 = vld [vmem:[#allocation7 + $0x188] ss:$16 sps:$4 sm:$0xff]  }
 0x13a   : > { %v6241_v40 = vpack.c.bf16 %v1405_v27, %v1397_v22  ;;  %vm470_vm7 = vcmp.eq.s32.totalorder %v338_v6, 1  ;;  %v738_v39 = vsel %vm462_vm4, %v6027_v50, %v6030_v45  ;;  %vm874_vm8 = vcmp.eq.s32.totalorder %v338_v6, 2  ;;  %3675 = vmatprep.subr.bf16.mxu1 %v4835_v63  ;;  %v6255_v22 = vld [vmem:[%s5289_s22 + $0xa8] sm:$0xff]  ;;  %v6261_v27 = vld [vmem:[%s5289_s22 + $0xb8] sm:$0xff] }
 0x13b   : > { %v746_v38 = vsel %vm470_vm7, %v6027_v50, %v6030_v45  ;;  %v1066_v49 = vsel %vm866_vm5, %v6035_v60, %v738_v39  ;;  %vm1202_vm9 = vcmp.eq.s32.totalorder %v338_v6, 3  ;;  %vm464_vm10 = vcmp.eq.s32.totalorder %v332_v56, 1  ;;  %3565 = vmatpush2.bf16.msra.mxu0 %v4836_v35  ;;  %v4850_v20 = vld [vmem:[#allocation7 + $0x16c] ss:$16 sps:$4 sm:$0xff]   ;;  %v6264_v39 = vld [vmem:[%s5289_s22 + $0xa0] sm:$0xff] }
 0x13c   : > { %7181 = vst [vmem:[#allocation36_spill] sm:$0xff] %v6241_v40  ;;  %3493 = vmatprep.mubr.bf16.mxu1 %v6241_v40  ;;  %v1074_v24 = vsel %vm874_vm8, %v6035_v60, %v746_v38  ;;  %v1394_v11 = vsel %vm1194_vm6, %v6053_v58, %v1066_v49  ;;  %vm472_vm11 = vcmp.eq.s32.totalorder %v340_v42, 1  ;;  %v740_v63 = vsel %vm464_vm10, %v6058_v62, %v6067_v5  ;;  %v4839_v2 = vld [vmem:[#allocation7 + $0x3a8] ss:$16 sps:$4 sm:$0xff]  }
 0x13d   : > { %3566 = vmatprep.subr.bf16.mxu0 %v4844_v28  ;;  %v1402_v6 = vsel %vm1202_vm9, %v6053_v58, %v1074_v24  ;;  %v748_v35 = vsel %vm472_vm11, %v6058_v62, %v6067_v5  ;;  %vm868_vm12 = vcmp.eq.s32.totalorder %v332_v56, 2  ;;  %vm876_vm13 = vcmp.eq.s32.totalorder %v340_v42, 2  ;;  %3676 = vmatpush2.bf16.msra.mxu1 %v4833_v54  ;;  %v4847_v24 = vld [vmem:[#allocation7 + $0x38c] ss:$16 sps:$4 sm:$0xff]  }
 0x13e   : > { %v6266_v38 = vpack.c.bf16 %v1402_v6, %v1394_v11  ;;  %v1068_v49 = vsel %vm868_vm12, %v6072_v36, %v740_v63  ;;  %v1076_v28 = vsel %vm876_vm13, %v6072_v36, %v748_v35  ;;  %vm1196_vm14 = vcmp.eq.s32.totalorder %v332_v56, 3  ;;  %3677 = vmatprep.subr.bf16.mxu1 %v4841_v33 }
 0x13f   : > { %vm1204_vm15 = vcmp.eq.s32.totalorder %v340_v42, 3  ;;  %v1396_v40 = vsel %vm1196_vm14, %v6089_v47, %v1068_v49  ;;  %v347_v30 = vunpack.c.0.s8 %v6255_v22  ;;  %v355_v18 = vunpack.c.1.s8 %v6255_v22  ;;  %3567 = vmatpush2.bf16.msra.mxu0 %v4842_v10  ;;  %v4856_v42 = vld [vmem:[#allocation7 + $0x14c] ss:$16 sps:$4 sm:$0xff]   ;;  %v4845_v10 = vld [vmem:[#allocation7 + $0x388] ss:$16 sps:$4 sm:$0xff]  }
 0x140   : > { %7182 = vst [vmem:[#allocation37_spill] sm:$0xff] %v6266_v38  ;;  %3381 = vmatmul.mubr.bf16.gmra.mxu0 %v6266_v38  ;;  %v1404_v54 = vsel %vm1204_vm15, %v6089_v47, %v1076_v28  ;;  %v349_v11 = vunpack.c.0.s8 %v6261_v27  ;;  %v357_v63 = vunpack.c.1.s8 %v6261_v27  ;;  %v6278_v56 = vunpack.c.0.s8 %v6264_v39  ;;  %3568 = vmatprep.subr.bf16.mxu0 %v4850_v20  ;;  %v4853_v49 = vld [vmem:[#allocation7 + $0x36c] ss:$16 sps:$4 sm:$0xff]  }
 0x141   : > { %v6280_v33 = vpack.c.bf16 %v1404_v54, %v1396_v40  ;;  %vm479_vm0 = vcmp.eq.s32.totalorder %v347_v30, 1  ;;  %vm487_vm1 = vcmp.eq.s32.totalorder %v355_v18, 1  ;;  %vm883_vm2 = vcmp.eq.s32.totalorder %v347_v30, 2  ;;  %3678 = vmatpush2.bf16.msra.mxu1 %v4839_v2  ;;  %v4854_v2 = vld [vmem:[#allocation7 + $0x148] ss:$16 sps:$4 sm:$0xff]  }
 0x142   : > { %v755_v6 = vsel %vm479_vm0, %v5943_v21, %v5953_v46  ;;  %v763_v35 = vsel %vm487_vm1, %v5943_v21, %v5953_v46  ;;  %vm891_vm3 = vcmp.eq.s32.totalorder %v355_v18, 2  ;;  %vm1211_vm4 = vcmp.eq.s32.totalorder %v347_v30, 3  ;;  %3679 = vmatprep.subr.bf16.mxu1 %v4847_v24  ;;  %v4862_v24 = vld [vmem:[#allocation7 + $0x12c] ss:$16 sps:$4 sm:$0xff]  }
 0x143   : > { %7183 = vst [vmem:[#allocation38_spill] sm:$0xff] %v6280_v33  ;;  %3494 = vmatmul.mubr.bf16.gmra.mxu1 %v6280_v33  ;;  %v1083_v40 = vsel %vm883_vm2, %v5960_v34, %v755_v6  ;;  %v1091_v20 = vsel %vm891_vm3, %v5960_v34, %v763_v35  ;;  %vm1219_vm5 = vcmp.eq.s32.totalorder %v355_v18, 3  ;;  %vm481_vm6 = vcmp.eq.s32.totalorder %v349_v11, 1  ;;  %3569 = vmatpush2.bf16.msra.mxu0 %v4848_v53  ;;  %v4851_v53 = vld [vmem:[#allocation7 + $0x368] ss:$16 sps:$4 sm:$0xff]  }
 0x144   : > { %v1411_v28 = vsel %vm1211_vm4, %v5975_v29, %v1083_v40  ;;  %v1419_v54 = vsel %vm1219_vm5, %v5975_v29, %v1091_v20  ;;  %vm489_vm7 = vcmp.eq.s32.totalorder %v357_v63, 1  ;;  %v757_v30 = vsel %vm481_vm6, %v5982_v51, %v5989_v57  ;;  %3570 = vmatprep.subr.bf16.mxu0 %v4856_v42  ;;  %v4859_v40 = vld [vmem:[#allocation7 + $0x34c] ss:$16 sps:$4 sm:$0xff]  }
 0x145   : > { %v6293_v38 = vpack.c.bf16 %v1419_v54, %v1411_v28  ;;  %v765_v6 = vsel %vm489_vm7, %v5982_v51, %v5989_v57  ;;  %vm885_vm8 = vcmp.eq.s32.totalorder %v349_v11, 2  ;;  %vm893_vm9 = vcmp.eq.s32.totalorder %v357_v63, 2  ;;  %3680 = vmatpush2.bf16.msra.mxu1 %v4845_v10  ;;  %v6305_v10 = vld [vmem:[%s5289_s22 + $0xb0] sm:$0xff]  ;;  %v4860_v54 = vld [vmem:[#allocation7 + $0x128] ss:$16 sps:$4 sm:$0xff]  }
 0x146   : > { %v1085_v18 = vsel %vm885_vm8, %v5997_v61, %v757_v30  ;;  %v1093_v35 = vsel %vm893_vm9, %v5997_v61, %v765_v6  ;;  %vm1213_vm10 = vcmp.eq.s32.totalorder %v349_v11, 3  ;;  %vm1221_vm11 = vcmp.eq.s32.totalorder %v357_v63, 3  ;;  %3681 = vmatprep.subr.bf16.mxu1 %v4853_v49  ;;  %v4868_v63 = vld [vmem:[#allocation7 + $0x10c] ss:$16 sps:$4 sm:$0xff]   ;;  %v4857_v6 = vld [vmem:[#allocation7 + $0x348] ss:$16 sps:$4 sm:$0xff]  }
 0x147   : > { %7184 = vst [vmem:[#allocation39_spill] sm:$0xff] %v6293_v38  ;;  %3390 = vmatprep.mubr.bf16.mxu0 %v6293_v38  ;;  %v1413_v42 = vsel %vm1213_vm10, %v6011_v0, %v1085_v18  ;;  %v1421_v20 = vsel %vm1221_vm11, %v6011_v0, %v1093_v35  ;;  %v354_v28 = vunpack.c.1.s8 %v6264_v39  ;;  %vm478_vm12 = vcmp.eq.s32.totalorder %v6278_v56, 1  ;;  %3571 = vmatpush2.bf16.msra.mxu0 %v4854_v2  ;;  %v4874_v33 = vld [vmem:[#allocation7 + $0x4ec] ss:$16 sps:$4 sm:$0xff]  }
 0x148   : > { %v6307_v30 = vpack.c.bf16 %v1421_v20, %v1413_v42  ;;  %v754_v11 = vsel %vm478_vm12, %v6027_v50, %v6030_v45  ;;  %vm882_vm13 = vcmp.eq.s32.totalorder %v6278_v56, 2  ;;  %vm1210_vm14 = vcmp.eq.s32.totalorder %v6278_v56, 3  ;;  %3572 = vmatprep.subr.bf16.mxu0 %v4862_v24  ;;  %v4865_v24 = vld [vmem:[#allocation7 + $0x32c] ss:$16 sps:$4 sm:$0xff]  }
 0x149   : > { %vm486_vm15 = vcmp.eq.s32.totalorder %v354_v28, 1  ;;  %vm890_vm0 = vcmp.eq.s32.totalorder %v354_v28, 2  ;;  %v1082_v49 = vsel %vm882_vm13, %v6035_v60, %v754_v11  ;;  %vm1218_vm1 = vcmp.eq.s32.totalorder %v354_v28, 3  ;;  %3682 = vmatpush2.bf16.msra.mxu1 %v4851_v53 }
 0x14a   : > { %7185 = vst [vmem:[#allocation40_spill] sm:$0xff] %v6307_v30  ;;  %3503 = vmatprep.mubr.bf16.mxu1 %v6307_v30  ;;  %v762_v2 = vsel %vm486_vm15, %v6027_v50, %v6030_v45  ;;  %v1410_v18 = vsel %vm1210_vm14, %v6053_v58, %v1082_v49  ;;  %v348_v35 = vunpack.c.0.s8 %v6305_v10  ;;  %v356_v56 = vunpack.c.1.s8 %v6305_v10  ;;  %3683 = vmatprep.subr.bf16.mxu1 %v4859_v40  ;;  %v4866_v49 = vld [vmem:[#allocation7 + $0x108] ss:$16 sps:$4 sm:$0xff]  }
 0x14b   : > { %v1090_v42 = vsel %vm890_vm0, %v6035_v60, %v762_v2  ;;  %v363_v20 = vunpack.c.2.s8 %v6255_v22  ;;  %v371_v53 = vunpack.c.3.s8 %v6255_v22  ;;  %v365_v28 = vunpack.c.2.s8 %v6261_v27  ;;  %3573 = vmatpush2.bf16.msra.mxu0 %v4860_v54  ;;  %v4863_v22 = vld [vmem:[#allocation7 + $0x328] ss:$16 sps:$4 sm:$0xff]  }
 0x14c   : > { %v1418_v11 = vsel %vm1218_vm1, %v6053_v58, %v1090_v42  ;;  %vm480_vm2 = vcmp.eq.s32.totalorder %v348_v35, 1  ;;  %vm488_vm3 = vcmp.eq.s32.totalorder %v356_v56, 1  ;;  %vm884_vm4 = vcmp.eq.s32.totalorder %v348_v35, 2  ;;  %3574 = vmatprep.subr.bf16.mxu0 %v4868_v63  ;;  %v4871_v63 = vld [vmem:[#allocation7 + $0x30c] ss:$16 sps:$4 sm:$0xff]  }
 0x14d   : > { %v6325_v30 = vpack.c.bf16 %v1418_v11, %v1410_v18  ;;  %v756_v40 = vsel %vm480_vm2, %v6058_v62, %v6067_v5  ;;  %v764_v2 = vsel %vm488_vm3, %v6058_v62, %v6067_v5  ;;  %vm892_vm5 = vcmp.eq.s32.totalorder %v356_v56, 2  ;;  %3684 = vmatpush2.bf16.msra.mxu1 %v4857_v6 }
 0x14e   : > { %v1084_v54 = vsel %vm884_vm4, %v6072_v36, %v756_v40  ;;  %v1092_v42 = vsel %vm892_vm5, %v6072_v36, %v764_v2  ;;  %vm1212_vm6 = vcmp.eq.s32.totalorder %v348_v35, 3  ;;  %vm1220_vm7 = vcmp.eq.s32.totalorder %v356_v56, 3  ;;  %3685 = vmatprep.subr.bf16.mxu1 %v4865_v24  ;;  %v4869_v56 = vld [vmem:[#allocation7 + $0x308] ss:$16 sps:$4 sm:$0xff]  }
 0x14f   : > { %7186 = vst [vmem:[#allocation41_spill] sm:$0xff] %v6325_v30  ;;  %3391 = vmatmul.mubr.bf16.gmra.mxu0 %v6325_v30  ;;  %v1412_v18 = vsel %vm1212_vm6, %v6089_v47, %v1084_v54  ;;  %v1420_v11 = vsel %vm1220_vm7, %v6089_v47, %v1092_v42  ;;  %vm495_vm8 = vcmp.eq.s32.totalorder %v363_v20, 1  ;;  %vm503_vm9 = vcmp.eq.s32.totalorder %v371_v53, 1  ;;  %v4877_v42 = vld [vmem:[#allocation7 + $0x6ec] ss:$16 sps:$4 sm:$0xff]  }
 0x150   : > { %v6336_v38 = vpack.c.bf16 %v1420_v11, %v1412_v18  ;;  %v771_v6 = vsel %vm495_vm8, %v5943_v21, %v5953_v46  ;;  %v779_v40 = vsel %vm503_vm9, %v5943_v21, %v5953_v46  ;;  %vm899_vm10 = vcmp.eq.s32.totalorder %v363_v20, 2  ;;  %3575 = vmatpush2.bf16.msra.mxu0 %v4866_v49 }
 0x151   : > { %vm907_vm11 = vcmp.eq.s32.totalorder %v371_v53, 2  ;;  %v1099_v35 = vsel %vm899_vm10, %v5960_v34, %v771_v6  ;;  %vm1227_vm12 = vcmp.eq.s32.totalorder %v363_v20, 3  ;;  %vm1235_vm13 = vcmp.eq.s32.totalorder %v371_v53, 3  ;;  %3686 = vmatpush2.bf16.msra.mxu1 %v4863_v22  ;;  %3770 = vmatprep.subr.bf16.mxu0 %v4874_v33 }
 0x152   : > { %7187 = vst [vmem:[#allocation42_spill] sm:$0xff] %v6336_v38  ;;  %3504 = vmatmul.mubr.bf16.gmra.mxu1 %v6336_v38  ;;  %v1107_v24 = vsel %vm907_vm11, %v5960_v34, %v779_v40  ;;  %v1427_v2 = vsel %vm1227_vm12, %v5975_v29, %v1099_v35  ;;  %v373_v54 = vunpack.c.3.s8 %v6261_v27  ;;  %vm497_vm14 = vcmp.eq.s32.totalorder %v365_v28, 1  ;;  %3687 = vmatprep.subr.bf16.mxu1 %v4871_v63 }
 0x153   : > { %v1435_v49 = vsel %vm1235_vm13, %v5975_v29, %v1107_v24  ;;  %v773_v20 = vsel %vm497_vm14, %v5982_v51, %v5989_v57  ;;  %vm901_vm15 = vcmp.eq.s32.totalorder %v365_v28, 2  ;;  %vm1229_vm0 = vcmp.eq.s32.totalorder %v365_v28, 3 }
 0x154   : > { %v6350_v53 = vpack.c.bf16 %v1435_v49, %v1427_v2  ;;  %vm505_vm1 = vcmp.eq.s32.totalorder %v373_v54, 1  ;;  %vm909_vm2 = vcmp.eq.s32.totalorder %v373_v54, 2  ;;  %v1101_v33 = vsel %vm901_vm15, %v5997_v61, %v773_v20 }
 0x155   : > { %v781_v27 = vsel %vm505_vm1, %v5982_v51, %v5989_v57  ;;  %vm1237_vm3 = vcmp.eq.s32.totalorder %v373_v54, 3  ;;  %v1429_v63 = vsel %vm1229_vm0, %v6011_v0, %v1101_v33  ;;  %v362_v18 = vunpack.c.2.s8 %v6264_v39  ;;  %3688 = vmatpush2.bf16.msra.mxu1 %v4869_v56  ;;  %v6382_v33 = vld [vmem:[%s5289_s22 + $0xe8] sm:$0xff] }
 0x156   : > { %7188 = vst [vmem:[#allocation43_spill] sm:$0xff] %v6350_v53  ;;  %3400 = vmatprep.mubr.bf16.mxu0 %v6350_v53  ;;  %v1109_v28 = vsel %vm909_vm2, %v5997_v61, %v781_v27  ;;  %v370_v11 = vunpack.c.3.s8 %v6264_v39  ;;  %v364_v6 = vunpack.c.2.s8 %v6305_v10  ;;  %v372_v40 = vunpack.c.3.s8 %v6305_v10  ;;  %3883 = vmatprep.subr.bf16.mxu1 %v4877_v42 }
 0x157   : > { %v1437_v24 = vsel %vm1237_vm3, %v6011_v0, %v1109_v28  ;;  %vm494_vm4 = vcmp.eq.s32.totalorder %v362_v18, 1  ;;  %vm898_vm5 = vcmp.eq.s32.totalorder %v362_v18, 2  ;;  %vm1226_vm6 = vcmp.eq.s32.totalorder %v362_v18, 3  ;;  %v6390_v28 = vld [vmem:[%s5289_s22 + $0xf8] sm:$0xff] }
 0x158   : > { %v6367_v56 = vpack.c.bf16 %v1437_v24, %v1429_v63  ;;  %vm502_vm7 = vcmp.eq.s32.totalorder %v370_v11, 1  ;;  %v770_v2 = vsel %vm494_vm4, %v6027_v50, %v6030_v45  ;;  %vm906_vm8 = vcmp.eq.s32.totalorder %v370_v11, 2 }
 0x159   : > { %v778_v39 = vsel %vm502_vm7, %v6027_v50, %v6030_v45  ;;  %v1098_v10 = vsel %vm898_vm5, %v6035_v60, %v770_v2  ;;  %vm1234_vm9 = vcmp.eq.s32.totalorder %v370_v11, 3  ;;  %vm496_vm10 = vcmp.eq.s32.totalorder %v364_v6, 1  ;;  %v6393_v11 = vld [vmem:[%s5289_s22 + $0xe0] sm:$0xff] }
 0x15a   : > { %7191 = vst [vmem:[#allocation46_spill] sm:$0xff] %v6367_v56  ;;  %3513 = vmatprep.mubr.bf16.mxu1 %v6367_v56  ;;  %v1106_v42 = vsel %vm906_vm8, %v6035_v60, %v778_v39  ;;  %v1426_v49 = vsel %vm1226_vm6, %v6053_v58, %v1098_v10  ;;  %vm504_vm11 = vcmp.eq.s32.totalorder %v372_v40, 1  ;;  %v772_v20 = vsel %vm496_vm10, %v6058_v62, %v6067_v5 }
 0x15b   : > { %v6353_v22 = vpop.f32.mrf.mxu0  ;;  %v1434_v63 = vsel %vm1234_vm9, %v6053_v58, %v1106_v42  ;;  %v780_v18 = vsel %vm504_vm11, %v6058_v62, %v6067_v5  ;;  %vm900_vm12 = vcmp.eq.s32.totalorder %v364_v6, 2  ;;  %vm908_vm13 = vcmp.eq.s32.totalorder %v372_v40, 2 }
 0x15c   : > { %7189 = vst [vmem:[#allocation44_spill] sm:$0xff] %v6353_v22  ;;  %v6374_v54 = vpop.f32.mrf.mxu1  ;;  %v6397_v2 = vpack.c.bf16 %v1434_v63, %v1426_v49  ;;  %v1100_v39 = vsel %vm900_vm12, %v6072_v36, %v772_v20  ;;  %v1108_v10 = vsel %vm908_vm13, %v6072_v36, %v780_v18  ;;  %vm1228_vm14 = vcmp.eq.s32.totalorder %v364_v6, 3 }
 0x15d   : > { %v6364_v35 = vpop.f32.mrf.mxu0  ;;  %7192 = vst [vmem:[#allocation47_spill] sm:$0xff] %v6374_v54  ;;  %vm1236_vm15 = vcmp.eq.s32.totalorder %v372_v40, 3  ;;  %v1428_v42 = vsel %vm1228_vm14, %v6089_v47, %v1100_v39  ;;  %v379_v56 = vunpack.c.0.s8 %v6382_v33  ;;  %v387_v38 = vunpack.c.1.s8 %v6382_v33 }
 0x15e   : > { %7190 = vst [vmem:[#allocation45_spill] sm:$0xff] %v6364_v35  ;;  %v6395_v24 = vpop.f32.mrf.mxu1  ;;  %7195 = vst [vmem:[#allocation50_spill] sm:$0xff] %v6397_v2  ;;  %3401 = vmatmul.mubr.bf16.gmra.mxu0 %v6397_v2  ;;  %v1436_v30 = vsel %vm1236_vm15, %v6089_v47, %v1108_v10  ;;  %v381_v49 = vunpack.c.0.s8 %v6390_v28  ;;  %v389_v20 = vunpack.c.1.s8 %v6390_v28  ;;  %v378_v63 = vunpack.c.0.s8 %v6393_v11 }
 0x15f   : > { %v6384_v27 = vpop.f32.mrf.mxu0  ;;  %7194 = vst [vmem:[#allocation49_spill] sm:$0xff] %v6395_v24  ;;  %v6413_v40 = vpack.c.bf16 %v1436_v30, %v1428_v42  ;;  %vm511_vm0 = vcmp.eq.s32.totalorder %v379_v56, 1  ;;  %vm519_vm1 = vcmp.eq.s32.totalorder %v387_v38, 1  ;;  %vm915_vm2 = vcmp.eq.s32.totalorder %v379_v56, 2 }
 0x160   : > { %7193 = vst [vmem:[#allocation48_spill] sm:$0xff] %v6384_v27  ;;  %v6404_v53 = vpop.f32.mrf.mxu1  ;;  %v787_v18 = vsel %vm511_vm0, %v5943_v21, %v5953_v46  ;;  %v795_v39 = vsel %vm519_vm1, %v5943_v21, %v5953_v46  ;;  %vm923_vm3 = vcmp.eq.s32.totalorder %v387_v38, 2  ;;  %vm1243_vm4 = vcmp.eq.s32.totalorder %v379_v56, 3 }
 0x161   : > { %7196 = vst [vmem:[#allocation51_spill] sm:$0xff] %v6404_v53  ;;  %v6411_v6 = vpop.f32.mrf.mxu0  ;;  %7198 = vst [vmem:[#allocation53_spill] sm:$0xff] %v6413_v40  ;;  %3514 = vmatmul.mubr.bf16.gmra.mxu1 %v6413_v40  ;;  %v1115_v10 = vsel %vm915_vm2, %v5960_v34, %v787_v18  ;;  %v1123_v2 = vsel %vm923_vm3, %v5960_v34, %v795_v39  ;;  %vm1251_vm5 = vcmp.eq.s32.totalorder %v387_v38, 3  ;;  %vm513_vm6 = vcmp.eq.s32.totalorder %v381_v49, 1 }
 0x162   : > { %7197 = vst [vmem:[#allocation52_spill] sm:$0xff] %v6411_v6  ;;  %v6422_v30 = vpop.f32.mrf.mxu1  ;;  %v1443_v42 = vsel %vm1243_vm4, %v5975_v29, %v1115_v10  ;;  %v1451_v53 = vsel %vm1251_vm5, %v5975_v29, %v1123_v2  ;;  %vm521_vm7 = vcmp.eq.s32.totalorder %v389_v20, 1  ;;  %v789_v6 = vsel %vm513_vm6, %v5982_v51, %v5989_v57 }
 0x163   : > { %7199 = vst [vmem:[#allocation54_spill] sm:$0xff] %v6422_v30  ;;  %v6428_v56 = vpop.f32.mrf.mxu0  ;;  %v6430_v40 = vpack.c.bf16 %v1451_v53, %v1443_v42  ;;  %v797_v18 = vsel %vm521_vm7, %v5982_v51, %v5989_v57  ;;  %vm917_vm8 = vcmp.eq.s32.totalorder %v381_v49, 2  ;;  %vm925_vm9 = vcmp.eq.s32.totalorder %v389_v20, 2  ;;  %v6441_v42 = vld [vmem:[%s5289_s22 + $0xf0] sm:$0xff] }
 0x164   : > { %v1117_v38 = vsel %vm917_vm8, %v5997_v61, %v789_v6  ;;  %v1125_v39 = vsel %vm925_vm9, %v5997_v61, %v797_v18  ;;  %vm1245_vm10 = vcmp.eq.s32.totalorder %v381_v49, 3  ;;  %vm1253_vm11 = vcmp.eq.s32.totalorder %v389_v20, 3  ;;  %v6443_v30 = vpop.f32.mrf.mxu1 }
 0x165   : > { %7200 = vst [vmem:[#allocation55_spill] sm:$0xff] %v6430_v40  ;;  %3410 = vmatprep.mubr.bf16.mxu0 %v6430_v40  ;;  %v1445_v2 = vsel %vm1245_vm10, %v6011_v0, %v1117_v38  ;;  %v1453_v10 = vsel %vm1253_vm11, %v6011_v0, %v1125_v39  ;;  %v386_v53 = vunpack.c.1.s8 %v6393_v11  ;;  %vm510_vm12 = vcmp.eq.s32.totalorder %v378_v63, 1  ;;  %v6445_v24 = vpop.f32.mrf.mxu0 }
 0x166   : > { %v6447_v6 = vpack.c.bf16 %v1453_v10, %v1445_v2  ;;  %v786_v49 = vsel %vm510_vm12, %v6027_v50, %v6030_v45  ;;  %vm914_vm13 = vcmp.eq.s32.totalorder %v378_v63, 2  ;;  %vm1242_vm14 = vcmp.eq.s32.totalorder %v378_v63, 3  ;;  %v6458_v10 = vpop.f32.mrf.mxu1 }
 0x167   : > { %vm518_vm15 = vcmp.eq.s32.totalorder %v386_v53, 1  ;;  %vm922_vm0 = vcmp.eq.s32.totalorder %v386_v53, 2  ;;  %v1114_v20 = vsel %vm914_vm13, %v6035_v60, %v786_v49  ;;  %vm1250_vm1 = vcmp.eq.s32.totalorder %v386_v53, 3 }
 0x168   : > { %7201 = vst [vmem:[#allocation56_spill] sm:$0xff] %v6447_v6  ;;  %3523 = vmatprep.mubr.bf16.mxu1 %v6447_v6  ;;  %v794_v18 = vsel %vm518_vm15, %v6027_v50, %v6030_v45  ;;  %v1442_v38 = vsel %vm1242_vm14, %v6053_v58, %v1114_v20  ;;  %v380_v39 = vunpack.c.0.s8 %v6441_v42  ;;  %v388_v2 = vunpack.c.1.s8 %v6441_v42  ;;  %v6464_v6 = vpop.f32.mrf.mxu0  ;;  %v6475_v22 = vpop.f32.mrf.mxu1 }
 0x169   : > { %v1122_v63 = vsel %vm922_vm0, %v6035_v60, %v794_v18  ;;  %v395_v40 = vunpack.c.2.s8 %v6382_v33  ;;  %v403_v49 = vunpack.c.3.s8 %v6382_v33  ;;  %v397_v53 = vunpack.c.2.s8 %v6390_v28 }
 0x16a   : > { %v1450_v27 = vsel %vm1250_vm1, %v6053_v58, %v1122_v63  ;;  %vm512_vm2 = vcmp.eq.s32.totalorder %v380_v39, 1  ;;  %vm520_vm3 = vcmp.eq.s32.totalorder %v388_v2, 1  ;;  %vm916_vm4 = vcmp.eq.s32.totalorder %v380_v39, 2  ;;  %v6480_v63 = vpop.f32.mrf.mxu0 }
 0x16b   : > { %v6467_v20 = vpack.c.bf16 %v1450_v27, %v1442_v38  ;;  %v788_v54 = vsel %vm512_vm2, %v6058_v62, %v6067_v5  ;;  %v796_v18 = vsel %vm520_vm3, %v6058_v62, %v6067_v5  ;;  %vm924_vm5 = vcmp.eq.s32.totalorder %v388_v2, 2 }
 0x16c   : > { %v1116_v33 = vsel %vm916_vm4, %v6072_v36, %v788_v54  ;;  %v1124_v35 = vsel %vm924_vm5, %v6072_v36, %v796_v18  ;;  %vm1244_vm6 = vcmp.eq.s32.totalorder %v380_v39, 3  ;;  %vm1252_vm7 = vcmp.eq.s32.totalorder %v388_v2, 3 }
 0x16d   : > { %3411 = vmatmul.mubr.bf16.gmra.mxu0 %v6467_v20  ;;  %v1444_v27 = vsel %vm1244_vm6, %v6089_v47, %v1116_v33  ;;  %v1452_v38 = vsel %vm1252_vm7, %v6089_v47, %v1124_v35  ;;  %vm527_vm8 = vcmp.eq.s32.totalorder %v395_v40, 1  ;;  %vm535_vm9 = vcmp.eq.s32.totalorder %v403_v49, 1 }
 0x16e   : > { %v6482_v9 = vpack.c.bf16 %v1452_v38, %v1444_v27  ;;  %v803_v54 = vsel %vm527_vm8, %v5943_v21, %v5953_v46  ;;  %v811_v39 = vsel %vm535_vm9, %v5943_v21, %v5953_v46  ;;  %vm931_vm10 = vcmp.eq.s32.totalorder %v395_v40, 2  ;;  %v6493_v27 = vpop.f32.mrf.mxu1 }
 0x16f   : > { %vm939_vm11 = vcmp.eq.s32.totalorder %v403_v49, 2  ;;  %v1131_v2 = vsel %vm931_vm10, %v5960_v34, %v803_v54  ;;  %vm1259_vm12 = vcmp.eq.s32.totalorder %v395_v40, 3  ;;  %vm1267_vm13 = vcmp.eq.s32.totalorder %v403_v49, 3 }
 0x170   : > { %3524 = vmatmul.mubr.bf16.gmra.mxu1 %v6482_v9  ;;  %v1139_v35 = vsel %vm939_vm11, %v5960_v34, %v811_v39  ;;  %v1459_v18 = vsel %vm1259_vm12, %v5975_v29, %v1131_v2  ;;  %v405_v33 = vunpack.c.3.s8 %v6390_v28  ;;  %vm529_vm14 = vcmp.eq.s32.totalorder %v397_v53, 1 }
 0x171   : > { %v1467_v38 = vsel %vm1267_vm13, %v5975_v29, %v1139_v35  ;;  %v805_v21 = vsel %vm529_vm14, %v5982_v51, %v5989_v57  ;;  %vm933_vm15 = vcmp.eq.s32.totalorder %v397_v53, 2  ;;  %vm1261_vm0 = vcmp.eq.s32.totalorder %v397_v53, 3 }
 0x172   : > { %v6498_v46 = vpop.f32.mrf.mxu0  ;;  %v6500_v40 = vpack.c.bf16 %v1467_v38, %v1459_v18  ;;  %vm537_vm1 = vcmp.eq.s32.totalorder %v405_v33, 1  ;;  %vm941_vm2 = vcmp.eq.s32.totalorder %v405_v33, 2  ;;  %v1133_v34 = vsel %vm933_vm15, %v5997_v61, %v805_v21 }
 0x173   : > { %v813_v28 = vsel %vm537_vm1, %v5982_v51, %v5989_v57  ;;  %vm1269_vm3 = vcmp.eq.s32.totalorder %v405_v33, 3  ;;  %v1461_v49 = vsel %vm1261_vm0, %v6011_v0, %v1133_v34  ;;  %v394_v29 = vunpack.c.2.s8 %v6393_v11 }
 0x174   : > { %3420 = vmatprep.mubr.bf16.mxu0 %v6500_v40  ;;  %v1141_v53 = vsel %vm941_vm2, %v5997_v61, %v813_v28  ;;  %v402_v54 = vunpack.c.3.s8 %v6393_v11  ;;  %v396_v39 = vunpack.c.2.s8 %v6441_v42  ;;  %v404_v2 = vunpack.c.3.s8 %v6441_v42  ;;  %v3148_v18 = vpop.f32.mrf.mxu0 }
 0x175   : > { %v1469_v38 = vsel %vm1269_vm3, %v6011_v0, %v1141_v53  ;;  %vm526_vm4 = vcmp.eq.s32.totalorder %v394_v29, 1  ;;  %vm930_vm5 = vcmp.eq.s32.totalorder %v394_v29, 2  ;;  %vm1258_vm6 = vcmp.eq.s32.totalorder %v394_v29, 3 }
 0x176   : > { %v3259_v35 = vpop.f32.mrf.mxu1  ;;  %v6513_v51 = vpack.c.bf16 %v1469_v38, %v1461_v49  ;;  %vm534_vm7 = vcmp.eq.s32.totalorder %v402_v54, 1  ;;  %v802_v57 = vsel %vm526_vm4, %v6027_v50, %v6030_v45  ;;  %vm938_vm8 = vcmp.eq.s32.totalorder %v402_v54, 2  ;;  %v3150_v34 = vpop.f32.mrf.mxu0 }
 0x177   : > { %v810_v61 = vsel %vm534_vm7, %v6027_v50, %v6030_v45  ;;  %v1130_v11 = vsel %vm930_vm5, %v6035_v60, %v802_v57  ;;  %vm1266_vm9 = vcmp.eq.s32.totalorder %v402_v54, 3  ;;  %vm528_vm10 = vcmp.eq.s32.totalorder %v396_v39, 1  ;;  %v1790_v45 = vld [vmem:[%s7100_s3] sm:$0xf] }
 0x178   : > { %v3261_v42 = vpop.f32.mrf.mxu1  ;;  %3533 = vmatprep.mubr.bf16.mxu1 %v6513_v51  ;;  %v1138_v0 = vsel %vm938_vm8, %v6035_v60, %v810_v61  ;;  %v1458_v33 = vsel %vm1258_vm6, %v6053_v58, %v1130_v11  ;;  %vm536_vm11 = vcmp.eq.s32.totalorder %v404_v2, 1  ;;  %v804_v21 = vsel %vm528_vm10, %v6058_v62, %v6067_v5  ;;  %v6544_v38 = vpop.f32.mrf.mxu0 }
 0x179   : > { %v1466_v28 = vsel %vm1266_vm9, %v6053_v58, %v1138_v0  ;;  %v812_v50 = vsel %vm536_vm11, %v6058_v62, %v6067_v5  ;;  %vm932_vm12 = vcmp.eq.s32.totalorder %v396_v39, 2  ;;  %vm940_vm13 = vcmp.eq.s32.totalorder %v404_v2, 2  ;;  %v4880_v0 = vld [vmem:[#allocation7 + $0x4cc] ss:$16 sps:$4 sm:$0xff]  }
 0x17a   : > { %v6531_v49 = vpack.c.bf16 %v1466_v28, %v1458_v33  ;;  %v1132_v60 = vsel %vm932_vm12, %v6072_v36, %v804_v21  ;;  %v1140_v29 = vsel %vm940_vm13, %v6072_v36, %v812_v50  ;;  %vm1260_vm14 = vcmp.eq.s32.totalorder %v396_v39, 3  ;;  %v3263_v58 = vpop.f32.mrf.mxu1 }
 0x17b   : > { %vm1268_vm15 = vcmp.eq.s32.totalorder %v404_v2, 3  ;;  %v1460_v53 = vsel %vm1260_vm14, %v6089_v47, %v1132_v60  ;;  %v6539_v5 = vrot.slane %v1790_v45, %v5303_v48  ;;  %v6542_v54 = vrot.slane %v1790_v45, %v5299_v44  ;;  %v4883_v45 = vld [vmem:[#allocation7 + $0x6cc] ss:$16 sps:$4 sm:$0xff]  }
 0x17c   : > { %3421 = vmatmul.mubr.bf16.gmra.mxu0 %v6531_v49  ;;  %v1468_v62 = vsel %vm1268_vm15, %v6089_v47, %v1140_v29  ;;  %v6556_v48 = vpop.f32.mrf.mxu1  ;;  %v4886_v60 = vld [vmem:[#allocation7 + $0x4ac] ss:$16 sps:$4 sm:$0xff]  }
 0x17d   : > { %v6546_v57 = vpack.c.bf16 %v1468_v62, %v1460_v53  ;;  %3576 = vmatprep.mubr.bf16.mxu0 %v5385_v32  ;;  %v3137_v36 = vadd.f32 %v6428_v56, %v6539_v5  ;;  %v3139_v39 = vadd.f32 %v6445_v24, %v6542_v54  ;;  %v3141_v47 = vadd.f32 %v6464_v6, %v6539_v5  ;;  %v4872_v24 = vld [vmem:[#allocation7 + $0x4e8] ss:$16 sps:$4 sm:$0xff]  }
 0x17e   : > { %v3147_v6 = vadd.f32 %v6498_v46, %v6539_v5  ;;  %v3149_v61 = vadd.f32 %v3148_v18, %v6542_v54  ;;  %v3151_v11 = vadd.f32 %v3150_v34, %v6539_v5  ;;  %v4875_v46 = vld [vmem:[#allocation7 + $0x6e8] ss:$16 sps:$4 sm:$0xff]  }
 0x17f   : > { %3534 = vmatmul.mubr.bf16.gmra.mxu1 %v6546_v57  ;;  %v6560_v44 = vadd.f32 %v6443_v30, %v3137_v36  ;;  %v6563_v32 = vadd.f32 %v6458_v10, %v3139_v39  ;;  %v6566_v56 = vadd.f32 %v6475_v22, %v3141_v47  ;;  %v4878_v34 = vld [vmem:[#allocation7 + $0x4c8] ss:$16 sps:$4 sm:$0xff]   ;;  %v4892_v36 = vld [vmem:[#allocation7 + $0x48c] ss:$16 sps:$4 sm:$0xff]  }
 0x180   : > { %3689 = vmatprep.mubr.bf16.mxu1 %v5441_v4  ;;  %v6573_v33 = vadd.f32 %v3259_v35, %v3147_v6  ;;  %v6575_v10 = vadd.f32 %v3261_v42, %v3149_v61  ;;  %v6577_v21 = vadd.f32 %v3263_v58, %v3151_v11  ;;  %v4884_v62 = vld [vmem:[#allocation7 + $0x4a8] ss:$16 sps:$4 sm:$0xff]  }
 0x181   : > { %v4887_v47 = vld [vmem:[#allocation7 + $0x6a8] ss:$16 sps:$4 sm:$0xff]  }
 0x182   : > { %v3156_v2 = vpop.f32.mrf.mxu0  ;;  %v4893_v61 = vld [vmem:[#allocation7 + $0x688] ss:$16 sps:$4 sm:$0xff]  }
 0x183   : > { %v3157_v4 = vadd.f32 %v3156_v2, %v6539_v5  ;;  %v4895_v2 = vld [vmem:[#allocation7 + $0x68c] ss:$16 sps:$4 sm:$0xff]   ;;  %v4896_v11 = vld [vmem:[#allocation7 + $0x468] ss:$16 sps:$4 sm:$0xff]  }
 0x184   : > { %v3158_v30 = vpop.f32.mrf.mxu0  ;;  %3577 = vmatmul.mubr.bf16.vlgmr.msra.gmra.mxu0 %v5484_v31  ;;  %v4881_v31 = vld [vmem:[#allocation7 + $0x6c8] ss:$16 sps:$4 sm:$0xff]  }
 0x185   : > { %v3159_v28 = vadd.f32 %v3158_v30, %v6542_v54  ;;  %3771 = vmatpush1.bf16.msra.mxu0 %v4872_v24  ;;  %3586 = vmatprep.mubr.bf16.mxu0 %v5529_v16  ;;  %v4889_v16 = vld [vmem:[#allocation7 + $0x6ac] ss:$16 sps:$4 sm:$0xff]  }
 0x186   : > { %v3269_v22 = vpop.f32.mrf.mxu1  ;;  %v3160_v18 = vpop.f32.mrf.mxu0  ;;  %3772 = vmatprep.subr.bf16.mxu0 %v4880_v0  ;;  %v4901_v0 = vld [vmem:[#allocation7 + $0x66c] ss:$16 sps:$4 sm:$0xff]  }
 0x187   : > { %v6581_v50 = vadd.f32 %v3269_v22, %v3157_v4  ;;  %v3161_v42 = vadd.f32 %v3160_v18, %v6539_v5  ;;  %3690 = vmatmul.mubr.bf16.vlgmr.msra.gmra.mxu1 %v5527_v1  ;;  %v4890_v1 = vld [vmem:[#allocation7 + $0x488] ss:$16 sps:$4 sm:$0xff]   ;;  %v4904_v30 = vld [vmem:[#allocation7 + $0x44c] ss:$16 sps:$4 sm:$0xff]  }
 0x188   : > { %v3271_v35 = vpop.f32.mrf.mxu1  ;;  %3884 = vmatpush1.bf16.msra.mxu1 %v4875_v46  ;;  %3699 = vmatprep.mubr.bf16.mxu1 %v5545_v37  ;;  %v6591_v39 = vpop.f32.mrf.mxu0  ;;  %v4898_v37 = vld [vmem:[#allocation7 + $0x46c] ss:$16 sps:$4 sm:$0xff]   ;;  %v4899_v46 = vld [vmem:[#allocation7 + $0x668] ss:$16 sps:$4 sm:$0xff]  }
 0x189   : > { %v6585_v29 = vadd.f32 %v3271_v35, %v3159_v28  ;;  %3885 = vmatprep.subr.bf16.mxu1 %v4883_v45  ;;  %3773 = vmatpush1.bf16.msra.mxu0 %v4878_v34  ;;  %v4902_v34 = vld [vmem:[#allocation7 + $0x448] ss:$16 sps:$4 sm:$0xff]   ;;  %v4907_v45 = vld [vmem:[#allocation7 + $0x64c] ss:$16 sps:$4 sm:$0xff]  }
 0x18a   : > { %v3273_v53 = vpop.f32.mrf.mxu1  ;;  %3774 = vmatprep.subr.bf16.mxu0 %v4886_v60  ;;  %v4910_v60 = vld [vmem:[#allocation7 + $0x42c] ss:$16 sps:$4 sm:$0xff]  }
 0x18b   : > { %v6589_v58 = vadd.f32 %v3273_v53, %v3161_v42 }
 0x18c   : > { %3886 = vmatpush1.bf16.msra.mxu1 %v4881_v31  ;;  %3587 = vmatmul.mubr.bf16.gmra.mxu0 %v5567_v3  ;;  %v6595_v24 = vpop.f32.mrf.mxu1 }
 0x18d   : > { %3887 = vmatprep.subr.bf16.mxu1 %v4889_v16  ;;  %3775 = vmatpush1.bf16.msra.mxu0 %v4884_v62  ;;  %v4905_v62 = vld [vmem:[#allocation7 + $0x648] ss:$16 sps:$4 sm:$0xff]  }
 0x18e   : > { %3776 = vmatprep.subr.bf16.mxu0 %v4892_v36  ;;  %3596 = vmatprep.mubr.bf16.mxu0 %v5601_v52  ;;  %v4908_v36 = vld [vmem:[#allocation7 + $0x428] ss:$16 sps:$4 sm:$0xff]  }
 0x18f   : > { %3700 = vmatmul.mubr.bf16.gmra.mxu1 %v5578_v19 }
 0x190   : > { %3888 = vmatpush1.bf16.msra.mxu1 %v4887_v47  ;;  %3709 = vmatprep.mubr.bf16.mxu1 %v5614_v15  ;;  %v4913_v47 = vld [vmem:[#allocation7 + $0x62c] ss:$16 sps:$4 sm:$0xff]  }
 0x191   : > { %3889 = vmatprep.subr.bf16.mxu1 %v4895_v2  ;;  %3777 = vmatpush1.bf16.msra.mxu0 %v4890_v1  ;;  %v4911_v2 = vld [vmem:[#allocation7 + $0x628] ss:$16 sps:$4 sm:$0xff]  }
 0x192   : > { %v3166_v6 = vpop.f32.mrf.mxu0  ;;  %3778 = vmatprep.subr.bf16.mxu0 %v4898_v37  ;;  %v4919_v37 = vld [vmem:[#allocation7 + $0x60c] ss:$16 sps:$4 sm:$0xff]  }
 0x193   : > { %v3167_v3 = vadd.f32 %v3166_v6, %v6539_v5 }
 0x194   : > { %v3168_v4 = vpop.f32.mrf.mxu0  ;;  %v3279_v52 = vpop.f32.mrf.mxu1  ;;  %3890 = vmatpush1.bf16.msra.mxu1 %v4893_v61  ;;  %3597 = vmatmul.mubr.bf16.gmra.mxu0 %v5630_v7  ;;  %v7202_v61 = vld [vmem:[#allocation14_spill] sm:$0xff] }
 0x195   : > { %v3169_v22 = vadd.f32 %v3168_v4, %v6542_v54  ;;  %v6601_v28 = vadd.f32 %v3279_v52, %v3167_v3  ;;  %3891 = vmatprep.subr.bf16.mxu1 %v4901_v0  ;;  %3779 = vmatpush1.bf16.msra.mxu0 %v4896_v11  ;;  %v4917_v11 = vld [vmem:[#allocation7 + $0x608] ss:$16 sps:$4 sm:$0xff]  }
 0x196   : > { %v3170_v19 = vpop.f32.mrf.mxu0  ;;  %v3281_v15 = vpop.f32.mrf.mxu1  ;;  %3780 = vmatprep.subr.bf16.mxu0 %v4904_v30  ;;  %3606 = vmatprep.mubr.bf16.mxu0 %v5657_v41  ;;  %v4916_v41 = vld [vmem:[#allocation7 + $0x40c] ss:$16 sps:$4 sm:$0xff]  }
 0x197   : > { %v3171_v18 = vadd.f32 %v3170_v19, %v6539_v5  ;;  %v6605_v35 = vadd.f32 %v3281_v15, %v3169_v22  ;;  %3710 = vmatmul.mubr.bf16.gmra.mxu1 %v5644_v12  ;;  %v4914_v12 = vld [vmem:[#allocation7 + $0x408] ss:$16 sps:$4 sm:$0xff]   ;;  %v4925_v30 = vld [vmem:[#allocation7 + $0x7ec] ss:$16 sps:$4 sm:$0xff]  }
 0x198   : > { %v3172_v42 = vpop.f32.mrf.mxu0  ;;  %v3283_v53 = vpop.f32.mrf.mxu1  ;;  %3892 = vmatpush1.bf16.msra.mxu1 %v4899_v46  ;;  %3719 = vmatprep.mubr.bf16.mxu1 %v5674_v13  ;;  %v4922_v13 = vld [vmem:[#allocation7 + $0x5ec] ss:$16 sps:$4 sm:$0xff]  }
 0x199   : > { %v3173_v31 = vadd.f32 %v3172_v42, %v6542_v54  ;;  %v6610_v7 = vadd.f32 %v3283_v53, %v3171_v18  ;;  %3893 = vmatprep.subr.bf16.mxu1 %v4907_v45  ;;  %3781 = vmatpush1.bf16.msra.mxu0 %v4902_v34  ;;  %v7203_v0 = vld [vmem:[#allocation15_spill] sm:$0xff] }
 0x19a   : > { %v3285_v16 = vpop.f32.mrf.mxu1  ;;  %3782 = vmatprep.subr.bf16.mxu0 %v4910_v60  ;;  %v4923_v34 = vld [vmem:[#allocation7 + $0x7e8] ss:$16 sps:$4 sm:$0xff]   ;;  %v4931_v53 = vld [vmem:[#allocation7 + $0x7cc] ss:$16 sps:$4 sm:$0xff]  }
 0x19b   : > { %v6613_v1 = vadd.f32 %v3285_v16, %v3173_v31  ;;  %v4926_v60 = vld [vmem:[#allocation7 + $0x5c8] ss:$16 sps:$4 sm:$0xff]   ;;  %v4934_v16 = vld [vmem:[#allocation7 + $0x5ac] ss:$16 sps:$4 sm:$0xff]  }
 0x19c   : > { %3894 = vmatpush1.bf16.msra.mxu1 %v4905_v62  ;;  %3607 = vmatmul.mubr.bf16.gmra.mxu0 %v5693_v43  ;;  %v4920_v43 = vld [vmem:[#allocation7 + $0x5e8] ss:$16 sps:$4 sm:$0xff]  }
 0x19d   : > { %3895 = vmatprep.subr.bf16.mxu1 %v4913_v47  ;;  %3783 = vmatpush1.bf16.msra.mxu0 %v4908_v36  ;;  %v3176_v6 = vpop.f32.mrf.mxu0  ;;  %v4929_v47 = vld [vmem:[#allocation7 + $0x7c8] ss:$16 sps:$4 sm:$0xff]  }
 0x19e   : > { %3784 = vmatprep.subr.bf16.mxu0 %v4916_v41  ;;  %3616 = vmatprep.mubr.bf16.mxu0 %v5724_v55  ;;  %v3177_v3 = vadd.f32 %v3176_v6, %v6539_v5  ;;  %v4928_v55 = vld [vmem:[#allocation7 + $0x5cc] ss:$16 sps:$4 sm:$0xff]  }
 0x19f   : > { %3720 = vmatmul.mubr.bf16.gmra.mxu1 %v7202_v61  ;;  %v3178_v4 = vpop.f32.mrf.mxu0 }
 0x1a0   : > { %3896 = vmatpush1.bf16.msra.mxu1 %v4911_v2  ;;  %3729 = vmatprep.mubr.bf16.mxu1 %v7203_v0  ;;  %v3179_v22 = vadd.f32 %v3178_v4, %v6542_v54  ;;  %v4932_v2 = vld [vmem:[#allocation7 + $0x5a8] ss:$16 sps:$4 sm:$0xff]  }
 0x1a1   : > { %3897 = vmatprep.subr.bf16.mxu1 %v4919_v37  ;;  %3785 = vmatpush1.bf16.msra.mxu0 %v4914_v12  ;;  %v3289_v52 = vpop.f32.mrf.mxu1  ;;  %v3180_v46 = vpop.f32.mrf.mxu0  ;;  %v4937_v12 = vld [vmem:[#allocation7 + $0x7ac] ss:$16 sps:$4 sm:$0xff]   ;;  %v4941_v0 = vld [vmem:[#allocation7 + $0x788] ss:$16 sps:$4 sm:$0xff]  }
 0x1a2   : > { %3786 = vmatprep.subr.bf16.mxu0 %v4922_v13  ;;  %v6621_v19 = vadd.f32 %v3289_v52, %v3177_v3  ;;  %v3181_v18 = vadd.f32 %v3180_v46, %v6539_v5  ;;  %v4940_v37 = vld [vmem:[#allocation7 + $0x58c] ss:$16 sps:$4 sm:$0xff]   ;;  %v7204_v3 = vld [vmem:[#allocation16_spill] sm:$0xff] }
 0x1a3   : > { %v3291_v15 = vpop.f32.mrf.mxu1  ;;  %v3182_v42 = vpop.f32.mrf.mxu0  ;;  %v4943_v13 = vld [vmem:[#allocation7 + $0x78c] ss:$16 sps:$4 sm:$0xff]  }
 0x1a4   : > { %3898 = vmatpush1.bf16.msra.mxu1 %v4917_v11  ;;  %3617 = vmatmul.mubr.bf16.gmra.mxu0 %v5753_v25  ;;  %v6625_v45 = vadd.f32 %v3291_v15, %v3179_v22  ;;  %v3183_v62 = vadd.f32 %v3182_v42, %v6542_v54  ;;  %v7205_v4 = vld [vmem:[#allocation17_spill] sm:$0xff] }
 0x1a5   : > { %3899 = vmatprep.subr.bf16.mxu1 %v4925_v30  ;;  %3787 = vmatpush2.bf16.msra.mxu0 %v4920_v43  ;;  %v3293_v31 = vpop.f32.mrf.mxu1  ;;  %v4944_v30 = vld [vmem:[#allocation7 + $0x568] ss:$16 sps:$4 sm:$0xff]   ;;  %v4949_v52 = vld [vmem:[#allocation7 + $0x76c] ss:$16 sps:$4 sm:$0xff]  }
 0x1a6   : > { %3788 = vmatprep.subr.bf16.mxu0 %v4928_v55  ;;  %3626 = vmatprep.mubr.bf16.mxu0 %v5778_v17  ;;  %v6629_v36 = vadd.f32 %v3293_v31, %v3181_v18  ;;  %v4935_v17 = vld [vmem:[#allocation7 + $0x7a8] ss:$16 sps:$4 sm:$0xff]   ;;  %v4952_v55 = vld [vmem:[#allocation7 + $0x54c] ss:$16 sps:$4 sm:$0xff]  }
 0x1a7   : > { %3730 = vmatmul.mubr.bf16.gmra.mxu1 %v5765_v8  ;;  %v3295_v25 = vpop.f32.mrf.mxu1  ;;  %v4938_v8 = vld [vmem:[#allocation7 + $0x588] ss:$16 sps:$4 sm:$0xff]  }
 0x1a8   : > { %3900 = vmatpush2.bf16.msra.mxu1 %v4923_v34  ;;  %3739 = vmatprep.mubr.bf16.mxu1 %v5794_v59  ;;  %v6633_v41 = vadd.f32 %v3295_v25, %v3183_v62  ;;  %v4946_v59 = vld [vmem:[#allocation7 + $0x56c] ss:$16 sps:$4 sm:$0xff]   ;;  %v4947_v42 = vld [vmem:[#allocation7 + $0x768] ss:$16 sps:$4 sm:$0xff]  }
 0x1a9   : > { %3901 = vmatprep.subr.bf16.mxu1 %v4931_v53  ;;  %3789 = vmatpush2.bf16.msra.mxu0 %v4926_v60  ;;  %v4950_v31 = vld [vmem:[#allocation7 + $0x548] ss:$16 sps:$4 sm:$0xff]   ;;  %v4955_v62 = vld [vmem:[#allocation7 + $0x74c] ss:$16 sps:$4 sm:$0xff]  }
 0x1aa   : > { %3790 = vmatprep.subr.bf16.mxu0 %v4934_v16  ;;  %v7206_v25 = vld [vmem:[#allocation19_spill] sm:$0xff] }
 0x1ac   : > { %3902 = vmatpush2.bf16.msra.mxu1 %v4929_v47  ;;  %3627 = vmatmul.mubr.bf16.gmra.mxu0 %v5810_v23  ;;  %v4958_v47 = vld [vmem:[#allocation7 + $0x52c] ss:$16 sps:$4 sm:$0xff]  }
 0x1ad   : > { %3903 = vmatprep.subr.bf16.mxu1 %v4937_v12  ;;  %3791 = vmatpush2.bf16.msra.mxu0 %v4932_v2  ;;  %v3186_v6 = vpop.f32.mrf.mxu0  ;;  %v7207_v12 = vld [vmem:[#allocation18_spill] sm:$0xff] }
 0x1ae   : > { %3792 = vmatprep.subr.bf16.mxu0 %v4940_v37  ;;  %3636 = vmatprep.mubr.bf16.mxu0 %v5841_v26  ;;  %v3187_v61 = vadd.f32 %v3186_v6, %v6539_v5  ;;  %v4964_v6 = vld [vmem:[#allocation7 + $0x50c] ss:$16 sps:$4 sm:$0xff]  }
 0x1af   : > { %3740 = vmatmul.mubr.bf16.gmra.mxu1 %v7204_v3  ;;  %v3188_v11 = vpop.f32.mrf.mxu0 }
 0x1b0   : > { %3904 = vmatpush2.bf16.msra.mxu1 %v4935_v17  ;;  %3749 = vmatprep.mubr.bf16.mxu1 %v7205_v4  ;;  %v3299_v23 = vpop.f32.mrf.mxu1  ;;  %v3189_v43 = vadd.f32 %v3188_v11, %v6542_v54  ;;  %v7208_v17 = vld [vmem:[#allocation20_spill] sm:$0xff]  ;;  %v4962_v11 = vld [vmem:[#allocation7 + $0x508] ss:$16 sps:$4 sm:$0xff]  }
 0x1b1   : > { %3905 = vmatprep.subr.bf16.mxu1 %v4943_v13  ;;  %3793 = vmatpush2.bf16.msra.mxu0 %v4938_v8  ;;  %v6641_v22 = vadd.f32 %v3299_v23, %v3187_v61  ;;  %v3190_v26 = vpop.f32.mrf.mxu0  ;;  %v4956_v8 = vld [vmem:[#allocation7 + $0x528] ss:$16 sps:$4 sm:$0xff]   ;;  %v4961_v13 = vld [vmem:[#allocation7 + $0x72c] ss:$16 sps:$4 sm:$0xff]  }
 0x1b2   : > { %3794 = vmatprep.subr.bf16.mxu0 %v4946_v59  ;;  %v3301_v46 = vpop.f32.mrf.mxu1  ;;  %v3191_v15 = vadd.f32 %v3190_v26, %v6539_v5  ;;  %v7209_v59 = vld [vmem:[#allocation21_spill] sm:$0xff]  ;;  %v7210_v23 = vld [vmem:[#allocation23_spill] sm:$0xff] }
 0x1b3   : > { %v6644_v18 = vadd.f32 %v3301_v46, %v3189_v43  ;;  %v3192_v34 = vpop.f32.mrf.mxu0  ;;  %v4959_v61 = vld [vmem:[#allocation7 + $0x728] ss:$16 sps:$4 sm:$0xff]   ;;  %v7212_v46 = vld [vmem:[#allocation24_spill] sm:$0xff] }
 0x1b4   : > { %3906 = vmatpush2.bf16.msra.mxu1 %v4941_v0  ;;  %3637 = vmatmul.mubr.bf16.gmra.mxu0 %v5869_v14  ;;  %v3303_v60 = vpop.f32.mrf.mxu1  ;;  %v3193_v53 = vadd.f32 %v3192_v34, %v6542_v54  ;;  %v4953_v14 = vld [vmem:[#allocation7 + $0x748] ss:$16 sps:$4 sm:$0xff]   ;;  %v4967_v0 = vld [vmem:[#allocation7 + $0x70c] ss:$16 sps:$4 sm:$0xff]  }
 0x1b5   : > { %3907 = vmatprep.subr.bf16.mxu1 %v4949_v52  ;;  %3795 = vmatpush2.bf16.msra.mxu0 %v4944_v30  ;;  %v6648_v16 = vadd.f32 %v3303_v60, %v3191_v15  ;;  %v7211_v30 = vld [vmem:[#allocation22_spill] sm:$0xff] }
 0x1b6   : > { %3796 = vmatprep.subr.bf16.mxu0 %v4952_v55  ;;  %3646 = vmatprep.mubr.bf16.mxu0 %v7206_v25  ;;  %v3305_v2 = vpop.f32.mrf.mxu1  ;;  %v4965_v55 = vld [vmem:[#allocation7 + $0x708] ss:$16 sps:$4 sm:$0xff]  }
 0x1b7   : > { %3750 = vmatmul.mubr.bf16.gmra.mxu1 %v7207_v12  ;;  %v6652_v37 = vadd.f32 %v3305_v2, %v3193_v53  ;;  %v7214_v12 = vld [vmem:[#allocation27_spill] sm:$0xff] }
 0x1b8   : > { %3908 = vmatpush2.bf16.msra.mxu1 %v4947_v42  ;;  %3759 = vmatprep.mubr.bf16.mxu1 %v7208_v17 }
 0x1b9   : > { %3909 = vmatprep.subr.bf16.mxu1 %v4955_v62  ;;  %3797 = vmatpush2.bf16.msra.mxu0 %v4950_v31 }
 0x1ba   : > { %3798 = vmatprep.subr.bf16.mxu0 %v4958_v47  ;;  %v7213_v47 = vld [vmem:[#allocation25_spill] sm:$0xff] }
 0x1bb   : > { %v3196_v3 = vpop.f32.mrf.mxu0 }
 0x1bc   : > { %3910 = vmatpush2.bf16.msra.mxu1 %v4953_v14  ;;  %3647 = vmatmul.mubr.bf16.gmra.mxu0 %v7209_v59  ;;  %v3197_v4 = vadd.f32 %v3196_v3, %v6539_v5  ;;  %v7218_v59 = vld [vmem:[#allocation31_spill] sm:$0xff] }
 0x1bd   : > { %3911 = vmatprep.subr.bf16.mxu1 %v4961_v13  ;;  %3799 = vmatpush2.bf16.msra.mxu0 %v4956_v8  ;;  %v3198_v43 = vpop.f32.mrf.mxu0  ;;  %v7215_v8 = vld [vmem:[#allocation26_spill] sm:$0xff]  ;;  %v7216_v13 = vld [vmem:[#allocation28_spill] sm:$0xff] }
 0x1be   : > { %3800 = vmatprep.subr.bf16.mxu0 %v4964_v6  ;;  %3802 = vmatprep.mubr.bf16.mxu0 %v7210_v23  ;;  %v3199_v26 = vadd.f32 %v3198_v43, %v6542_v54  ;;  %v7217_v6 = vld [vmem:[#allocation29_spill] sm:$0xff]  ;;  %v7222_v23 = vld [vmem:[#allocation32_spill] sm:$0xff]  ;;  %v7223_v43 = vld [vmem:[#allocation47_spill] sm:$0xff] }
 0x1bf   : > { %3760 = vmatmul.mubr.bf16.gmra.mxu1 %v7211_v30  ;;  %v3309_v52 = vpop.f32.mrf.mxu1  ;;  %v3200_v34 = vpop.f32.mrf.mxu0 }
 0x1c0   : > { %3912 = vmatpush2.bf16.msra.mxu1 %v4959_v61  ;;  %3915 = vmatprep.mubr.bf16.mxu1 %v7212_v46  ;;  %v6661_v15 = vadd.f32 %v3309_v52, %v3197_v4  ;;  %v3201_v60 = vadd.f32 %v3200_v34, %v6539_v5  ;;  %v7219_v61 = vld [vmem:[#allocation44_spill] sm:$0xff]  ;;  %v7225_v46 = vld [vmem:[#allocation49_spill] sm:$0xff] }
 0x1c1   : > { %3913 = vmatprep.subr.bf16.mxu1 %v4967_v0  ;;  %3801 = vmatpush2.bf16.msra.mxu0 %v4962_v11  ;;  %v3311_v42 = vpop.f32.mrf.mxu1  ;;  %v3202_v31 = vpop.f32.mrf.mxu0  ;;  %v3127_v3 = vadd.f32 %v7219_v61, %v6539_v5  ;;  %v7220_v11 = vld [vmem:[#allocation30_spill] sm:$0xff]  ;;  %v7221_v0 = vld [vmem:[#allocation45_spill] sm:$0xff]  ;;  %v7224_v52 = vld [vmem:[#allocation48_spill] sm:$0xff] }
 0x1c2   : > { %v6664_v53 = vadd.f32 %v3311_v42, %v3199_v26  ;;  %v3203_v25 = vadd.f32 %v3202_v31, %v6542_v54  ;;  %v3129_v4 = vadd.f32 %v7221_v0, %v6542_v54  ;;  %v3131_v26 = vadd.f32 %v7224_v52, %v6539_v5  ;;  %v7226_v42 = vld [vmem:[#allocation52_spill] sm:$0xff]  ;;  %v7227_v31 = vld [vmem:[#allocation33_spill] sm:$0xff] }
 0x1c3   : > { %v3313_v62 = vpop.f32.mrf.mxu1  ;;  %v3240_v30 = vadd.f32 %v7223_v43, %v3127_v3  ;;  %v7232_v3 = vld [vmem:[#allocation36_spill] sm:$0xff] }
 0x1c4   : > { %3914 = vmatpush2.bf16.msra.mxu1 %v4965_v55  ;;  %3803 = vmatmul.mubr.bf16.vlgmr.msra.gmra.mxu0 %v7213_v47  ;;  %v6668_v2 = vadd.f32 %v3313_v62, %v3201_v60  ;;  %v3242_v34 = vadd.f32 %v7225_v46, %v3129_v4  ;;  %v3133_v60 = vadd.f32 %v7226_v42, %v6542_v54  ;;  %v7228_v47 = vld [vmem:[#allocation35_spill] sm:$0xff]  ;;  %v7233_v46 = vld [vmem:[#allocation37_spill] sm:$0xff] }
 0x1c5   : > { %3812 = vmatprep.mubr.bf16.mxu0 %v7214_v12  ;;  %v3315_v14 = vpop.f32.mrf.mxu1  ;;  %v7229_v12 = vld [vmem:[#allocation51_spill] sm:$0xff] }
 0x1c6   : > { %v6671_v17 = vadd.f32 %v3315_v14, %v3203_v25  ;;  %v3244_v14 = vadd.f32 %v7229_v12, %v3131_v26  ;;  %v7234_v42 = vld [vmem:[#allocation39_spill] sm:$0xff] }
 0x1c7   : > { %3916 = vmatmul.mubr.bf16.vlgmr.msra.gmra.mxu1 %v7215_v8 }
 0x1c8   : > { %3925 = vmatprep.mubr.bf16.mxu1 %v7216_v13 }
 0x1cc   : > { %3813 = vmatmul.mubr.bf16.gmra.mxu0 %v7217_v6  ;;  %v7230_v6 = vld [vmem:[#allocation34_spill] sm:$0xff] }
 0x1cd   : > { %3822 = vmatprep.mubr.bf16.mxu0 %v7218_v59  ;;  %v7231_v59 = vld [vmem:[#allocation54_spill] sm:$0xff] }
 0x1ce   : > { %v3246_v61 = vadd.f32 %v7231_v59, %v3133_v60  ;;  %v7238_v59 = vld [vmem:[#allocation43_spill] sm:$0xff] }
 0x1cf   : > { %3926 = vmatmul.mubr.bf16.gmra.mxu1 %v7220_v11 }
 0x1d0   : > { %3935 = vmatprep.mubr.bf16.mxu1 %v7222_v23 }
 0x1d2   : > { %v3352_v55 = vpop.f32.mrf.mxu0 }
 0x1d3   : > { %v3353_v62 = vadd.f32 %v3352_v55, %v3240_v30 }
 0x1d4   : > { %3823 = vmatmul.mubr.bf16.gmra.mxu0 %v7227_v31  ;;  %v3354_v25 = vpop.f32.mrf.mxu0 }
 0x1d5   : > { %3832 = vmatprep.mubr.bf16.mxu0 %v7228_v47  ;;  %v3355_v8 = vadd.f32 %v3354_v25, %v3242_v34  ;;  %v7235_v25 = vld [vmem:[#allocation38_spill] sm:$0xff]  ;;  %v7236_v47 = vld [vmem:[#allocation40_spill] sm:$0xff] }
 0x1d6   : > { %v3356_v13 = vpop.f32.mrf.mxu0 }
 0x1d7   : > { %3936 = vmatmul.mubr.bf16.gmra.mxu1 %v7230_v6  ;;  %v3465_v5 = vpop.f32.mrf.mxu1  ;;  %v3357_v0 = vadd.f32 %v3356_v13, %v3244_v14  ;;  %v7237_v6 = vld [vmem:[#allocation41_spill] sm:$0xff] }
 0x1d8   : > { %3945 = vmatprep.mubr.bf16.mxu1 %v7232_v3  ;;  %v3466_v11 = vadd.f32 %v3465_v5, %v3353_v62  ;;  %v3358_v4 = vpop.f32.mrf.mxu0 }
 0x1d9   : > { %v3467_v23 = vpop.f32.mrf.mxu1  ;;  %v3359_v52 = vadd.f32 %v3358_v4, %v3246_v61 }
 0x1da   : > { %v3996_v43 = vmax.f32 %v3466_v11, 0.0  ;;  %v3468_v30 = vadd.f32 %v3467_v23, %v3355_v8  ;;  %v3143_v8 = vadd.f32 %v6480_v63, %v6542_v54  ;;  %v7239_v23 = vld [vmem:[#allocation42_spill] sm:$0xff] }
 0x1db   : > { %v3469_v55 = vpop.f32.mrf.mxu1 }
 0x1dc   : > { %3833 = vmatmul.mubr.bf16.gmra.mxu0 %v7233_v46  ;;  %4060 = vst [vmem:[%s6697_s7] sm:$0xff] %v3996_v43  ;;  %v3997_v26 = vmax.f32 %v3468_v30, 0.0  ;;  %v3470_v34 = vadd.f32 %v3469_v55, %v3357_v0  ;;  %v3256_v4 = vadd.f32 %v6493_v27, %v3143_v8 }
 0x1dd   : > { %3842 = vmatprep.mubr.bf16.mxu0 %v7234_v42  ;;  %v3471_v60 = vpop.f32.mrf.mxu1 }
 0x1de   : > { %4061 = vst [vmem:[%s6697_s7 + $0x8] sm:$0xff] %v3997_v26  ;;  %v4000_v31 = vmax.f32 %v3470_v34, 0.0  ;;  %v3472_v62 = vadd.f32 %v3471_v60, %v3359_v52  ;;  %v7241_v60 = vld [vmem:[#allocation50_spill] sm:$0xff] }
 0x1df   : > { %3946 = vmatmul.mubr.bf16.gmra.mxu1 %v7235_v25  ;;  %v7243_v25 = vld [vmem:[#allocation53_spill] sm:$0xff] }
 0x1e0   : > { %3955 = vmatprep.mubr.bf16.mxu1 %v7236_v47  ;;  %4064 = vst [vmem:[%s6697_s7 + $0x20] sm:$0xff] %v4000_v31  ;;  %v4001_v12 = vmax.f32 %v3472_v62, 0.0  ;;  %v7242_v62 = vld [vmem:[#allocation55_spill] sm:$0xff]  ;;  %v7244_v47 = vld [vmem:[#allocation56_spill] sm:$0xff] }
 0x1e2   : > { %4065 = vst [vmem:[%s6697_s7 + $0x28] sm:$0xff] %v4001_v12  ;;  %v3362_v14 = vpop.f32.mrf.mxu0 }
 0x1e3   : > { %v3363_v13 = vadd.f32 %v3362_v14, %v6560_v44  ;;  %v7240_v44 = vld [vmem:[#allocation46_spill] sm:$0xff]  ;;  %v3153_v14 = vadd.f32 %v6544_v38, %v6542_v54 }
 0x1e4   : > { %3843 = vmatmul.mubr.bf16.gmra.mxu0 %v7237_v6  ;;  %v3364_v5 = vpop.f32.mrf.mxu0 }
 0x1e5   : > { %3852 = vmatprep.mubr.bf16.mxu0 %v7238_v59  ;;  %v3475_v61 = vpop.f32.mrf.mxu1  ;;  %v3365_v3 = vadd.f32 %v3364_v5, %v6563_v32 }
 0x1e6   : > { %v3476_v11 = vadd.f32 %v3475_v61, %v3363_v13  ;;  %v3366_v0 = vpop.f32.mrf.mxu0 }
 0x1e7   : > { %3956 = vmatmul.mubr.bf16.gmra.mxu1 %v7239_v23  ;;  %v3477_v43 = vpop.f32.mrf.mxu1  ;;  %v3367_v63 = vadd.f32 %v3366_v0, %v6566_v56 }
 0x1e8   : > { %3965 = vmatprep.mubr.bf16.mxu1 %v7240_v44  ;;  %v4004_v30 = vmax.f32 %v3476_v11, 0.0  ;;  %v3478_v52 = vadd.f32 %v3477_v43, %v3365_v3  ;;  %v3368_v55 = vpop.f32.mrf.mxu0  ;;  %v3266_v3 = vadd.f32 %v6556_v48, %v3153_v14 }
 0x1e9   : > { %v3479_v46 = vpop.f32.mrf.mxu1  ;;  %v3369_v26 = vadd.f32 %v3368_v55, %v3256_v4 }
 0x1ea   : > { %4068 = vst [vmem:[%s6697_s7 + $0x40] sm:$0xff] %v4004_v30  ;;  %v4005_v32 = vmax.f32 %v3478_v52, 0.0  ;;  %v3480_v34 = vadd.f32 %v3479_v46, %v3367_v63 }
 0x1eb   : > { %v3481_v42 = vpop.f32.mrf.mxu1 }
 0x1ec   : > { %3853 = vmatmul.mubr.bf16.gmra.mxu0 %v7241_v60  ;;  %4069 = vst [vmem:[%s6697_s7 + $0x48] sm:$0xff] %v4005_v32  ;;  %v4008_v27 = vmax.f32 %v3480_v34, 0.0  ;;  %v3482_v31 = vadd.f32 %v3481_v42, %v3369_v26 }
 0x1ed   : > { %3862 = vmatprep.mubr.bf16.mxu0 %v7242_v62 }
 0x1ee   : > { %4072 = vst [vmem:[%s6697_s7 + $0x60] sm:$0xff] %v4008_v27  ;;  %v4009_v56 = vmax.f32 %v3482_v31, 0.0 }
 0x1ef   : > { %3966 = vmatmul.mubr.bf16.gmra.mxu1 %v7243_v25 }
 0x1f0   : > { %3975 = vmatprep.mubr.bf16.mxu1 %v7244_v47  ;;  %4073 = vst [vmem:[%s6697_s7 + $0x68] sm:$0xff] %v4009_v56 }
 0x1f1   : > { %v3372_v12 = vpop.f32.mrf.mxu0 }
 0x1f2   : > { %v3373_v8 = vadd.f32 %v3372_v12, %v6573_v33 }
 0x1f3   : > { %v3374_v13 = vpop.f32.mrf.mxu0 }
 0x1f4   : > { %3863 = vmatmul.mubr.bf16.gmra.mxu0 %v6467_v20  ;;  %v3485_v6 = vpop.f32.mrf.mxu1  ;;  %v3375_v5 = vadd.f32 %v3374_v13, %v6575_v10 }
 0x1f5   : > { %3872 = vmatprep.mubr.bf16.mxu0 %v6500_v40  ;;  %v3486_v59 = vadd.f32 %v3485_v6, %v3373_v8  ;;  %v3376_v61 = vpop.f32.mrf.mxu0 }
 0x1f6   : > { %v3487_v11 = vpop.f32.mrf.mxu1  ;;  %v3377_v0 = vadd.f32 %v3376_v61, %v6577_v21 }
 0x1f7   : > { %3976 = vmatmul.mubr.bf16.gmra.mxu1 %v6482_v9  ;;  %v4012_v38 = vmax.f32 %v3486_v59, 0.0  ;;  %v3488_v33 = vadd.f32 %v3487_v11, %v3375_v5  ;;  %v3378_v20 = vpop.f32.mrf.mxu0 }
 0x1f8   : > { %3985 = vmatprep.mubr.bf16.mxu1 %v6513_v51  ;;  %v3489_v10 = vpop.f32.mrf.mxu1  ;;  %v3379_v4 = vadd.f32 %v3378_v20, %v3266_v3  ;;  %v3163_v51 = vadd.f32 %v6591_v39, %v6542_v54 }
 0x1f9   : > { %4076 = vst [vmem:[%s6697_s7 + $0x80] sm:$0xff] %v4012_v38  ;;  %v4013_v40 = vmax.f32 %v3488_v33, 0.0  ;;  %v3490_v23 = vadd.f32 %v3489_v10, %v3377_v0 }
 0x1fa   : > { %v3491_v43 = vpop.f32.mrf.mxu1 }
 0x1fb   : > { %4077 = vst [vmem:[%s6697_s7 + $0x88] sm:$0xff] %v4013_v40  ;;  %v4016_v48 = vmax.f32 %v3490_v23, 0.0  ;;  %v3492_v63 = vadd.f32 %v3491_v43, %v3379_v4 }
 0x1fc   : > { %3873 = vmatmul.mubr.bf16.gmra.mxu0 %v6531_v49  ;;  %v3276_v49 = vadd.f32 %v6595_v24, %v3163_v51 }
 0x1fd   : > { %4080 = vst [vmem:[%s6697_s7 + $0xa0] sm:$0xff] %v4016_v48  ;;  %v4017_v21 = vmax.f32 %v3492_v63, 0.0 }
 0x1ff   : > { %3986 = vmatmul.mubr.bf16.gmra.mxu1 %v6546_v57  ;;  %4081 = vst [vmem:[%s6697_s7 + $0xa8] sm:$0xff] %v4017_v21 }
 0x200   : > { %v3382_v9 = vpop.f32.mrf.mxu0 }
 0x201   : > { %v3383_v44 = vadd.f32 %v3382_v9, %v6581_v50 }
 0x202   : > { %v3384_v30 = vpop.f32.mrf.mxu0 }
 0x203   : > { %v3495_v52 = vpop.f32.mrf.mxu1  ;;  %v3385_v55 = vadd.f32 %v3384_v30, %v6585_v29 }
 0x204   : > { %v3496_v46 = vadd.f32 %v3495_v52, %v3383_v44  ;;  %v3386_v26 = vpop.f32.mrf.mxu0 }
 0x205   : > { %v3497_v32 = vpop.f32.mrf.mxu1  ;;  %v3387_v57 = vadd.f32 %v3386_v26, %v6589_v58 }
 0x206   : > { %v4020_v34 = vmax.f32 %v3496_v46, 0.0  ;;  %v3498_v42 = vadd.f32 %v3497_v32, %v3385_v55  ;;  %v3388_v60 = vpop.f32.mrf.mxu0 }
 0x207   : > { %v3499_v54 = vpop.f32.mrf.mxu1  ;;  %v3389_v39 = vadd.f32 %v3388_v60, %v3276_v49 }
 0x208   : > { %4084 = vst [vmem:[%s6697_s7 + $0xc0] sm:$0xff] %v4020_v34  ;;  %v4021_v50 = vmax.f32 %v3498_v42, 0.0  ;;  %v3500_v27 = vadd.f32 %v3499_v54, %v3387_v57 }
 0x209   : > { %v3501_v31 = vpop.f32.mrf.mxu1 }
 0x20a   : > { %4085 = vst [vmem:[%s6697_s7 + $0xc8] sm:$0xff] %v4021_v50  ;;  %v4024_v29 = vmax.f32 %v3500_v27, 0.0  ;;  %v3502_v62 = vadd.f32 %v3501_v31, %v3389_v39 }
 0x20c   : > { %4088 = vst [vmem:[%s6697_s7 + $0xe0] sm:$0xff] %v4024_v29  ;;  %v4025_v56 = vmax.f32 %v3502_v62, 0.0 }
 0x20e   : > { %4089 = vst [vmem:[%s6697_s7 + $0xe8] sm:$0xff] %v4025_v56 }
 0x20f   : > { %v3392_v24 = vpop.f32.mrf.mxu0 }
 0x210   : > { %v3393_v25 = vadd.f32 %v3392_v24, %v6601_v28 }
 0x211   : > { %v3394_v58 = vpop.f32.mrf.mxu0 }
 0x212   : > { %v3505_v47 = vpop.f32.mrf.mxu1  ;;  %v3395_v12 = vadd.f32 %v3394_v58, %v6605_v35 }
 0x213   : > { %v3506_v14 = vadd.f32 %v3505_v47, %v3393_v25  ;;  %v3396_v8 = vpop.f32.mrf.mxu0 }
 0x214   : > { %v3507_v13 = vpop.f32.mrf.mxu1  ;;  %v3397_v6 = vadd.f32 %v3396_v8, %v6610_v7 }
 0x215   : > { %v4028_v5 = vmax.f32 %v3506_v14, 0.0  ;;  %v3508_v59 = vadd.f32 %v3507_v13, %v3395_v12  ;;  %v3398_v61 = vpop.f32.mrf.mxu0 }
 0x216   : > { %v3509_v3 = vpop.f32.mrf.mxu1  ;;  %v3399_v11 = vadd.f32 %v3398_v61, %v6613_v1 }
 0x217   : > { %4092 = vst [vmem:[%s6697_s7 + $0x100] sm:$0xff] %v4028_v5  ;;  %v4029_v28 = vmax.f32 %v3508_v59, 0.0  ;;  %v3510_v0 = vadd.f32 %v3509_v3, %v3397_v6 }
 0x218   : > { %v3511_v38 = vpop.f32.mrf.mxu1 }
 0x219   : > { %4093 = vst [vmem:[%s6697_s7 + $0x108] sm:$0xff] %v4029_v28  ;;  %v4032_v33 = vmax.f32 %v3510_v0, 0.0  ;;  %v3512_v35 = vadd.f32 %v3511_v38, %v3399_v11 }
 0x21b   : > { %4096 = vst [vmem:[%s6697_s7 + $0x120] sm:$0xff] %v4032_v33  ;;  %v4033_v20 = vmax.f32 %v3512_v35, 0.0 }
 0x21d   : > { %4097 = vst [vmem:[%s6697_s7 + $0x128] sm:$0xff] %v4033_v20 }
 0x21e   : > { %v3402_v10 = vpop.f32.mrf.mxu0 }
 0x21f   : > { %v3403_v7 = vadd.f32 %v3402_v10, %v6621_v19 }
 0x220   : > { %v3404_v4 = vpop.f32.mrf.mxu0 }
 0x221   : > { %v3515_v40 = vpop.f32.mrf.mxu1  ;;  %v3405_v23 = vadd.f32 %v3404_v4, %v6625_v45 }
 0x222   : > { %v3516_v1 = vadd.f32 %v3515_v40, %v3403_v7  ;;  %v3406_v43 = vpop.f32.mrf.mxu0 }
 0x223   : > { %v3517_v48 = vpop.f32.mrf.mxu1  ;;  %v3407_v63 = vadd.f32 %v3406_v43, %v6629_v36 }
 0x224   : > { %v4036_v21 = vmax.f32 %v3516_v1, 0.0  ;;  %v3518_v9 = vadd.f32 %v3517_v48, %v3405_v23  ;;  %v3408_v51 = vpop.f32.mrf.mxu0 }
 0x225   : > { %v3519_v44 = vpop.f32.mrf.mxu1  ;;  %v3409_v30 = vadd.f32 %v3408_v51, %v6633_v41 }
 0x226   : > { %4100 = vst [vmem:[%s6697_s7 + $0x140] sm:$0xff] %v4036_v21  ;;  %v4037_v19 = vmax.f32 %v3518_v9, 0.0  ;;  %v3520_v52 = vadd.f32 %v3519_v44, %v3407_v63 }
 0x227   : > { %v3521_v55 = vpop.f32.mrf.mxu1 }
 0x228   : > { %4101 = vst [vmem:[%s6697_s7 + $0x148] sm:$0xff] %v4037_v19  ;;  %v4040_v46 = vmax.f32 %v3520_v52, 0.0  ;;  %v3522_v45 = vadd.f32 %v3521_v55, %v3409_v30 }
 0x22a   : > { %4104 = vst [vmem:[%s6697_s7 + $0x160] sm:$0xff] %v4040_v46  ;;  %v4041_v26 = vmax.f32 %v3522_v45, 0.0 }
 0x22c   : > { %4105 = vst [vmem:[%s6697_s7 + $0x168] sm:$0xff] %v4041_v26 }
 0x22d   : > { %v3412_v49 = vpop.f32.mrf.mxu0 }
 0x22e   : > { %v3413_v36 = vadd.f32 %v3412_v49, %v6641_v22 }
 0x22f   : > { %v3414_v32 = vpop.f32.mrf.mxu0 }
 0x230   : > { %v3525_v57 = vpop.f32.mrf.mxu1  ;;  %v3415_v34 = vadd.f32 %v3414_v32, %v6644_v18 }
 0x231   : > { %v3526_v41 = vadd.f32 %v3525_v57, %v3413_v36  ;;  %v3416_v42 = vpop.f32.mrf.mxu0 }
 0x232   : > { %v3527_v60 = vpop.f32.mrf.mxu1  ;;  %v3417_v54 = vadd.f32 %v3416_v42, %v6648_v16 }
 0x233   : > { %v4044_v39 = vmax.f32 %v3526_v41, 0.0  ;;  %v3528_v50 = vadd.f32 %v3527_v60, %v3415_v34  ;;  %v3418_v27 = vpop.f32.mrf.mxu0 }
 0x234   : > { %v3529_v31 = vpop.f32.mrf.mxu1  ;;  %v3419_v29 = vadd.f32 %v3418_v27, %v6652_v37 }
 0x235   : > { %4108 = vst [vmem:[%s6697_s7 + $0x180] sm:$0xff] %v4044_v39  ;;  %v4045_v22 = vmax.f32 %v3528_v50, 0.0  ;;  %v3530_v62 = vadd.f32 %v3529_v31, %v3417_v54 }
 0x236   : > { %v3531_v56 = vpop.f32.mrf.mxu1 }
 0x237   : > { %4109 = vst [vmem:[%s6697_s7 + $0x188] sm:$0xff] %v4045_v22  ;;  %v4048_v24 = vmax.f32 %v3530_v62, 0.0  ;;  %v3532_v18 = vadd.f32 %v3531_v56, %v3419_v29 }
 0x239   : > { %4112 = vst [vmem:[%s6697_s7 + $0x1a0] sm:$0xff] %v4048_v24  ;;  %v4049_v25 = vmax.f32 %v3532_v18, 0.0 }
 0x23b   : > { %4113 = vst [vmem:[%s6697_s7 + $0x1a8] sm:$0xff] %v4049_v25 }
 0x23c   : > { %v3422_v58 = vpop.f32.mrf.mxu0 }
 0x23d   : > { %v3423_v16 = vadd.f32 %v3422_v58, %v6661_v15 }
 0x23e   : > { %v3424_v47 = vpop.f32.mrf.mxu0 }
 0x23f   : > { %v3535_v12 = vpop.f32.mrf.mxu1  ;;  %v3425_v14 = vadd.f32 %v3424_v47, %v6664_v53 }
 0x240   : > { %v3536_v37 = vadd.f32 %v3535_v12, %v3423_v16  ;;  %v3426_v8 = vpop.f32.mrf.mxu0 }
 0x241   : > { %v3537_v13 = vpop.f32.mrf.mxu1  ;;  %v3427_v6 = vadd.f32 %v3426_v8, %v6668_v2 }
 0x242   : > { %v4052_v5 = vmax.f32 %v3536_v37, 0.0  ;;  %v3538_v59 = vadd.f32 %v3537_v13, %v3425_v14  ;;  %v3428_v61 = vpop.f32.mrf.mxu0 }
 0x243   : > { %v3539_v3 = vpop.f32.mrf.mxu1  ;;  %v3429_v11 = vadd.f32 %v3428_v61, %v6671_v17  ;;  %v7249_v61 = vld [vmem:[#allocation12_spill] sm:$0xff] }
 0x244   : > { %4116 = vst [vmem:[%s6697_s7 + $0x1c0] sm:$0xff] %v4052_v5  ;;  %v4053_v15 = vmax.f32 %v3538_v59, 0.0  ;;  %v3540_v28 = vadd.f32 %v3539_v3, %v3427_v6  ;;  %v6779_v0 = vpop.f32.mrf.mxu0  ;;  %v4968_v59 = vld [vmem:[%s7100_s3] sm:$0xf] }
 0x245   : > { %v3541_v38 = vpop.f32.mrf.mxu1  ;;  %v6894_v3 = vrot.slane %v4968_v59, %v7249_v61 }
 0x246   : > { %4117 = vst [vmem:[%s6697_s7 + $0x1c8] sm:$0xff] %v4053_v15  ;;  %v4056_v53 = vmax.f32 %v3540_v28, 0.0  ;;  %v3542_v33 = vadd.f32 %v3541_v38, %v3429_v11  ;;  %v6782_v35 = vpop.f32.mrf.mxu0  ;;  %v7252_v28 = vld [vmem:[#allocation13_spill] sm:$0xff] }
 0x247   : > { %v6784_v2 = vpop.f32.mrf.mxu1  ;;  %v6901_v38 = vrot.slane %v4968_v59, %v7252_v28 }
 0x248   : > { %4120 = vst [vmem:[%s6697_s7 + $0x1e0] sm:$0xff] %v4056_v53  ;;  %v4057_v20 = vmax.f32 %v3542_v33, 0.0  ;;  %v6787_v10 = vpop.f32.mrf.mxu0 }
 0x249   : > { %v6789_v7 = vpop.f32.mrf.mxu1  ;;  %v3581_v61 = vadd.f32 %v6782_v35, %v6901_v38  ;;  %v3583_v28 = vadd.f32 %v6787_v10, %v6894_v3 }
 0x24a   : > { %4121 = vst [vmem:[%s6697_s7 + $0x1e8] sm:$0xff] %v4057_v20  ;;  %v6792_v17 = vpop.f32.mrf.mxu0  ;;  %v3579_v20 = vadd.f32 %v6779_v0, %v6894_v3 }
 0x24b   : > { %v6794_v4 = vpop.f32.mrf.mxu1  ;;  %v3694_v0 = vadd.f32 %v6789_v7, %v3581_v61 }
 0x24c   : > { %v6796_v40 = vpop.f32.mrf.mxu0  ;;  %v3692_v59 = vadd.f32 %v6784_v2, %v3579_v20 }
 0x24d   : > { %v6798_v23 = vpop.f32.mrf.mxu1  ;;  %v3589_v2 = vadd.f32 %v6796_v40, %v6894_v3 }
 0x24e   : > { %v6800_v1 = vpop.f32.mrf.mxu0 }
 0x24f   : > { %v6802_v43 = vpop.f32.mrf.mxu1  ;;  %v3591_v7 = vadd.f32 %v6800_v1, %v6901_v38 }
 0x250   : > { %v6804_v48 = vpop.f32.mrf.mxu0 }
 0x251   : > { %v6806_v63 = vpop.f32.mrf.mxu1  ;;  %v3593_v40 = vadd.f32 %v6804_v48, %v6894_v3 }
 0x252   : > { %v6808_v21 = vpop.f32.mrf.mxu0  ;;  %v3704_v1 = vadd.f32 %v6806_v63, %v3591_v7 }
 0x253   : > { %v6810_v9 = vpop.f32.mrf.mxu1 }
 0x254   : > { %v6812_v51 = vpop.f32.mrf.mxu0  ;;  %v3706_v48 = vadd.f32 %v6810_v9, %v3593_v40 }
 0x255   : > { %v6814_v44 = vpop.f32.mrf.mxu1 }
 0x256   : > { %v6816_v30 = vpop.f32.mrf.mxu0 }
 0x257   : > { %v6818_v19 = vpop.f32.mrf.mxu1 }
 0x258   : > { %v6820_v52 = vpop.f32.mrf.mxu0 }
 0x259   : > { %v6822_v55 = vpop.f32.mrf.mxu1  ;;  %v3603_v40 = vadd.f32 %v6820_v52, %v6894_v3 }
 0x25a   : > { %v6824_v46 = vpop.f32.mrf.mxu0 }
 0x25b   : > { %v6826_v45 = vpop.f32.mrf.mxu1 }
 0x25c   : > { %v6828_v26 = vpop.f32.mrf.mxu0  ;;  %v3716_v52 = vadd.f32 %v6826_v45, %v3603_v40 }
 0x25d   : > { %v6830_v49 = vpop.f32.mrf.mxu1 }
 0x25e   : > { %v6832_v36 = vpop.f32.mrf.mxu0 }
 0x25f   : > { %v6834_v32 = vpop.f32.mrf.mxu1 }
 0x260   : > { %v6836_v57 = vpop.f32.mrf.mxu0 }
 0x261   : > { %v6838_v34 = vpop.f32.mrf.mxu1 }
 0x262   : > { %v6840_v41 = vpop.f32.mrf.mxu0 }
 0x263   : > { %v6842_v42 = vpop.f32.mrf.mxu1 }
 0x264   : > { %v6844_v60 = vpop.f32.mrf.mxu0 }
 0x265   : > { %v6846_v54 = vpop.f32.mrf.mxu1 }
 0x266   : > { %v6848_v39 = vpop.f32.mrf.mxu0 }
 0x267   : > { %v6850_v50 = vpop.f32.mrf.mxu1 }
 0x268   : > { %v6852_v27 = vpop.f32.mrf.mxu0 }
 0x269   : > { %v6854_v31 = vpop.f32.mrf.mxu1 }
 0x26a   : > { %v6856_v29 = vpop.f32.mrf.mxu0 }
 0x26b   : > { %v6858_v22 = vpop.f32.mrf.mxu1 }
 0x26c   : > { %v6860_v62 = vpop.f32.mrf.mxu0 }
 0x26d   : > { %v6862_v56 = vpop.f32.mrf.mxu1 }
 0x26e   : > { %v6864_v24 = vpop.f32.mrf.mxu0 }
 0x26f   : > { %v6866_v18 = vpop.f32.mrf.mxu1 }
 0x270   : > { %v6868_v25 = vpop.f32.mrf.mxu0 }
 0x271   : > { %v6870_v58 = vpop.f32.mrf.mxu1 }
 0x272   : > { %v6872_v16 = vpop.f32.mrf.mxu0 }
 0x273   : > { %v6874_v47 = vpop.f32.mrf.mxu1 }
 0x274   : > { %v6876_v12 = vpop.f32.mrf.mxu0 }
 0x275   : > { %v6878_v14 = vpop.f32.mrf.mxu1 }
 0x276   : > { %v6880_v37 = vpop.f32.mrf.mxu0 }
 0x277   : > { %v6882_v8 = vpop.f32.mrf.mxu1 }
 0x278   : > { %7245 = vst [vmem:[#allocation14_spill] sm:$0xff] %v6882_v8  ;;  %v6884_v13 = vpop.f32.mrf.mxu0 }
 0x279   : > { %7246 = vst [vmem:[#allocation15_spill] sm:$0xff] %v6884_v13  ;;  %v6886_v6 = vpop.f32.mrf.mxu1 }
 0x27a   : > { %7247 = vst [vmem:[#allocation16_spill] sm:$0xff] %v6886_v6  ;;  %v6888_v5 = vpop.f32.mrf.mxu0 }
 0x27b   : > { %7248 = vst [vmem:[#allocation17_spill] sm:$0xff] %v6888_v5  ;;  %v6896_v11 = vpop.f32.mrf.mxu1 }
 0x27c   : > { %7250 = vst [vmem:[#allocation19_spill] sm:$0xff] %v6896_v11  ;;  %v6898_v15 = vpop.f32.mrf.mxu0 }
 0x27d   : > { %7251 = vst [vmem:[#allocation18_spill] sm:$0xff] %v6898_v15  ;;  %v6903_v53 = vpop.f32.mrf.mxu1 }
 0x27e   : > { %7253 = vst [vmem:[#allocation20_spill] sm:$0xff] %v6903_v53  ;;  %v6905_v33 = vpop.f32.mrf.mxu0 }
 0x27f   : > { %7254 = vst [vmem:[#allocation21_spill] sm:$0xff] %v6905_v33  ;;  %v6909_v5 = vpop.f32.mrf.mxu1 }
 0x280   : > { %7255 = vst [vmem:[#allocation23_spill] sm:$0xff] %v6909_v5  ;;  %v6911_v6 = vpop.f32.mrf.mxu0 }
 0x281   : > { %7256 = vst [vmem:[#allocation22_spill] sm:$0xff] %v6911_v6  ;;  %v6915_v11 = vpop.f32.mrf.mxu1  ;;  %v3585_v6 = vadd.f32 %v6792_v17, %v6901_v38 }
 0x282   : > { %7257 = vst [vmem:[#allocation24_spill] sm:$0xff] %v6915_v11  ;;  %v6917_v15 = vpop.f32.mrf.mxu0  ;;  %v3696_v11 = vadd.f32 %v6794_v4, %v3583_v28  ;;  %v3702_v4 = vadd.f32 %v6802_v43, %v3589_v2 }
 0x283   : > { %7258 = vst [vmem:[#allocation25_spill] sm:$0xff] %v6917_v15  ;;  %v6922_v33 = vpop.f32.mrf.mxu1  ;;  %v3698_v8 = vadd.f32 %v6798_v23, %v3585_v6 }
 0x284   : > { %7259 = vst [vmem:[#allocation27_spill] sm:$0xff] %v6922_v33  ;;  %v3804_v53 = vpop.f32.mrf.mxu0 }
 0x285   : > { %v6927_v5 = vpop.f32.mrf.mxu1  ;;  %v3805_v35 = vadd.f32 %v3804_v53, %v3692_v59 }
 0x286   : > { %7260 = vst [vmem:[#allocation26_spill] sm:$0xff] %v6927_v5  ;;  %v3806_v13 = vpop.f32.mrf.mxu0 }
 0x287   : > { %v3917_v20 = vpop.f32.mrf.mxu1  ;;  %v3807_v10 = vadd.f32 %v3806_v13, %v3694_v0 }
 0x288   : > { %v3918_v15 = vadd.f32 %v3917_v20, %v3805_v35  ;;  %v3808_v33 = vpop.f32.mrf.mxu0 }
 0x289   : > { %v3919_v17 = vpop.f32.mrf.mxu1  ;;  %v3809_v61 = vadd.f32 %v3808_v33, %v3696_v11  ;;  %v3595_v11 = vadd.f32 %v6808_v21, %v6901_v38 }
 0x28a   : > { %v3998_v53 = vmax.f32 %v3918_v15, 0.0  ;;  %v3920_v59 = vadd.f32 %v3919_v17, %v3807_v10  ;;  %v3810_v5 = vpop.f32.mrf.mxu0  ;;  %v3601_v17 = vadd.f32 %v6816_v30, %v6901_v38 }
 0x28b   : > { %v3921_v28 = vpop.f32.mrf.mxu1  ;;  %v3811_v13 = vadd.f32 %v3810_v5, %v3698_v8  ;;  %v3599_v8 = vadd.f32 %v6812_v51, %v6894_v3  ;;  %v3708_v21 = vadd.f32 %v6814_v44, %v3595_v11 }
 0x28c   : > { %4062 = vst [vmem:[%s6697_s7 + $0x10] sm:$0xff] %v3998_v53  ;;  %v3999_v0 = vmax.f32 %v3920_v59, 0.0  ;;  %v3922_v23 = vadd.f32 %v3921_v28, %v3809_v61  ;;  %v3814_v6 = vpop.f32.mrf.mxu0  ;;  %v3714_v30 = vadd.f32 %v6822_v55, %v3601_v17 }
 0x28d   : > { %v3923_v15 = vpop.f32.mrf.mxu1  ;;  %v3815_v33 = vadd.f32 %v3814_v6, %v3702_v4  ;;  %v3712_v51 = vadd.f32 %v6818_v19, %v3599_v8  ;;  %v3605_v6 = vadd.f32 %v6824_v46, %v6901_v38 }
 0x28e   : > { %4063 = vst [vmem:[%s6697_s7 + $0x18] sm:$0xff] %v3999_v0  ;;  %v4002_v43 = vmax.f32 %v3922_v23, 0.0  ;;  %v3924_v35 = vadd.f32 %v3923_v15, %v3811_v13  ;;  %v3816_v2 = vpop.f32.mrf.mxu0 }
 0x28f   : > { %v3927_v5 = vpop.f32.mrf.mxu1  ;;  %v3817_v20 = vadd.f32 %v3816_v2, %v3704_v1  ;;  %v3718_v46 = vadd.f32 %v6830_v49, %v3605_v6  ;;  %v3621_v6 = vadd.f32 %v6848_v39, %v6901_v38 }
 0x290   : > { %4066 = vst [vmem:[%s6697_s7 + $0x30] sm:$0xff] %v4002_v43  ;;  %v4003_v63 = vmax.f32 %v3924_v35, 0.0  ;;  %v3928_v10 = vadd.f32 %v3927_v5, %v3815_v33  ;;  %v3818_v7 = vpop.f32.mrf.mxu0  ;;  %v3609_v43 = vadd.f32 %v6828_v26, %v6894_v3  ;;  %v3611_v5 = vadd.f32 %v6832_v36, %v6901_v38 }
 0x291   : > { %v3929_v61 = vpop.f32.mrf.mxu1  ;;  %v3819_v53 = vadd.f32 %v3818_v7, %v3706_v48  ;;  %v3734_v39 = vadd.f32 %v6854_v31, %v3621_v6 }
 0x292   : > { %4067 = vst [vmem:[%s6697_s7 + $0x38] sm:$0xff] %v4003_v63  ;;  %v4006_v9 = vmax.f32 %v3928_v10, 0.0  ;;  %v3930_v59 = vadd.f32 %v3929_v61, %v3817_v20  ;;  %v3820_v4 = vpop.f32.mrf.mxu0  ;;  %v3722_v26 = vadd.f32 %v6834_v32, %v3609_v43  ;;  %v3724_v36 = vadd.f32 %v6838_v34, %v3611_v5 }
 0x293   : > { %v3931_v28 = vpop.f32.mrf.mxu1  ;;  %v3821_v13 = vadd.f32 %v3820_v4, %v3708_v21  ;;  %v3613_v21 = vadd.f32 %v6836_v57, %v6894_v3 }
 0x294   : > { %4070 = vst [vmem:[%s6697_s7 + $0x50] sm:$0xff] %v4006_v9  ;;  %v4007_v44 = vmax.f32 %v3930_v59, 0.0  ;;  %v3932_v0 = vadd.f32 %v3931_v28, %v3819_v53  ;;  %v3824_v23 = vpop.f32.mrf.mxu0  ;;  %v3615_v59 = vadd.f32 %v6840_v41, %v6901_v38 }
 0x295   : > { %v3933_v1 = vpop.f32.mrf.mxu1  ;;  %v3825_v11 = vadd.f32 %v3824_v23, %v3712_v51  ;;  %v3726_v57 = vadd.f32 %v6842_v42, %v3613_v21 }
 0x296   : > { %4071 = vst [vmem:[%s6697_s7 + $0x58] sm:$0xff] %v4007_v44  ;;  %v4010_v19 = vmax.f32 %v3932_v0, 0.0  ;;  %v3934_v15 = vadd.f32 %v3933_v1, %v3821_v13  ;;  %v3826_v33 = vpop.f32.mrf.mxu0  ;;  %v3619_v13 = vadd.f32 %v6844_v60, %v6894_v3  ;;  %v3728_v41 = vadd.f32 %v6846_v54, %v3615_v59 }
 0x297   : > { %v3937_v35 = vpop.f32.mrf.mxu1  ;;  %v3827_v2 = vadd.f32 %v3826_v33, %v3714_v30  ;;  %v3623_v33 = vadd.f32 %v6852_v27, %v6894_v3 }
 0x298   : > { %4074 = vst [vmem:[%s6697_s7 + $0x70] sm:$0xff] %v4010_v19  ;;  %v4011_v55 = vmax.f32 %v3934_v15, 0.0  ;;  %v3938_v48 = vadd.f32 %v3937_v35, %v3825_v11  ;;  %v3828_v8 = vpop.f32.mrf.mxu0  ;;  %v3732_v60 = vadd.f32 %v6850_v50, %v3619_v13  ;;  %v3639_v13 = vadd.f32 %v6876_v12, %v6894_v3  ;;  %v7261_v12 = vld [vmem:[#allocation14_spill] sm:$0xff] }
 0x299   : > { %v3939_v20 = vpop.f32.mrf.mxu1  ;;  %v3829_v63 = vadd.f32 %v3828_v8, %v3716_v52  ;;  %v3736_v27 = vadd.f32 %v6858_v22, %v3623_v33 }
 0x29a   : > { %4075 = vst [vmem:[%s6697_s7 + $0x78] sm:$0xff] %v4011_v55  ;;  %v4014_v45 = vmax.f32 %v3938_v48, 0.0  ;;  %v3940_v10 = vadd.f32 %v3939_v20, %v3827_v2  ;;  %v3830_v7 = vpop.f32.mrf.mxu0  ;;  %v3625_v55 = vadd.f32 %v6856_v29, %v6901_v38  ;;  %v3629_v20 = vadd.f32 %v6860_v62, %v6894_v3 }
 0x29b   : > { %v3941_v17 = vpop.f32.mrf.mxu1  ;;  %v3831_v61 = vadd.f32 %v3830_v7, %v3718_v46 }
 0x29c   : > { %4078 = vst [vmem:[%s6697_s7 + $0x90] sm:$0xff] %v4014_v45  ;;  %v4015_v49 = vmax.f32 %v3940_v10, 0.0  ;;  %v3942_v53 = vadd.f32 %v3941_v17, %v3829_v63  ;;  %v3834_v9 = vpop.f32.mrf.mxu0  ;;  %v3738_v29 = vadd.f32 %v6862_v56, %v3625_v55  ;;  %v3742_v62 = vadd.f32 %v6866_v18, %v3629_v20 }
 0x29d   : > { %v3943_v4 = vpop.f32.mrf.mxu1  ;;  %v3835_v51 = vadd.f32 %v3834_v9, %v3722_v26  ;;  %v3631_v26 = vadd.f32 %v6864_v24, %v6901_v38 }
 0x29e   : > { %4079 = vst [vmem:[%s6697_s7 + $0x98] sm:$0xff] %v4015_v49  ;;  %v4018_v32 = vmax.f32 %v3942_v53, 0.0  ;;  %v3944_v40 = vadd.f32 %v3943_v4, %v3831_v61  ;;  %v3836_v28 = vpop.f32.mrf.mxu0  ;;  %v3633_v53 = vadd.f32 %v6868_v25, %v6894_v3 }
 0x29f   : > { %v3947_v44 = vpop.f32.mrf.mxu1  ;;  %v3837_v0 = vadd.f32 %v3836_v28, %v3724_v36  ;;  %v3744_v24 = vadd.f32 %v6870_v58, %v3631_v26 }
 0x2a0   : > { %4082 = vst [vmem:[%s6697_s7 + $0xb0] sm:$0xff] %v4018_v32  ;;  %v4019_v34 = vmax.f32 %v3944_v40, 0.0  ;;  %v3948_v23 = vadd.f32 %v3947_v44, %v3835_v51  ;;  %v3838_v30 = vpop.f32.mrf.mxu0  ;;  %v3635_v51 = vadd.f32 %v6872_v16, %v6901_v38  ;;  %v3746_v25 = vadd.f32 %v6874_v47, %v3633_v53 }
 0x2a1   : > { %v3949_v1 = vpop.f32.mrf.mxu1  ;;  %v3839_v11 = vadd.f32 %v3838_v30, %v3726_v57  ;;  %v3641_v30 = vadd.f32 %v6880_v37, %v6901_v38  ;;  %v7263_v37 = vld [vmem:[#allocation16_spill] sm:$0xff] }
 0x2a2   : > { %4083 = vst [vmem:[%s6697_s7 + $0xb8] sm:$0xff] %v4019_v34  ;;  %v4022_v42 = vmax.f32 %v3948_v23, 0.0  ;;  %v3950_v19 = vadd.f32 %v3949_v1, %v3837_v0  ;;  %v3840_v15 = vpop.f32.mrf.mxu0  ;;  %v3748_v16 = vadd.f32 %v6878_v14, %v3635_v51 }
 0x2a3   : > { %v3951_v52 = vpop.f32.mrf.mxu1  ;;  %v3841_v43 = vadd.f32 %v3840_v15, %v3728_v41 }
 0x2a4   : > { %4086 = vst [vmem:[%s6697_s7 + $0xd0] sm:$0xff] %v4022_v42  ;;  %v4023_v54 = vmax.f32 %v3950_v19, 0.0  ;;  %v3952_v35 = vadd.f32 %v3951_v52, %v3839_v11  ;;  %v3844_v2 = vpop.f32.mrf.mxu0  ;;  %v3752_v42 = vadd.f32 %v7261_v12, %v3639_v13  ;;  %v7262_v19 = vld [vmem:[#allocation15_spill] sm:$0xff] }
 0x2a5   : > { %v3953_v48 = vpop.f32.mrf.mxu1  ;;  %v3845_v8 = vadd.f32 %v3844_v2, %v3732_v60  ;;  %v3643_v15 = vadd.f32 %v7262_v19, %v6894_v3 }
 0x2a6   : > { %4087 = vst [vmem:[%s6697_s7 + $0xd8] sm:$0xff] %v4023_v54  ;;  %v4026_v50 = vmax.f32 %v3952_v35, 0.0  ;;  %v3954_v46 = vadd.f32 %v3953_v48, %v3841_v43  ;;  %v3846_v5 = vpop.f32.mrf.mxu0  ;;  %v3754_v54 = vadd.f32 %v7263_v37, %v3641_v30  ;;  %v7264_v35 = vld [vmem:[#allocation17_spill] sm:$0xff] }
 0x2a7   : > { %v3957_v63 = vpop.f32.mrf.mxu1  ;;  %v3847_v45 = vadd.f32 %v3846_v5, %v3734_v39  ;;  %v3645_v2 = vadd.f32 %v7264_v35, %v6901_v38 }
 0x2a8   : > { %4090 = vst [vmem:[%s6697_s7 + $0xf0] sm:$0xff] %v4026_v50  ;;  %v4027_v31 = vmax.f32 %v3954_v46, 0.0  ;;  %v3958_v10 = vadd.f32 %v3957_v63, %v3845_v8  ;;  %v3848_v7 = vpop.f32.mrf.mxu0  ;;  %v7265_v46 = vld [vmem:[#allocation19_spill] sm:$0xff] }
 0x2a9   : > { %v3959_v21 = vpop.f32.mrf.mxu1  ;;  %v3849_v17 = vadd.f32 %v3848_v7, %v3736_v27  ;;  %v3756_v5 = vadd.f32 %v7265_v46, %v3643_v15  ;;  %v7266_v27 = vld [vmem:[#allocation18_spill] sm:$0xff] }
 0x2aa   : > { %4091 = vst [vmem:[%s6697_s7 + $0xf8] sm:$0xff] %v4027_v31  ;;  %v4030_v22 = vmax.f32 %v3958_v10, 0.0  ;;  %v3960_v61 = vadd.f32 %v3959_v21, %v3847_v45  ;;  %v3850_v49 = vpop.f32.mrf.mxu0  ;;  %v3649_v20 = vadd.f32 %v7266_v27, %v6894_v3  ;;  %v7268_v21 = vld [vmem:[#allocation21_spill] sm:$0xff] }
 0x2ab   : > { %v3961_v9 = vpop.f32.mrf.mxu1  ;;  %v3851_v36 = vadd.f32 %v3850_v49, %v3738_v29  ;;  %v7267_v29 = vld [vmem:[#allocation20_spill] sm:$0xff] }
 0x2ac   : > { %4094 = vst [vmem:[%s6697_s7 + $0x110] sm:$0xff] %v4030_v22  ;;  %v4031_v56 = vmax.f32 %v3960_v61, 0.0  ;;  %v3962_v59 = vadd.f32 %v3961_v9, %v3849_v17  ;;  %v3854_v4 = vpop.f32.mrf.mxu0  ;;  %v3758_v26 = vadd.f32 %v7267_v29, %v3645_v2  ;;  %v3651_v17 = vadd.f32 %v7268_v21, %v6901_v38  ;;  %v7269_v9 = vld [vmem:[#allocation23_spill] sm:$0xff] }
 0x2ad   : > { %v3963_v32 = vpop.f32.mrf.mxu1  ;;  %v3855_v40 = vadd.f32 %v3854_v4, %v3742_v62 }
 0x2ae   : > { %4095 = vst [vmem:[%s6697_s7 + $0x118] sm:$0xff] %v4031_v56  ;;  %v4034_v18 = vmax.f32 %v3962_v59, 0.0  ;;  %v3964_v28 = vadd.f32 %v3963_v32, %v3851_v36  ;;  %v3856_v57 = vpop.f32.mrf.mxu0  ;;  %v3762_v36 = vadd.f32 %v7269_v9, %v3649_v20  ;;  %v7270_v56 = vld [vmem:[#allocation22_spill] sm:$0xff] }
 0x2af   : > { %v3967_v44 = vpop.f32.mrf.mxu1  ;;  %v3857_v0 = vadd.f32 %v3856_v57, %v3744_v24  ;;  %v3653_v59 = vadd.f32 %v7270_v56, %v6894_v3  ;;  %v7272_v57 = vld [vmem:[#allocation25_spill] sm:$0xff]  ;;  %v7273_v3 = vld [vmem:[#allocation27_spill] sm:$0xff] }
 0x2b0   : > { %4098 = vst [vmem:[%s6697_s7 + $0x130] sm:$0xff] %v4034_v18  ;;  %v4035_v58 = vmax.f32 %v3964_v28, 0.0  ;;  %v3968_v34 = vadd.f32 %v3967_v44, %v3855_v40  ;;  %v3858_v23 = vpop.f32.mrf.mxu0  ;;  %v7271_v18 = vld [vmem:[#allocation24_spill] sm:$0xff] }
 0x2b1   : > { %v3969_v41 = vpop.f32.mrf.mxu1  ;;  %v3859_v6 = vadd.f32 %v3858_v23, %v3746_v25  ;;  %v3764_v28 = vadd.f32 %v7271_v18, %v3651_v17  ;;  %v3655_v25 = vadd.f32 %v7272_v57, %v6901_v38  ;;  %v3766_v23 = vadd.f32 %v7273_v3, %v3653_v59 }
 0x2b2   : > { %4099 = vst [vmem:[%s6697_s7 + $0x138] sm:$0xff] %v4035_v58  ;;  %v4038_v47 = vmax.f32 %v3968_v34, 0.0  ;;  %v3970_v1 = vadd.f32 %v3969_v41, %v3857_v0  ;;  %v3860_v11 = vpop.f32.mrf.mxu0 }
 0x2b3   : > { %v3971_v60 = vpop.f32.mrf.mxu1  ;;  %v3861_v33 = vadd.f32 %v3860_v11, %v3748_v16 }
 0x2b4   : > { %4102 = vst [vmem:[%s6697_s7 + $0x150] sm:$0xff] %v4038_v47  ;;  %v4039_v14 = vmax.f32 %v3970_v1, 0.0  ;;  %v3972_v52 = vadd.f32 %v3971_v60, %v3859_v6  ;;  %v3864_v43 = vpop.f32.mrf.mxu0  ;;  %v7274_v1 = vld [vmem:[#allocation26_spill] sm:$0xff] }
 0x2b5   : > { %v3973_v39 = vpop.f32.mrf.mxu1  ;;  %v3865_v55 = vadd.f32 %v3864_v43, %v3752_v42  ;;  %v3768_v38 = vadd.f32 %v7274_v1, %v3655_v25 }
 0x2b6   : > { %4103 = vst [vmem:[%s6697_s7 + $0x158] sm:$0xff] %v4039_v14  ;;  %v4042_v48 = vmax.f32 %v3972_v52, 0.0  ;;  %v3974_v8 = vadd.f32 %v3973_v39, %v3861_v33  ;;  %v3866_v50 = vpop.f32.mrf.mxu0 }
 0x2b7   : > { %v3977_v63 = vpop.f32.mrf.mxu1  ;;  %v3867_v45 = vadd.f32 %v3866_v50, %v3754_v54 }
 0x2b8   : > { %4106 = vst [vmem:[%s6697_s7 + $0x170] sm:$0xff] %v4042_v48  ;;  %v4043_v31 = vmax.f32 %v3974_v8, 0.0  ;;  %v3978_v10 = vadd.f32 %v3977_v63, %v3865_v55  ;;  %v3868_v7 = vpop.f32.mrf.mxu0 }
 0x2b9   : > { %v3979_v22 = vpop.f32.mrf.mxu1  ;;  %v3869_v61 = vadd.f32 %v3868_v7, %v3756_v5 }
 0x2ba   : > { %4107 = vst [vmem:[%s6697_s7 + $0x178] sm:$0xff] %v4043_v31  ;;  %v4046_v49 = vmax.f32 %v3978_v10, 0.0  ;;  %v3980_v62 = vadd.f32 %v3979_v22, %v3867_v45  ;;  %v3870_v53 = vpop.f32.mrf.mxu0 }
 0x2bb   : > { %v3981_v4 = vpop.f32.mrf.mxu1  ;;  %v3871_v24 = vadd.f32 %v3870_v53, %v3758_v26 }
 0x2bc   : > { %4110 = vst [vmem:[%s6697_s7 + $0x190] sm:$0xff] %v4046_v49  ;;  %v4047_v51 = vmax.f32 %v3980_v62, 0.0  ;;  %v3982_v32 = vadd.f32 %v3981_v4, %v3869_v61  ;;  %v3874_v40 = vpop.f32.mrf.mxu0 }
 0x2bd   : > { %v3983_v13 = vpop.f32.mrf.mxu1  ;;  %v3875_v44 = vadd.f32 %v3874_v40, %v3762_v36 }
 0x2be   : > { %4111 = vst [vmem:[%s6697_s7 + $0x198] sm:$0xff] %v4047_v51  ;;  %v4050_v0 = vmax.f32 %v3982_v32, 0.0  ;;  %v3984_v58 = vadd.f32 %v3983_v13, %v3871_v24  ;;  %v3876_v34 = vpop.f32.mrf.mxu0 }
 0x2bf   : > { %v3987_v16 = vpop.f32.mrf.mxu1  ;;  %v3877_v30 = vadd.f32 %v3876_v34, %v3764_v28 }
 0x2c0   : > { %4114 = vst [vmem:[%s6697_s7 + $0x1b0] sm:$0xff] %v4050_v0  ;;  %v4051_v41 = vmax.f32 %v3984_v58, 0.0  ;;  %v3988_v6 = vadd.f32 %v3987_v16, %v3875_v44  ;;  %v3878_v47 = vpop.f32.mrf.mxu0 }
 0x2c1   : > { %v3989_v11 = vpop.f32.mrf.mxu1  ;;  %v3879_v12 = vadd.f32 %v3878_v47, %v3766_v23 }
 0x2c2   : > { %4115 = vst [vmem:[%s6697_s7 + $0x1b8] sm:$0xff] %v4051_v41  ;;  %v4054_v42 = vmax.f32 %v3988_v6, 0.0  ;;  %v3990_v19 = vadd.f32 %v3989_v11, %v3877_v30  ;;  %v3880_v15 = vpop.f32.mrf.mxu0 }
 0x2c3   : > { %v3991_v60 = vpop.f32.mrf.mxu1  ;;  %v3881_v33 = vadd.f32 %v3880_v15, %v3768_v38 }
 0x2c4   : > { %4118 = vst [vmem:[%s6697_s7 + $0x1d0] sm:$0xff] %v4054_v42  ;;  %v4055_v14 = vmax.f32 %v3990_v19, 0.0  ;;  %v3992_v52 = vadd.f32 %v3991_v60, %v3879_v12 }
 0x2c5   : > { %v3993_v43 = vpop.f32.mrf.mxu1 }
 0x2c6   : > { %4119 = vst [vmem:[%s6697_s7 + $0x1d8] sm:$0xff] %v4055_v14  ;;  %v4058_v37 = vmax.f32 %v3992_v52, 0.0  ;;  %v3994_v54 = vadd.f32 %v3993_v43, %v3881_v33 }
 0x2c8   : > { %4122 = vst [vmem:[%s6697_s7 + $0x1f0] sm:$0xff] %v4058_v37  ;;  %v4059_v35 = vmax.f32 %v3994_v54, 0.0 }
 0x2ca   : > { %4123 = vst [vmem:[%s6697_s7 + $0x1f8] sm:$0xff] %v4059_v35 }
 0x2cb   : > { %5062 = shalt.err (!%p5059_p12)
}
 0x2cc   : > { %s5063_s20 = scalar_lea.hbm %s7050_s5, 8192  ;;  %s5067_s26 = scalar_lea.hbm %s7101_s4, 16384 }
 0x2cd   : > { %p5064_p6 = scmp.ne.s32.totalorder %s7050_s5, %s5063_s20  ;;  %p5068_p13 = scmp.lt.s32.totalorder %s7050_s5, %s7101_s4 }
 0x2ce   : > { %p5069_p3 = scmp.lt.s32.totalorder %s5067_s26, %s5063_s20 }
 0x2cf   : > { %p5065_p7 = pnand %p5064_p6, %p7275_p0 }
 0x2d0   : > { %p5070_p8 = por %p5069_p3, %p5068_p13 }
 0x2d1   : > { %p5066_p11 = pneg %p5065_p7 }
 0x2d3   : > { %p5071_p2 = pnand %p5070_p8, %p5066_p11 }
 0x2d5   : > { %5074 = shalt.err (!%p5071_p2)
}
 0x2d6   : > { %s5127_s11 = smov 512   ;;  %s5128_s14 = smov 32  }
 0x2d7   : > { %4521 = dma.vmem_to_hbm [thread:$0]  (%p7275_p0), %s7052_s25, 8192, %s7050_s5, %s4125_s8, %s5127_s11, %s5127_s11, %s5128_s14  }
 0x2d8 PF: > { %s4154_s23 = sand.u32 1, %s5105_s15   ;;  %p7276_p4 = scmp.ne.s32.totalorder %s7147_s28, 0 }
 0x2d9   : > { %p7277_p5 = scmp.ge.s32.totalorder %s5117_s18, 2  ;;  %s4155_s13 = scalar_lea.sflag [#allocation4], %s4154_s23 }
 0x2db   : > { %p4535_p9 = pnand %p7277_p5, %p7276_p4 }
 0x2dd   : > { %p4536_p10 = pneg %p4535_p9 }
 0x2df   : > { %5100 = dma.done.wait (%p4536_p10), %s4155_s13, 8192  }
 0x2e0   : > { %5102 = vsyncadd (%p4536_p10), %s4155_s13, 4294959104  ;;  %p18_p1 = scmp.ge.s32.totalorder %s5179_s21, 4   ;;  %s7278_s15 = smov %s5109_s16 }
 0x2e1   : > { %s7279_s16 = smov %s5113_s17  ;;  %s7280_s17 = smov %s5191_s24 }
 0x2e2   : > { %s7281_s18 = smov %s5179_s21  ;;  %20 = sbr.rel (!%p18_p1) target bundleno = 8 (0x8), region = 89 }
 0x2e7   :  { %4160 = vsyncpa [#allocation3], 1 }
 0x2e8   :  { %4162 = vsyncpa [#allocation3 + $0x1], 1 }
 0x2e9   :  { %4163 = vsyncpa [#allocation6], 1 }
 0x2ea   :  { %4164 = vsyncpa [#allocation4], 1 }
 0x2eb   :  { %4166 = vsyncpa [#allocation4 + $0x1], 1 }

</bundles_post_ra>
